<compile_context>
chip_gen: v5e
topology: v5e:2x2
jax: 0.10.0
libtpu: 0.0.40
codegen_flags: <defaults>
</compile_context>

<pallas_src>
import functools
import numpy as np

import jax
import jax.numpy as jnp
from jax.experimental import pallas as pl
from jax.experimental.pallas import tpu as pltpu


_PARALLEL = pltpu.CompilerParams(dimension_semantics=("parallel",))
# v5e's scoped-VMEM default is 16 MiB; raise it for the weight-heavy MLP kernel
# (32 MiB is the default on v6e/v7x and well under v7x's 64 MiB physical VMEM).
_PARALLEL_MLP = pltpu.CompilerParams(dimension_semantics=("parallel",),
                                     vmem_limit_bytes=32 * 1024 * 1024)


# ----------------------------------------------------------------------------
# helpers
# ----------------------------------------------------------------------------
def _round_up(x, m):
    return (x + m - 1) // m * m


def _pad_rows(x, rows):
    n = x.shape[0]
    if n == rows:
        return x
    pad = [(0, rows - n)] + [(0, 0)] * (x.ndim - 1)
    return jnp.pad(x, pad)


def _pick_tile(n, max_tile):
    """Largest 8-aligned row tile <= max_tile; halved while that still allows a
    >=2-step grid (v7x has 2 TensorCores and the grid axis is "parallel")."""
    t = min(max_tile, _round_up(n, 8))
    while t > 8 and _round_up(n, t) // t < 2:
        t = _round_up(t // 2, 8)
    return max(t, 8)


# ----------------------------------------------------------------------------
# Pallas kernels: fused row-wise matmul blocks (bf16 MXU, f32 accumulate)
# ----------------------------------------------------------------------------
def _linear_kernel(x_ref, w_ref, b_ref, o_ref, *, relu):
    y = jnp.dot(x_ref[...].astype(jnp.bfloat16), w_ref[...],
                preferred_element_type=jnp.float32) + b_ref[...]
    if relu:
        y = jnp.maximum(y, 0.0)
    o_ref[...] = y.astype(o_ref.dtype)


def linear(x, w, b, relu=False, max_tile=512, pad_out=None, out_dtype=None):
    n, cin = x.shape
    cout = w.shape[1]
    if pad_out is not None and cout % pad_out != 0:
        # lane-dense output: pad cout to a multiple of 128 (unmasked stores)
        cpad = _round_up(cout, pad_out)
        w = jnp.pad(w, ((0, 0), (0, cpad - cout)))
        b = jnp.pad(b, ((0, cpad - cout),))
        return linear(x, w, b, relu=relu, max_tile=max_tile,
                      out_dtype=out_dtype)[:, :cout]
    out_dtype = out_dtype or x.dtype
    tile = _pick_tile(n, max_tile)
    n_pad = _round_up(n, tile)
    out = pl.pallas_call(
        functools.partial(_linear_kernel, relu=relu),
        out_shape=jax.ShapeDtypeStruct((n_pad, cout), out_dtype),
        grid=(n_pad // tile,),
        in_specs=[
            pl.BlockSpec((tile, cin), lambda i: (i, 0)),
            pl.BlockSpec((cin, cout), lambda i: (0, 0)),
            pl.BlockSpec((1, cout), lambda i: (0, 0)),
        ],
        out_specs=pl.BlockSpec((tile, cout), lambda i: (i, 0)),
        compiler_params=_PARALLEL,
    )(_pad_rows(x, n_pad), w.astype(jnp.bfloat16),
      b.astype(jnp.float32).reshape(1, cout))
    return out[:n]


def _ln_linear_kernel(x_ref, g_ref, bb_ref, w_ref, wb_ref, o_ref, *, eps):
    x = x_ref[...].astype(jnp.float32)            # LN math in f32
    mu = jnp.mean(x, axis=-1, keepdims=True)
    var = jnp.mean(jnp.square(x - mu), axis=-1, keepdims=True)
    xn = (x - mu) * jax.lax.rsqrt(var + eps) * g_ref[...] + bb_ref[...]
    y = jnp.dot(xn.astype(jnp.bfloat16), w_ref[...],
                preferred_element_type=jnp.float32) + wb_ref[...]
    o_ref[...] = y.astype(o_ref.dtype)


def ln_linear(x, g, b, w, wb, eps=1e-5, max_tile=512, out_dtype=None):
    n, c = x.shape
    cout = w.shape[1]
    out_dtype = out_dtype or x.dtype
    tile = _pick_tile(n, max_tile)
    n_pad = _round_up(n, tile)
    out = pl.pallas_call(
        functools.partial(_ln_linear_kernel, eps=eps),
        out_shape=jax.ShapeDtypeStruct((n_pad, cout), out_dtype),
        grid=(n_pad // tile,),
        in_specs=[
            pl.BlockSpec((tile, c), lambda i: (i, 0)),
            pl.BlockSpec((1, c), lambda i: (0, 0)),
            pl.BlockSpec((1, c), lambda i: (0, 0)),
            pl.BlockSpec((c, cout), lambda i: (0, 0)),
            pl.BlockSpec((1, cout), lambda i: (0, 0)),
        ],
        out_specs=pl.BlockSpec((tile, cout), lambda i: (i, 0)),
        compiler_params=_PARALLEL,
    )(_pad_rows(x, n_pad), g.reshape(1, c), b.reshape(1, c),
      w.astype(jnp.bfloat16), wb.astype(jnp.float32).reshape(1, cout))
    return out[:n]


def _linear_residual_kernel(x_ref, w_ref, b_ref, r_ref, o_ref):
    y = jnp.dot(x_ref[...].astype(jnp.bfloat16), w_ref[...],
                preferred_element_type=jnp.float32) + b_ref[...]
    o_ref[...] = (r_ref[...].astype(jnp.float32) + y).astype(o_ref.dtype)


def linear_residual(x, w, b, res, max_tile=512):
    n, cin = x.shape
    cout = w.shape[1]
    tile = _pick_tile(n, max_tile)
    n_pad = _round_up(n, tile)
    out = pl.pallas_call(
        _linear_residual_kernel,
        out_shape=jax.ShapeDtypeStruct((n_pad, cout), res.dtype),
        grid=(n_pad // tile,),
        in_specs=[
            pl.BlockSpec((tile, cin), lambda i: (i, 0)),
            pl.BlockSpec((cin, cout), lambda i: (0, 0)),
            pl.BlockSpec((1, cout), lambda i: (0, 0)),
            pl.BlockSpec((tile, cout), lambda i: (i, 0)),
        ],
        out_specs=pl.BlockSpec((tile, cout), lambda i: (i, 0)),
        compiler_params=_PARALLEL,
    )(_pad_rows(x, n_pad), w.astype(jnp.bfloat16),
      b.astype(jnp.float32).reshape(1, cout), _pad_rows(res, n_pad))
    return out[:n]


def _ln_mlp_residual_kernel(x_ref, g_ref, b_ref, w1_ref, b1_ref, w2_ref, b2_ref,
                            o_ref, *, eps):
    x = x_ref[...].astype(jnp.float32)
    mu = jnp.mean(x, axis=-1, keepdims=True)
    var = jnp.mean(jnp.square(x - mu), axis=-1, keepdims=True)
    xn = (x - mu) * jax.lax.rsqrt(var + eps) * g_ref[...] + b_ref[...]
    h = jnp.dot(xn.astype(jnp.bfloat16), w1_ref[...],
                preferred_element_type=jnp.float32) + b1_ref[...]
    # exact GELU (PyTorch nn.GELU default)
    h = 0.5 * h * (1.0 + jax.lax.erf(h * (1.0 / np.sqrt(2.0))))
    y = jnp.dot(h.astype(jnp.bfloat16), w2_ref[...],
                preferred_element_type=jnp.float32) + b2_ref[...]
    o_ref[...] = (x + y).astype(o_ref.dtype)      # fused residual add


def ln_mlp_residual(x, g, b, w1, b1, w2, b2, eps=1e-5, max_tile=512):
    n, c = x.shape
    hdim = w1.shape[1]
    tile = _pick_tile(n, max_tile)
    n_pad = _round_up(n, tile)
    out = pl.pallas_call(
        functools.partial(_ln_mlp_residual_kernel, eps=eps),
        out_shape=jax.ShapeDtypeStruct((n_pad, c), x.dtype),
        grid=(n_pad // tile,),
        in_specs=[
            pl.BlockSpec((tile, c), lambda i: (i, 0)),
            pl.BlockSpec((1, c), lambda i: (0, 0)),
            pl.BlockSpec((1, c), lambda i: (0, 0)),
            pl.BlockSpec((c, hdim), lambda i: (0, 0)),
            pl.BlockSpec((1, hdim), lambda i: (0, 0)),
            pl.BlockSpec((hdim, c), lambda i: (0, 0)),
            pl.BlockSpec((1, c), lambda i: (0, 0)),
        ],
        out_specs=pl.BlockSpec((tile, c), lambda i: (i, 0)),
        compiler_params=_PARALLEL_MLP,
    )(_pad_rows(x, n_pad), g.reshape(1, c), b.reshape(1, c),
      w1.astype(jnp.bfloat16), b1.astype(jnp.float32).reshape(1, hdim),
      w2.astype(jnp.bfloat16), b2.astype(jnp.float32).reshape(1, c))
    return out[:n]


# ----------------------------------------------------------------------------
# RPE (the spec module) — single one-hot MXU matmul
# ----------------------------------------------------------------------------
def _rpe_kernel(rel_ref, tab_ref, o_ref, *, H, pos_bnd, rpe_num):
    """rel_ref: (pb, 3, K, K) int32, tab_ref: (3*rpe_num, H) bf16.
    Writes the pre-permute bias (pb, K, K, H); the module's (0,3,1,2) permute
    happens in the wrapper (plain XLA)."""
    pb = rel_ref.shape[0]
    K = rel_ref.shape[2]
    R3 = 3 * rpe_num
    iota_r = jax.lax.broadcasted_iota(jnp.int32, (pb, K, K, R3), 3)
    oh = None
    for a in range(3):                                   # xyz2idx + combined one-hot
        idx = jnp.clip(rel_ref[:, a, :, :], -pos_bnd, pos_bnd) + (pos_bnd + a * rpe_num)
        oh_a = (idx[:, :, :, None] == iota_r).astype(jnp.bfloat16)
        oh = oh_a if oh is None else oh + oh_a
    # index_select + sum over the 3 axes for all heads == one MXU matmul
    bias = jnp.dot(oh.reshape(pb * K * K, R3), tab_ref[...],
                   preferred_element_type=jnp.float32)   # (pb*K*K, H)
    o_ref[...] = bias.reshape(pb, K, K, H).astype(o_ref.dtype)


def rpe_forward(xyz, rpe_table, pos_bnd, rpe_num, pb_max=64):
    """Pallas kernel == RPE.forward: xyz (P, K, K, 3) int -> bias (P, H, K, K)."""
    P, K, _, _ = xyz.shape
    H = rpe_table.shape[1]
    rel = jnp.transpose(xyz, (0, 3, 1, 2)).astype(jnp.int32)     # (P, 3, K, K)
    pb = _pick_tile(P, pb_max)
    P_pad = _round_up(P, pb)
    out = pl.pallas_call(
        functools.partial(_rpe_kernel, H=H, pos_bnd=pos_bnd, rpe_num=rpe_num),
        out_shape=jax.ShapeDtypeStruct((P_pad, K, K, H), jnp.float32),
        grid=(P_pad // pb,),
        in_specs=[
            pl.BlockSpec((pb, 3, K, K), lambda p: (p, 0, 0, 0)),
            pl.BlockSpec((3 * rpe_num, H), lambda p: (0, 0)),
        ],
        out_specs=pl.BlockSpec((pb, K, K, H), lambda p: (p, 0, 0, 0)),
        compiler_params=_PARALLEL,
    )(_pad_rows(rel, P_pad), rpe_table.astype(jnp.bfloat16))
    return jnp.transpose(out[:P], (0, 3, 1, 2))                   # module's permute


def rpe_reference(xyz, rpe_table, pos_bnd, rpe_num):
    """Pure-JAX mirror of the PyTorch RPE.forward (for validation)."""
    idx = jnp.clip(xyz, -pos_bnd, pos_bnd) + pos_bnd + jnp.arange(3) * rpe_num
    out = rpe_table[idx.reshape(-1)].reshape(idx.shape + (rpe_table.shape[1],)).sum(3)
    return jnp.transpose(out, (0, 3, 1, 2))


# ----------------------------------------------------------------------------
# Windowed attention with fused RPE bias + batch mask
# ----------------------------------------------------------------------------
def _attn_rpe_kernel(x0_ref, x1_ref, x2_ref, bid_ref, qkv_ref, tab_ref, o_ref, *,
                     H, Ch, pos_bnd, rpe_num):
    pb, K, C3 = qkv_ref.shape
    C = C3 // 3
    R3 = 3 * rpe_num

    # batch mask from compact batch ids (no (P,K,K) mask DMA)
    bid = bid_ref[...]
    mask = jnp.where(bid[:, :, None] != bid[:, None, :], -1000.0, 0.0)   # (pb,K,K)

    # relative offsets + combined one-hot from compact xyz columns
    iota_r = jax.lax.broadcasted_iota(jnp.int32, (pb, K, K, R3), 3)
    oh = None
    for a, xr in enumerate((x0_ref, x1_ref, x2_ref)):
        xa = xr[...]                                                     # (pb, K)
        rel = xa[:, :, None] - xa[:, None, :]                            # (pb, K, K)
        idx = jnp.clip(rel, -pos_bnd, pos_bnd) + (pos_bnd + a * rpe_num)
        oh_a = (idx[:, :, :, None] == iota_r).astype(jnp.bfloat16)
        oh = oh_a if oh is None else oh + oh_a

    # RPE bias for all heads with a single MXU matmul (table resident in VMEM)
    bias2d = jnp.dot(oh.reshape(pb * K * K, R3), tab_ref[...],
                     preferred_element_type=jnp.float32)                 # (pb*K*K, H)
    bias4 = bias2d.reshape(pb, K, K, H)
    head_iota = jax.lax.broadcasted_iota(jnp.int32, (pb, K, K, H), 3)

    qkv = qkv_ref[...]                                                   # bf16
    outs = []
    for h in range(H):                                                   # short static loop
        bias_h = jnp.sum(jnp.where(head_iota == h, bias4, 0.0), axis=-1)  # (pb,K,K)
        qh = qkv[:, :, h * Ch:(h + 1) * Ch]          # scale pre-folded into weights
        kh = qkv[:, :, C + h * Ch:C + (h + 1) * Ch]
        vh = qkv[:, :, 2 * C + h * Ch:2 * C + (h + 1) * Ch]
        s = jnp.einsum('pkc,pjc->pkj', qh, kh, preferred_element_type=jnp.float32)
        s = s + bias_h + mask                                            # f32 bias/mask
        s = s - jnp.max(s, axis=-1, keepdims=True)                       # f32 softmax
        p = jnp.exp(s)
        p = p * pl.reciprocal(jnp.sum(p, axis=-1, keepdims=True), approx=True)
        outs.append(jnp.einsum('pkj,pjc->pkc', p.astype(jnp.bfloat16), vh,
                               preferred_element_type=jnp.float32))
    o_ref[...] = jnp.concatenate(outs, axis=-1).astype(o_ref.dtype)      # (pb, K, C)


def patch_attention(qkv, xyz_p, bid_p, rpe_table, *, H, pos_bnd, rpe_num, pb_max=64):
    """qkv: (P, K, 3C) bf16; xyz_p: (P, K, 3) int32; bid_p: (P, K) int32."""
    P, K, C3 = qkv.shape
    C = C3 // 3
    Ch = C // H
    R3 = 3 * rpe_num
    # keep the bf16 one-hot intermediate well inside VMEM (v7x: 64 MiB physical)
    onehot_budget = 8 * 1024 * 1024
    pb_cap = max(8, (onehot_budget // (K * K * R3 * 2)) // 8 * 8)
    pb = _pick_tile(P, min(pb_max, pb_cap))
    P_pad = _round_up(P, pb)

    xyz_pad = _pad_rows(xyz_p.astype(jnp.int32), P_pad)
    x0, x1, x2 = xyz_pad[:, :, 0], xyz_pad[:, :, 1], xyz_pad[:, :, 2]
    out = pl.pallas_call(
        functools.partial(_attn_rpe_kernel, H=H, Ch=Ch, pos_bnd=pos_bnd,
                          rpe_num=rpe_num),
        out_shape=jax.ShapeDtypeStruct((P_pad, K, C), jnp.bfloat16),
        grid=(P_pad // pb,),
        in_specs=[
            pl.BlockSpec((pb, K), lambda p: (p, 0)),
            pl.BlockSpec((pb, K), lambda p: (p, 0)),
            pl.BlockSpec((pb, K), lambda p: (p, 0)),
            pl.BlockSpec((pb, K), lambda p: (p, 0)),
            pl.BlockSpec((pb, K, C3), lambda p: (p, 0, 0)),
            pl.BlockSpec((3 * rpe_num, H), lambda p: (0, 0)),
        ],
        out_specs=pl.BlockSpec((pb, K, C), lambda p: (p, 0, 0)),
        compiler_params=_PARALLEL,
    )(x0, x1, x2, _pad_rows(bid_p.astype(jnp.int32), P_pad),
      _pad_rows(qkv, P_pad), rpe_table.astype(jnp.bfloat16))
    return out[:P]


# ----------------------------------------------------------------------------
# OctreeT-style metadata (compact: offsets / masks are formed in-kernel)
# ----------------------------------------------------------------------------
def build_octree_t(xyz, batch_id, K, D, batch_size):
    N = xyz.shape[0]
    block_num = K * D
    N_pad = int(np.ceil(N / block_num) * block_num)
    pad = N_pad - N
    bid = jnp.concatenate([batch_id.astype(jnp.int32),
                           jnp.full((pad,), batch_size, jnp.int32)])
    xyzp = jnp.concatenate([xyz.astype(jnp.int32),
                            jnp.zeros((pad, 3), jnp.int32)], axis=0)

    xyz_patch = xyzp.reshape(-1, K, 3)                                      # (P, K, 3)
    bid_patch = bid.reshape(-1, K)                                          # (P, K)
    xyz_dil = xyzp.reshape(-1, K, D, 3).transpose(0, 2, 1, 3).reshape(-1, K, 3)
    bid_dil = bid.reshape(-1, K, D).transpose(0, 2, 1).reshape(-1, K)
    return dict(N_pad=N_pad, xyz_patch=xyz_patch, bid_patch=bid_patch,
                xyz_dilate=xyz_dil, bid_dilate=bid_dil)


# ----------------------------------------------------------------------------
# OctFormer blocks (hot path in fused Pallas kernels)
# ----------------------------------------------------------------------------
def octree_attention(x, blk, oct_t, K, H, C):
    D = blk['dilation']
    N = x.shape[0]
    N_pad = oct_t['N_pad']
    x = jnp.concatenate([x, jnp.zeros((N_pad - N, C), x.dtype)], axis=0)  # patch_partition
    if D > 1:
        xyz_p, bid_p = oct_t['xyz_dilate'], oct_t['bid_dilate']
        # TODO(synk): fold this dilation permutation into the attention BlockSpec
        # index_map instead of an HBM transpose.
        x = x.reshape(-1, K, D, C).transpose(0, 2, 1, 3).reshape(-1, C)
    else:
        xyz_p, bid_p = oct_t['xyz_patch'], oct_t['bid_patch']

    qkv = ln_linear(x, blk['ln1_g'], blk['ln1_b'], blk['qkv_w'], blk['qkv_b'],
                    out_dtype=jnp.bfloat16)        # fused LN1 + QKV, bf16 store/load
    qkv = qkv.reshape(-1, K, 3 * C)                # lane-dense [P, K, 3C] view
    o = patch_attention(qkv, xyz_p, bid_p, blk['rpe_table'], H=H,
                        pos_bnd=blk['pos_bnd'], rpe_num=blk['rpe_num'])
    out = o.reshape(-1, C)
    if D > 1:
        out = out.reshape(-1, D, K, C).transpose(0, 2, 1, 3).reshape(-1, C)
    return out[:N]                                  # patch_reverse


def octformer_block(x, blk, oct_t, K, H, C):
    # TODO(synk): cpe = OctreeDWConvBn requires the octree dwconv neighbor gather;
    # no Pallas equivalent here, so its contribution is omitted.
    a = octree_attention(x, blk, oct_t, K, H, C)
    x = linear_residual(a, blk['proj_w'], blk['proj_b'], x)   # proj + residual
    x = ln_mlp_residual(x, blk['ln2_g'], blk['ln2_b'],
                        blk['mlp_w1'], blk['mlp_b1'],
                        blk['mlp_w2'], blk['mlp_b2'])         # LN2 + MLP + residual
    return x


def octformer_forward(feat, xyz, batch_id, params, *, dim, heads, patch_size,
                      dilation, batch_size):
    # TODO(synk): octree construction + PatchEmbed's OctreeConvBnRelu stacks and the
    # 2x octree downsamples need ocnn neighbor tables; stem replaced by a pointwise
    # linear embedding (Pallas linear kernel).
    x = linear(feat, params['embed_w'], params['embed_b'])

    oct_t = build_octree_t(xyz, batch_id, patch_size, dilation, batch_size)
    for blk in params['blocks']:
        x = octformer_block(x, blk, oct_t, patch_size, heads, dim)

    # TODO(synk): inter-stage Downsample, FPN OctFormerDecoder (OctreeConv/Deconv/
    # Upsample) and OctreeInterp require the octree hierarchy; seg head applied directly.
    eps = 1e-5  # seg head: Linear -> BatchNorm1d(eval, folded) -> ReLU -> Linear
    inv = params['bn_gamma'] / jnp.sqrt(params['bn_var'] + eps)
    w1 = params['head_w1'] * inv[None, :]
    b1 = (params['head_b1'] - params['bn_mean']) * inv + params['bn_beta']
    h = linear(x, w1, b1, relu=True)
    out = linear(h, params['head_w2'], params['head_b2'], pad_out=128)  # lane-dense store
    return out


# ----------------------------------------------------------------------------
# Deterministic synthetic parameters (bf16 weights, scale folded at init)
# ----------------------------------------------------------------------------
def init_params(key, cin, dim, heads, patch_size, dilation, num_blocks,
                mlp_ratio, num_classes):
    keys = iter(jax.random.split(key, 256))

    def w(shape, s=0.05):
        return jax.random.normal(next(keys), shape, jnp.float32) * s

    hidden = int(dim * mlp_ratio)
    scale = (dim // heads) ** -0.5
    params = dict(embed_w=w((cin, dim), 0.1), embed_b=w((dim,), 0.1))
    blocks = []
    for i in range(num_blocks):
        dil = 1 if i % 2 == 0 else dilation            # OctFormerStage alternation
        pos_bnd = int(0.8 * patch_size * dil ** 0.5)   # RPE.get_pos_bnd
        rpe_num = 2 * pos_bnd + 1
        qkv_w, qkv_b = w((dim, 3 * dim)), w((3 * dim,))
        qmul = jnp.concatenate([jnp.full((dim,), scale, jnp.float32),
                                jnp.ones((2 * dim,), jnp.float32)])
        qkv_w = qkv_w * qmul[None, :]                  # fold attention scale into q cols
        qkv_b = qkv_b * qmul
        blocks.append(dict(
            dilation=dil, pos_bnd=pos_bnd, rpe_num=rpe_num,
            ln1_g=jnp.ones((dim,), jnp.float32), ln1_b=jnp.zeros((dim,), jnp.float32),
            ln2_g=jnp.ones((dim,), jnp.float32), ln2_b=jnp.zeros((dim,), jnp.float32),
            qkv_w=qkv_w.astype(jnp.bfloat16), qkv_b=qkv_b,
            proj_w=w((dim, dim)).astype(jnp.bfloat16), proj_b=w((dim,)),
            rpe_table=w((3 * rpe_num, heads), 0.02),
            mlp_w1=w((dim, hidden)).astype(jnp.bfloat16), mlp_b1=w((hidden,)),
            mlp_w2=w((hidden, dim)).astype(jnp.bfloat16), mlp_b2=w((dim,)),
        ))
    params['blocks'] = blocks
    params.update(
        head_w1=w((dim, dim)), head_b1=w((dim,)),
        bn_gamma=jnp.ones((dim,), jnp.float32), bn_beta=jnp.zeros((dim,), jnp.float32),
        bn_mean=jnp.zeros((dim,), jnp.float32), bn_var=jnp.ones((dim,), jnp.float32),
        head_w2=w((dim, num_classes)), head_b2=w((num_classes,)),
    )
    return params


if __name__ == "__main__":
    key = jax.random.PRNGKey(0)
    k1, k2, k3 = jax.random.split(key, 3)

    # small shapes: 56 octree nodes, 8 input channels, dim=32, 4 heads,
    # patch_size=8, dilation=2, 2 blocks, 13 classes, batch_size=2
    N, Cin = 56, 8
    dim, heads, patch_size, dilation = 32, 4, 8, 2
    num_blocks, mlp_ratio, num_classes, batch_size = 2, 4.0, 13, 2

    feat = jax.random.normal(k1, (N, Cin), jnp.float32)
    xyz = jax.random.randint(k2, (N, 3), 0, 16, jnp.int32)
    batch_id = jnp.concatenate(
        [jnp.zeros((30,), jnp.int32), jnp.ones((26,), jnp.int32)])

    params = init_params(k3, Cin, dim, heads, patch_size, dilation,
                         num_blocks, mlp_ratio, num_classes)

    # Standalone RPE kernel (the spec module): relative xyz -> (P, H, K, K) bias
    blk0 = params['blocks'][0]
    rel_xyz = jax.random.randint(jax.random.PRNGKey(1),
                                 (8, patch_size, patch_size, 3),
                                 -patch_size, patch_size, jnp.int32)
    bias = jax.block_until_ready(
        rpe_forward(rel_xyz, blk0['rpe_table'], blk0['pos_bnd'], blk0['rpe_num']))
    assert bias.shape == (8, heads, patch_size, patch_size)
    ref = rpe_reference(rel_xyz, blk0['rpe_table'], blk0['pos_bnd'], blk0['rpe_num'])
    np.testing.assert_allclose(np.asarray(bias), np.asarray(ref), atol=5e-3, rtol=0)

    # Full OctFormer-style forward with fused RPE-in-attention kernels
    out = octformer_forward(feat, xyz, batch_id, params, dim=dim, heads=heads,
                            patch_size=patch_size, dilation=dilation,
                            batch_size=batch_size)
    out = jax.block_until_ready(out)
    assert out.shape == (N, num_classes) and out.dtype == jnp.float32
    assert bool(jnp.all(jnp.isfinite(out)))
    print("KERNEL_OK")
</pallas_src>

<mosaic_0001>
module attributes {stable_mosaic.version = 11 : i64} {
  func.func @_rpe_kernel(%arg0: i32, %arg1: memref<8x3x8x8xi32, #tpu.memory_space<vmem>>, %arg2: memref<39x4xbf16, #tpu.memory_space<vmem>>, %arg3: memref<8x8x8x4xf32, #tpu.memory_space<vmem>>) attributes {dimension_semantics = [#tpu.dimension_semantics<parallel>], iteration_bounds = array<i64: 1>, scalar_prefetch = 0 : i64, scratch_operands = 0 : i64, tpu.core_type = #tpu.core_type<tc>, window_params = [{transform_indices = @transform_0, window_bounds = array<i64: 8, 3, 8, 8>}, {pipeline_mode = #tpu.pipeline_mode<synchronous>, transform_indices = @transform_1, window_bounds = array<i64: 39, 4>}, {transform_indices = @transform_2, window_bounds = array<i64: 8, 8, 8, 4>}]} {
    %0 = tpu.iota {dimensions = array<i32: 3>} : vector<8x8x8x39xi32>
    %c0 = arith.constant 0 : index
    %c0_0 = arith.constant 0 : index
    %c0_1 = arith.constant 0 : index
    %c0_2 = arith.constant 0 : index
    %1 = vector.load %arg1[%c0, %c0_0, %c0_1, %c0_2] : memref<8x3x8x8xi32, #tpu.memory_space<vmem>>, vector<8x1x8x8xi32>
    %2 = vector.shape_cast %1 : vector<8x1x8x8xi32> to vector<8x8x8xi32>
    %c-6_i32 = arith.constant -6 : i32
    %c6_i32 = arith.constant 6 : i32
    %3 = vector.broadcast %c-6_i32 : i32 to vector<8x8x8xi32>
    %4 = arith.maxsi %3, %2 : vector<8x8x8xi32>
    %5 = vector.broadcast %c6_i32 : i32 to vector<8x8x8xi32>
    %6 = arith.minsi %5, %4 : vector<8x8x8xi32>
    %c6_i32_3 = arith.constant 6 : i32
    %7 = vector.broadcast %c6_i32_3 : i32 to vector<8x8x8xi32>
    %8 = arith.addi %6, %7 : vector<8x8x8xi32>
    %9 = vector.shape_cast %8 : vector<8x8x8xi32> to vector<8x8x8x1xi32>
    %10 = vector.broadcast %9 : vector<8x8x8x1xi32> to vector<8x8x8x39xi32>
    %11 = arith.cmpi eq, %10, %0 : vector<8x8x8x39xi32>
    %12 = arith.extui %11 : vector<8x8x8x39xi1> to vector<8x8x8x39xi32>
    %13 = arith.sitofp %12 : vector<8x8x8x39xi32> to vector<8x8x8x39xf32>
    %14 = arith.truncf %13 : vector<8x8x8x39xf32> to vector<8x8x8x39xbf16>
    %c0_4 = arith.constant 0 : index
    %c1 = arith.constant 1 : index
    %c0_5 = arith.constant 0 : index
    %c0_6 = arith.constant 0 : index
    %15 = vector.load %arg1[%c0_4, %c1, %c0_5, %c0_6] : memref<8x3x8x8xi32, #tpu.memory_space<vmem>>, vector<8x1x8x8xi32>
    %16 = vector.shape_cast %15 : vector<8x1x8x8xi32> to vector<8x8x8xi32>
    %c-6_i32_7 = arith.constant -6 : i32
    %c6_i32_8 = arith.constant 6 : i32
    %17 = vector.broadcast %c-6_i32_7 : i32 to vector<8x8x8xi32>
    %18 = arith.maxsi %17, %16 : vector<8x8x8xi32>
    %19 = vector.broadcast %c6_i32_8 : i32 to vector<8x8x8xi32>
    %20 = arith.minsi %19, %18 : vector<8x8x8xi32>
    %c19_i32 = arith.constant 19 : i32
    %21 = vector.broadcast %c19_i32 : i32 to vector<8x8x8xi32>
    %22 = arith.addi %20, %21 : vector<8x8x8xi32>
    %23 = vector.shape_cast %22 : vector<8x8x8xi32> to vector<8x8x8x1xi32>
    %24 = vector.broadcast %23 : vector<8x8x8x1xi32> to vector<8x8x8x39xi32>
    %25 = arith.cmpi eq, %24, %0 : vector<8x8x8x39xi32>
    %26 = arith.extui %25 : vector<8x8x8x39xi1> to vector<8x8x8x39xi32>
    %27 = arith.sitofp %26 : vector<8x8x8x39xi32> to vector<8x8x8x39xf32>
    %28 = arith.truncf %27 : vector<8x8x8x39xf32> to vector<8x8x8x39xbf16>
    %29 = arith.addf %14, %28 : vector<8x8x8x39xbf16>
    %c0_9 = arith.constant 0 : index
    %c2 = arith.constant 2 : index
    %c0_10 = arith.constant 0 : index
    %c0_11 = arith.constant 0 : index
    %30 = vector.load %arg1[%c0_9, %c2, %c0_10, %c0_11] : memref<8x3x8x8xi32, #tpu.memory_space<vmem>>, vector<8x1x8x8xi32>
    %31 = vector.shape_cast %30 : vector<8x1x8x8xi32> to vector<8x8x8xi32>
    %c-6_i32_12 = arith.constant -6 : i32
    %c6_i32_13 = arith.constant 6 : i32
    %32 = vector.broadcast %c-6_i32_12 : i32 to vector<8x8x8xi32>
    %33 = arith.maxsi %32, %31 : vector<8x8x8xi32>
    %34 = vector.broadcast %c6_i32_13 : i32 to vector<8x8x8xi32>
    %35 = arith.minsi %34, %33 : vector<8x8x8xi32>
    %c32_i32 = arith.constant 32 : i32
    %36 = vector.broadcast %c32_i32 : i32 to vector<8x8x8xi32>
    %37 = arith.addi %35, %36 : vector<8x8x8xi32>
    %38 = vector.shape_cast %37 : vector<8x8x8xi32> to vector<8x8x8x1xi32>
    %39 = vector.broadcast %38 : vector<8x8x8x1xi32> to vector<8x8x8x39xi32>
    %40 = arith.cmpi eq, %39, %0 : vector<8x8x8x39xi32>
    %41 = arith.extui %40 : vector<8x8x8x39xi1> to vector<8x8x8x39xi32>
    %42 = arith.sitofp %41 : vector<8x8x8x39xi32> to vector<8x8x8x39xf32>
    %43 = arith.truncf %42 : vector<8x8x8x39xf32> to vector<8x8x8x39xbf16>
    %44 = arith.addf %29, %43 : vector<8x8x8x39xbf16>
    %45 = vector.shape_cast %44 : vector<8x8x8x39xbf16> to vector<512x39xbf16>
    %c0_14 = arith.constant 0 : index
    %c0_15 = arith.constant 0 : index
    %46 = vector.load %arg2[%c0_14, %c0_15] : memref<39x4xbf16, #tpu.memory_space<vmem>>, vector<39x4xbf16>
    %cst = arith.constant dense<0.000000e+00> : vector<512x4xf32>
    %47 = tpu.matmul %45, %46, %cst {dimension_numbers = #tpu.dot_dimension_numbers<[1], [0], [0], [1], [0, 0, 1, 1], [], []>} : vector<512x39xbf16>, vector<39x4xbf16>, vector<512x4xf32> -> vector<512x4xf32>
    %48 = vector.shape_cast %47 : vector<512x4xf32> to vector<8x8x8x4xf32>
    %c0_16 = arith.constant 0 : index
    %c0_17 = arith.constant 0 : index
    %c0_18 = arith.constant 0 : index
    %c0_19 = arith.constant 0 : index
    %49 = vector.load %arg3[%c0_16, %c0_17, %c0_18, %c0_19] : memref<8x8x8x4xf32, #tpu.memory_space<vmem>>, vector<8x8x8x4xf32>
    tpu.vector_store %arg3[%c0_16, %c0_17, %c0_18, %c0_19], %48 {strides = array<i32>} : memref<8x8x8x4xf32, #tpu.memory_space<vmem>>, vector<8x8x8x4xf32>,
    return
  }
  func.func @transform_0(%arg0: i32) -> (i32, i32, i32, i32) {
    %c0_i32 = arith.constant 0 : i32
    %c0_i32_0 = arith.constant 0 : i32
    %c0_i32_1 = arith.constant 0 : i32
    %c0_i32_2 = arith.constant 0 : i32
    return %arg0, %c0_i32, %c0_i32_0, %c0_i32_1 : i32, i32, i32, i32
  }
  func.func @transform_1(%arg0: i32) -> (i32, i32) {
    %c0_i32 = arith.constant 0 : i32
    %c0_i32_0 = arith.constant 0 : i32
    %c0_i32_1 = arith.constant 0 : i32
    return %c0_i32, %c0_i32_0 : i32, i32
  }
  func.func @transform_2(%arg0: i32) -> (i32, i32, i32, i32) {
    %c0_i32 = arith.constant 0 : i32
    %c0_i32_0 = arith.constant 0 : i32
    %c0_i32_1 = arith.constant 0 : i32
    %c0_i32_2 = arith.constant 0 : i32
    return %arg0, %c0_i32, %c0_i32_0, %c0_i32_1 : i32, i32, i32, i32
  }
}

</mosaic_0001>

<bundles_post_ra>
// kernel: tpu_custom_call.1
= control target key start
LH: loop header
LB: loop body
LE: loop exit
PB: predicated region body
PF: predicated region fallthrough
CT: control target
= control target key end

     0   :  { %7 = vsyncpa [#allocation3], 0  ;;  %s3600_s12 = smov [#allocation2]   ;;  %s3601_s14 = smov 128   ;;  %s5213_s0 = inlined_call_operand.hbm [shape: s32[8,3,8,8], index: 0, kind: input, shape index: {}]   ;;  %s5214_s1 = inlined_call_operand.vmem [shape: bf16[39,4], index: 1, kind: input, shape index: {}]   ;;  %s5215_s2 = inlined_call_operand.vmem [shape: f32[8,8,8,4], index: 2, kind: output, shape index: {}]  }
   0x1   :  { %s12_s11 = sshll.u32 %s5213_s0, 4  ;;  %s14_s13 = sshll.u32 %s3600_s12, 4  ;;  %s13_s11 = int_to_ptr.hbm [resolvable:$true] %s12_s11  ;;  %s15_s13 = int_to_ptr.vmem [resolvable:$true] %s14_s13 }
   0x2   :  { %s3602_s15 = smov 8  }
   0x3   :  { %20 = dma.hbm_to_vmem [thread:$0]  %s13_s11, 3072, %s15_s13, [#allocation3], %s3601_s14, %s3601_s14, %s3602_s15  }
   0x4   :  { %3598 = dma.done.wait [#allocation3], 3072  }
   0x5   :  { %3599 = vsyncadd [#allocation3], 4294964224  ;;  %v5216_v0 = vlaneseq  ;;  %v30_v2 = vld [vmem:[#allocation2] sm:$0xff]  ;;  %v31_v4 = vld [vmem:[#allocation2 + $0x18] sm:$0xff] }
   0x6   :  { %vm38_vm0 = vcmp.gt.s32.totalorder %v30_v2, 4294967290  ;;  %vm40_vm2 = vcmp.gt.s32.totalorder %v31_v4, 4294967290  ;;  %v32_v19 = vld [vmem:[#allocation2 + $0x30] sm:$0xff]  ;;  %v33_v32 = vld [vmem:[#allocation2 + $0x48] sm:$0xff]  ;;  %v34_v42 = vld [vmem:[#allocation2 + $0x60] sm:$0xff] }
   0x7   :  { %v80_v1 = vshrl.u32 %v5216_v0, 7  ;;  %v39_v3 = vsel %vm38_vm0, %v30_v2, 4294967290  ;;  %v41_v10 = vsel %vm40_vm2, %v31_v4, 4294967290  ;;  %vm42_vm4 = vcmp.gt.s32.totalorder %v32_v19, 4294967290  ;;  %v35_v55 = vld [vmem:[#allocation2 + $0x78] sm:$0xff] }
   0x8   :  { %vm54_vm1 = vcmp.lt.s32.totalorder %v39_v3, 6  ;;  %vm56_vm3 = vcmp.lt.s32.totalorder %v41_v10, 6  ;;  %v43_v23 = vsel %vm42_vm4, %v32_v19, 4294967290  ;;  %vm44_vm6 = vcmp.gt.s32.totalorder %v33_v32, 4294967290 }
   0x9   :  { %3573 = vset.pattern.permute.xlu2 %v80_v1  ;;  %3572 = vset.pattern.permute.xlu1 %v80_v1  ;;  %v55_v5 = vsel %vm54_vm1, %v39_v3, 6  ;;  %v57_v14 = vsel %vm56_vm3, %v41_v10, 6  ;;  %vm58_vm5 = vcmp.lt.s32.totalorder %v43_v23, 6  ;;  %v45_v36 = vsel %vm44_vm6, %v33_v32, 4294967290 }
   0xa   :  { %3571 = vset.pattern.permute.xlu0 %v80_v1  ;;  %v70_v6 = vadd.s32 6, %v55_v5  ;;  %v71_v15 = vadd.s32 6, %v57_v14  ;;  %v59_v27 = vsel %vm58_vm5, %v43_v23, 6  ;;  %vm60_vm7 = vcmp.lt.s32.totalorder %v45_v36, 6 }
   0xb   :  { %v72_v28 = vadd.s32 6, %v59_v27  ;;  %v61_v40 = vsel %vm60_vm7, %v45_v36, 6  ;;  %vm46_vm8 = vcmp.gt.s32.totalorder %v34_v42, 4294967290  ;;  %vm48_vm10 = vcmp.gt.s32.totalorder %v35_v55, 4294967290 }
   0xc   :  { %v106_v7 = vperm.slane %v70_v6, 4  ;;  %v92_v8 = vperm.slane %v70_v6, 2  ;;  %v78_v9 = vperm.slane %v70_v6, 0  ;;  %v113_v11 = vperm.slane %v70_v6, 5 }
   0xd   :  { %v99_v12 = vperm.slane %v70_v6, 3  ;;  %v85_v13 = vperm.slane %v70_v6, 1  ;;  %v134_v16 = vperm.slane %v71_v15, 0  ;;  %v127_v17 = vperm.slane %v70_v6, 7 }
   0xe   :  { %v120_v18 = vperm.slane %v70_v6, 6  ;;  %v155_v20 = vperm.slane %v71_v15, 3  ;;  %v148_v21 = vperm.slane %v71_v15, 2  ;;  %v141_v22 = vperm.slane %v71_v15, 1 }
   0xf   :  { %v176_v24 = vperm.slane %v71_v15, 6  ;;  %v169_v25 = vperm.slane %v71_v15, 5  ;;  %v162_v26 = vperm.slane %v71_v15, 4  ;;  %v197_v29 = vperm.slane %v72_v28, 1 }
  0x10   :  { %v190_v30 = vperm.slane %v72_v28, 0  ;;  %v183_v31 = vperm.slane %v71_v15, 7  ;;  %v218_v33 = vperm.slane %v72_v28, 4  ;;  %v211_v34 = vperm.slane %v72_v28, 3 }
  0x11   :  { %111 = vperm.xlu2 %3573, %v106_v7   ;;  %97 = vperm.xlu1 %3572, %v92_v8   ;;  %v204_v35 = vperm.slane %v72_v28, 2  ;;  %v239_v37 = vperm.slane %v72_v28, 7  ;;  %v232_v38 = vperm.slane %v72_v28, 6  ;;  %v225_v39 = vperm.slane %v72_v28, 5  ;;  %v36_v7 = vld [vmem:[#allocation2 + $0x90] sm:$0xff] }
  0x12   :  { %83 = vperm.xlu0 %3571, %v78_v9   ;;  %v73_v41 = vadd.s32 6, %v61_v40  ;;  %v47_v46 = vsel %vm46_vm8, %v34_v42, 4294967290  ;;  %v49_v59 = vsel %vm48_vm10, %v35_v55, 4294967290  ;;  %vm50_vm12 = vcmp.gt.s32.totalorder %v36_v7, 4294967290 }
  0x13   :  { %vm62_vm9 = vcmp.lt.s32.totalorder %v47_v46, 6  ;;  %vm64_vm11 = vcmp.lt.s32.totalorder %v49_v59, 6 }
  0x14   :  { %v260_v43 = vperm.slane %v73_v41, 2  ;;  %v253_v44 = vperm.slane %v73_v41, 1  ;;  %v246_v45 = vperm.slane %v73_v41, 0  ;;  %v281_v47 = vperm.slane %v73_v41, 5 }
  0x15   :  { %v274_v48 = vperm.slane %v73_v41, 4  ;;  %v267_v49 = vperm.slane %v73_v41, 3  ;;  %v63_v50 = vsel %vm62_vm9, %v47_v46, 6  ;;  %v295_v53 = vperm.slane %v73_v41, 7 }
  0x16   :  { %v74_v51 = vadd.s32 6, %v63_v50  ;;  %v288_v54 = vperm.slane %v73_v41, 6  ;;  %v65_v1 = vsel %vm64_vm11, %v49_v59, 6 }
  0x17   :  { %v75_v2 = vadd.s32 6, %v65_v1 }
  0x18   :  { %v302_v52 = vperm.slane %v74_v51, 0  ;;  %v323_v56 = vperm.slane %v74_v51, 3  ;;  %v316_v57 = vperm.slane %v74_v51, 2  ;;  %v309_v58 = vperm.slane %v74_v51, 1 }
  0x19   :  { %118 = vperm.xlu2 %3573, %v113_v11   ;;  %104 = vperm.xlu1 %3572, %v99_v12   ;;  %v344_v61 = vperm.slane %v74_v51, 6  ;;  %v337_v62 = vperm.slane %v74_v51, 5  ;;  %v330_v63 = vperm.slane %v74_v51, 4  ;;  %v365_v4 = vperm.slane %v75_v2, 1 }
  0x1a   :  { %90 = vperm.xlu0 %3571, %v85_v13   ;;  %v358_v5 = vperm.slane %v75_v2, 0  ;;  %v351_v6 = vperm.slane %v74_v51, 7  ;;  %v386_v9 = vperm.slane %v75_v2, 4  ;;  %v379_v10 = vperm.slane %v75_v2, 3 }
  0x1b   :  { %v372_v11 = vperm.slane %v75_v2, 2  ;;  %v51_v12 = vsel %vm50_vm12, %v36_v7, 4294967290 }
  0x1c   :  { %vm66_vm13 = vcmp.lt.s32.totalorder %v51_v12, 6 }
  0x1d   :  { %v67_v19 = vsel %vm66_vm13, %v51_v12, 6 }
  0x21   :  { %139 = vperm.xlu2 %3573, %v134_v16   ;;  %132 = vperm.xlu1 %3572, %v127_v17   ;;  %v407_v16 = vperm.slane %v75_v2, 7  ;;  %v400_v17 = vperm.slane %v75_v2, 6 }
  0x22   :  { %125 = vperm.xlu0 %3571, %v120_v18   ;;  %v393_v18 = vperm.slane %v75_v2, 5 }
  0x29   :  { %160 = vperm.xlu2 %3573, %v155_v20   ;;  %153 = vperm.xlu1 %3572, %v148_v21   ;;  %v76_v20 = vadd.s32 6, %v67_v19  ;;  %v37_v21 = vld [vmem:[#allocation2 + $0xa8] sm:$0xff] }
  0x2a   :  { %146 = vperm.xlu0 %3571, %v141_v22   ;;  %vm52_vm14 = vcmp.gt.s32.totalorder %v37_v21, 4294967290 }
  0x2b   :  { %v414_v27 = vperm.slane %v76_v20, 0  ;;  %v53_v28 = vsel %vm52_vm14, %v37_v21, 4294967290  ;;  %v449_v32 = vperm.slane %v76_v20, 5  ;;  %v463_v41 = vperm.slane %v76_v20, 7 }
  0x2c   :  { %vm68_vm15 = vcmp.lt.s32.totalorder %v53_v28, 6  ;;  %v456_v42 = vperm.slane %v76_v20, 6 }
  0x31   :  { %181 = vperm.xlu2 %3573, %v176_v24   ;;  %174 = vperm.xlu1 %3572, %v169_v25   ;;  %v428_v25 = vperm.slane %v76_v20, 2 }
  0x32   :  { %167 = vperm.xlu0 %3571, %v162_v26   ;;  %v421_v26 = vperm.slane %v76_v20, 1 }
  0x39   :  { %202 = vperm.xlu2 %3573, %v197_v29   ;;  %195 = vperm.xlu1 %3572, %v190_v30  }
  0x3a   :  { %188 = vperm.xlu0 %3571, %v183_v31  }
  0x41   :  { %223 = vperm.xlu2 %3573, %v218_v33   ;;  %216 = vperm.xlu1 %3572, %v211_v34   ;;  %v442_v33 = vperm.slane %v76_v20, 4  ;;  %v435_v34 = vperm.slane %v76_v20, 3 }
  0x42   :  { %209 = vperm.xlu0 %3571, %v204_v35   ;;  %v69_v35 = vsel %vm68_vm15, %v53_v28, 6 }
  0x43   :  { %v77_v36 = vadd.s32 6, %v69_v35 }
  0x45   :  { %v470_v40 = vperm.slane %v77_v36, 0  ;;  %v505_v55 = vperm.slane %v77_v36, 5  ;;  %v519_v2 = vperm.slane %v77_v36, 7 }
  0x49   :  { %244 = vperm.xlu2 %3573, %v239_v37   ;;  %237 = vperm.xlu1 %3572, %v232_v38  }
  0x4a   :  { %230 = vperm.xlu0 %3571, %v225_v39  }
  0x51   :  { %265 = vperm.xlu2 %3573, %v260_v43   ;;  %258 = vperm.xlu1 %3572, %v253_v44   ;;  %v783_v43 = vld [vmem:[#allocation2 + $0x8] sm:$0xff] }
  0x52   :  { %251 = vperm.xlu0 %3571, %v246_v45   ;;  %vm791_vm0 = vcmp.gt.s32.totalorder %v783_v43, 4294967290 }
  0x53   :  { %v792_v50 = vsel %vm791_vm0, %v783_v43, 4294967290 }
  0x54   :  { %vm807_vm1 = vcmp.lt.s32.totalorder %v792_v50, 6 }
  0x59   :  { %286 = vperm.xlu2 %3573, %v281_v47   ;;  %279 = vperm.xlu1 %3572, %v274_v48   ;;  %v491_v47 = vperm.slane %v77_v36, 3  ;;  %v484_v48 = vperm.slane %v77_v36, 2 }
  0x5a   :  { %272 = vperm.xlu0 %3571, %v267_v49   ;;  %v477_v49 = vperm.slane %v77_v36, 1 }
  0x61   :  { %307 = vperm.xlu2 %3573, %v302_v52   ;;  %300 = vperm.xlu1 %3572, %v295_v53  }
  0x62   :  { %293 = vperm.xlu0 %3571, %v288_v54   ;;  %v512_v54 = vperm.slane %v77_v36, 6 }
  0x69   :  { %328 = vperm.xlu2 %3573, %v323_v56   ;;  %321 = vperm.xlu1 %3572, %v316_v57   ;;  %v498_v56 = vperm.slane %v77_v36, 4  ;;  %v808_v57 = vsel %vm807_vm1, %v792_v50, 6 }
  0x6a   :  { %314 = vperm.xlu0 %3571, %v309_v58   ;;  %v823_v58 = vadd.s32 19, %v808_v57 }
  0x6b   :  { %v3624_v60 = vpop.permute.xlu2 %111 }
  0x6c   :  { %v831_v1 = vperm.slane %v823_v58, 0  ;;  %v880_v19 = vperm.slane %v823_v58, 7  ;;  %v873_v20 = vperm.slane %v823_v58, 6  ;;  %v866_v21 = vperm.slane %v823_v58, 5 }
  0x71   :  { %349 = vperm.xlu2 %3573, %v344_v61   ;;  %342 = vperm.xlu1 %3572, %v337_v62  }
  0x72   :  { %335 = vperm.xlu0 %3571, %v330_v63   ;;  %v838_v63 = vperm.slane %v823_v58, 1 }
  0x73   :  { %v3626_v3 = vpop.permute.xlu2 %118 }
  0x79   :  { %370 = vperm.xlu2 %3573, %v365_v4   ;;  %363 = vperm.xlu1 %3572, %v358_v5   ;;  %v784_v4 = vld [vmem:[#allocation2 + $0x20] sm:$0xff] }
  0x7a   :  { %356 = vperm.xlu0 %3571, %v351_v6   ;;  %vm793_vm2 = vcmp.gt.s32.totalorder %v784_v4, 4294967290 }
  0x7b   :  { %v3628_v8 = vpop.permute.xlu2 %139  ;;  %v794_v12 = vsel %vm793_vm2, %v784_v4, 4294967290 }
  0x7c   :  { %vm809_vm3 = vcmp.lt.s32.totalorder %v794_v12, 6 }
  0x81   :  { %391 = vperm.xlu2 %3573, %v386_v9   ;;  %384 = vperm.xlu1 %3572, %v379_v10   ;;  %v859_v9 = vperm.slane %v823_v58, 4  ;;  %v852_v10 = vperm.slane %v823_v58, 3 }
  0x82   :  { %377 = vperm.xlu0 %3571, %v372_v11   ;;  %v845_v11 = vperm.slane %v823_v58, 2 }
  0x83   :  { %v3630_v13 = vpop.permute.xlu2 %160  ;;  %v3632_v14 = vpop.permute.xlu1 %97 }
  0x84   :  { %v3634_v15 = vpop.permute.xlu0 %83 }
  0x89   :  { %412 = vperm.xlu2 %3573, %v407_v16   ;;  %405 = vperm.xlu1 %3572, %v400_v17  }
  0x8a   :  { %398 = vperm.xlu0 %3571, %v393_v18  }
  0x8b   :  { %v3636_v22 = vpop.permute.xlu2 %181  ;;  %v3638_v23 = vpop.permute.xlu1 %104 }
  0x8c   :  { %5259 = vst [vmem:[#allocation5_spill] sm:$0xff] %v3636_v22  ;;  %v3640_v24 = vpop.permute.xlu0 %90 }
  0x91   :  { %433 = vperm.xlu2 %3573, %v428_v25   ;;  %426 = vperm.xlu1 %3572, %v421_v26   ;;  %v810_v25 = vsel %vm809_vm3, %v794_v12, 6 }
  0x92   :  { %419 = vperm.xlu0 %3571, %v414_v27   ;;  %v824_v26 = vadd.s32 19, %v810_v25  ;;  %v785_v27 = vld [vmem:[#allocation2 + $0x38] sm:$0xff] }
  0x93   :  { %v3642_v29 = vpop.permute.xlu2 %202  ;;  %v3644_v30 = vpop.permute.xlu1 %132  ;;  %vm795_vm4 = vcmp.gt.s32.totalorder %v785_v27, 4294967290 }
  0x94   :  { %5260 = vst [vmem:[#allocation6_spill] sm:$0xff] %v3642_v29  ;;  %v3646_v31 = vpop.permute.xlu0 %125  ;;  %v894_v35 = vperm.slane %v824_v26, 1  ;;  %v887_v36 = vperm.slane %v824_v26, 0 }
  0x99   :  { %454 = vperm.xlu2 %3573, %v449_v32   ;;  %447 = vperm.xlu1 %3572, %v442_v33  }
  0x9a   :  { %440 = vperm.xlu0 %3571, %v435_v34   ;;  %v901_v34 = vperm.slane %v824_v26, 2 }
  0x9b   :  { %v3648_v37 = vpop.permute.xlu2 %223  ;;  %v3650_v38 = vpop.permute.xlu1 %153 }
  0x9c   :  { %5261 = vst [vmem:[#allocation7_spill] sm:$0xff] %v3648_v37  ;;  %v3652_v39 = vpop.permute.xlu0 %146 }
  0xa1   :  { %475 = vperm.xlu2 %3573, %v470_v40   ;;  %468 = vperm.xlu1 %3572, %v463_v41   ;;  %v796_v40 = vsel %vm795_vm4, %v785_v27, 4294967290 }
  0xa2   :  { %461 = vperm.xlu0 %3571, %v456_v42   ;;  %vm811_vm5 = vcmp.lt.s32.totalorder %v796_v40, 6 }
  0xa3   :  { %v3654_v44 = vpop.permute.xlu2 %244  ;;  %v3656_v45 = vpop.permute.xlu1 %174  ;;  %v812_v50 = vsel %vm811_vm5, %v796_v40, 6 }
  0xa4   :  { %5262 = vst [vmem:[#allocation8_spill] sm:$0xff] %v3654_v44  ;;  %v3658_v46 = vpop.permute.xlu0 %167 }
  0xa9   :  { %496 = vperm.xlu2 %3573, %v491_v47   ;;  %489 = vperm.xlu1 %3572, %v484_v48   ;;  %v922_v47 = vperm.slane %v824_v26, 5  ;;  %v915_v48 = vperm.slane %v824_v26, 4 }
  0xaa   :  { %482 = vperm.xlu0 %3571, %v477_v49   ;;  %v908_v49 = vperm.slane %v824_v26, 3 }
  0xab   :  { %v3660_v51 = vpop.permute.xlu2 %265  ;;  %v3662_v52 = vpop.permute.xlu1 %195 }
  0xac   :  { %5263 = vst [vmem:[#allocation9_spill] sm:$0xff] %v3660_v51  ;;  %v3664_v53 = vpop.permute.xlu0 %188 }
  0xad   :  { %5264 = vst [vmem:[#allocation10_spill] sm:$0xff] %v3662_v52 }
  0xae   :  { %5265 = vst [vmem:[#allocation11_spill] sm:$0xff] %v3664_v53 }
  0xb1   :  { %517 = vperm.xlu2 %3573, %v512_v54   ;;  %510 = vperm.xlu1 %3572, %v505_v55   ;;  %v825_v54 = vadd.s32 19, %v812_v50 }
  0xb2   :  { %503 = vperm.xlu0 %3571, %v498_v56  }
  0xb3   :  { %v3666_v59 = vpop.permute.xlu2 %286  ;;  %v3668_v61 = vpop.permute.xlu1 %216  ;;  %v943_v58 = vperm.slane %v825_v54, 0  ;;  %v957_v12 = vperm.slane %v825_v54, 2  ;;  %v985_v27 = vperm.slane %v825_v54, 6 }
  0xb4   :  { %5266 = vst [vmem:[#allocation12_spill] sm:$0xff] %v3666_v59  ;;  %v3670_v62 = vpop.permute.xlu0 %209 }
  0xb5   :  { %5267 = vst [vmem:[#allocation13_spill] sm:$0xff] %v3668_v61 }
  0xb6   :  { %5268 = vst [vmem:[#allocation14_spill] sm:$0xff] %v3670_v62 }
  0xb9   :  { %843 = vperm.xlu2 %3573, %v838_v63   ;;  %836 = vperm.xlu1 %3572, %v831_v1   ;;  %v936_v63 = vperm.slane %v824_v26, 7  ;;  %v929_v1 = vperm.slane %v824_v26, 6 }
  0xba   :  { %524 = vperm.xlu0 %3571, %v519_v2   ;;  %v786_v2 = vld [vmem:[#allocation2 + $0x50] sm:$0xff] }
  0xbb   :  { %v3672_v5 = vpop.permute.xlu2 %307  ;;  %v3674_v6 = vpop.permute.xlu1 %237  ;;  %vm797_vm6 = vcmp.gt.s32.totalorder %v786_v2, 4294967290 }
  0xbc   :  { %5269 = vst [vmem:[#allocation15_spill] sm:$0xff] %v3672_v5  ;;  %v3676_v7 = vpop.permute.xlu0 %230 }
  0xbd   :  { %5270 = vst [vmem:[#allocation16_spill] sm:$0xff] %v3674_v6 }
  0xbe   :  { %5271 = vst [vmem:[#allocation17_spill] sm:$0xff] %v3676_v7 }
  0xc1   :  { %864 = vperm.xlu2 %3573, %v859_v9   ;;  %857 = vperm.xlu1 %3572, %v852_v10  }
  0xc2   :  { %850 = vperm.xlu0 %3571, %v845_v11   ;;  %v964_v11 = vperm.slane %v825_v54, 3 }
  0xc3   :  { %v3678_v16 = vpop.permute.xlu2 %328  ;;  %v3680_v17 = vpop.permute.xlu1 %258 }
  0xc4   :  { %5272 = vst [vmem:[#allocation18_spill] sm:$0xff] %v3678_v16  ;;  %v3682_v18 = vpop.permute.xlu0 %251 }
  0xc5   :  { %5273 = vst [vmem:[#allocation19_spill] sm:$0xff] %v3680_v17 }
  0xc6   :  { %5274 = vst [vmem:[#allocation20_spill] sm:$0xff] %v3682_v18 }
  0xc9   :  { %885 = vperm.xlu2 %3573, %v880_v19   ;;  %878 = vperm.xlu1 %3572, %v873_v20   ;;  %v950_v19 = vperm.slane %v825_v54, 1  ;;  %v798_v20 = vsel %vm797_vm6, %v786_v2, 4294967290 }
  0xca   :  { %871 = vperm.xlu0 %3571, %v866_v21   ;;  %vm813_vm7 = vcmp.lt.s32.totalorder %v798_v20, 6 }
  0xcb   :  { %v3684_v28 = vpop.permute.xlu2 %349  ;;  %v3686_v32 = vpop.permute.xlu1 %279 }
  0xcc   :  { %5275 = vst [vmem:[#allocation21_spill] sm:$0xff] %v3684_v28  ;;  %v3688_v33 = vpop.permute.xlu0 %272 }
  0xcd   :  { %5276 = vst [vmem:[#allocation22_spill] sm:$0xff] %v3686_v32 }
  0xce   :  { %5277 = vst [vmem:[#allocation23_spill] sm:$0xff] %v3688_v33 }
  0xd1   :  { %906 = vperm.xlu2 %3573, %v901_v34   ;;  %899 = vperm.xlu1 %3572, %v894_v35   ;;  %v978_v34 = vperm.slane %v825_v54, 5  ;;  %v971_v35 = vperm.slane %v825_v54, 4 }
  0xd2   :  { %892 = vperm.xlu0 %3571, %v887_v36   ;;  %v814_v36 = vsel %vm813_vm7, %v798_v20, 6 }
  0xd3   :  { %v3690_v41 = vpop.permute.xlu2 %370  ;;  %v3692_v42 = vpop.permute.xlu1 %300  ;;  %v826_v40 = vadd.s32 19, %v814_v36 }
  0xd4   :  { %5278 = vst [vmem:[#allocation24_spill] sm:$0xff] %v3690_v41  ;;  %v3694_v43 = vpop.permute.xlu0 %293 }
  0xd5   :  { %5279 = vst [vmem:[#allocation25_spill] sm:$0xff] %v3692_v42  ;;  %v1006_v50 = vperm.slane %v826_v40, 1  ;;  %v1020_v20 = vperm.slane %v826_v40, 3  ;;  %v788_v42 = vld [vmem:[#allocation2 + $0x80] sm:$0xff] }
  0xd6   :  { %5280 = vst [vmem:[#allocation26_spill] sm:$0xff] %v3694_v43  ;;  %vm801_vm10 = vcmp.gt.s32.totalorder %v788_v42, 4294967290 }
  0xd7   :  { %v802_v22 = vsel %vm801_vm10, %v788_v42, 4294967290 }
  0xd8   :  { %vm817_vm11 = vcmp.lt.s32.totalorder %v802_v22, 6 }
  0xd9   :  { %927 = vperm.xlu2 %3573, %v922_v47   ;;  %920 = vperm.xlu1 %3572, %v915_v48   ;;  %v818_v32 = vsel %vm817_vm11, %v802_v22, 6 }
  0xda   :  { %913 = vperm.xlu0 %3571, %v908_v49  }
  0xdb   :  { %v3696_v55 = vpop.permute.xlu2 %391  ;;  %v3698_v56 = vpop.permute.xlu1 %321 }
  0xdc   :  { %5281 = vst [vmem:[#allocation27_spill] sm:$0xff] %v3696_v55  ;;  %v3700_v57 = vpop.permute.xlu0 %314  ;;  %v828_v55 = vadd.s32 19, %v818_v32 }
  0xdd   :  { %5282 = vst [vmem:[#allocation28_spill] sm:$0xff] %v3698_v56  ;;  %v1792_v56 = vld [vmem:[#allocation2 + $0x10] sm:$0xff] }
  0xde   :  { %v1132_v32 = vperm.slane %v828_v55, 3  ;;  %v1160_v28 = vperm.slane %v828_v55, 7  ;;  %vm1800_vm0 = vcmp.gt.s32.totalorder %v1792_v56, 4294967290 }
  0xdf   :  { %v1801_v16 = vsel %vm1800_vm0, %v1792_v56, 4294967290 }
  0xe0   :  { %vm1816_vm1 = vcmp.lt.s32.totalorder %v1801_v16, 6 }
  0xe1   :  { %948 = vperm.xlu2 %3573, %v943_v58   ;;  %941 = vperm.xlu1 %3572, %v936_v63   ;;  %v999_v58 = vperm.slane %v826_v40, 0  ;;  %v992_v63 = vperm.slane %v825_v54, 7 }
  0xe2   :  { %934 = vperm.xlu0 %3571, %v929_v1   ;;  %v787_v1 = vld [vmem:[#allocation2 + $0x68] sm:$0xff] }
  0xe3   :  { %v3702_v4 = vpop.permute.xlu2 %412  ;;  %v3704_v9 = vpop.permute.xlu1 %342  ;;  %vm799_vm8 = vcmp.gt.s32.totalorder %v787_v1, 4294967290 }
  0xe4   :  { %5283 = vst [vmem:[#allocation29_spill] sm:$0xff] %v3704_v9  ;;  %v3706_v10 = vpop.permute.xlu0 %335 }
  0xe5   :  { %5284 = vst [vmem:[#allocation30_spill] sm:$0xff] %v3706_v10 }
  0xe9   :  { %969 = vperm.xlu2 %3573, %v964_v11   ;;  %962 = vperm.xlu1 %3572, %v957_v12  }
  0xea   :  { %955 = vperm.xlu0 %3571, %v950_v19   ;;  %v1027_v19 = vperm.slane %v826_v40, 4 }
  0xeb   :  { %v3708_v21 = vpop.permute.xlu2 %433  ;;  %v3710_v25 = vpop.permute.xlu1 %363 }
  0xec   :  { %5285 = vst [vmem:[#allocation31_spill] sm:$0xff] %v3710_v25  ;;  %v3712_v26 = vpop.permute.xlu0 %356  ;;  %v1139_v25 = vperm.slane %v828_v55, 4 }
  0xed   :  { %5286 = vst [vmem:[#allocation32_spill] sm:$0xff] %v3712_v26  ;;  %v790_v26 = vld [vmem:[#allocation2 + $0xb0] sm:$0xff] }
  0xee   :  { %vm805_vm14 = vcmp.gt.s32.totalorder %v790_v26, 4294967290 }
  0xef   :  { %v806_v10 = vsel %vm805_vm14, %v790_v26, 4294967290 }
  0xf0   :  { %vm821_vm15 = vcmp.lt.s32.totalorder %v806_v10, 6 }
  0xf1   :  { %990 = vperm.xlu2 %3573, %v985_v27   ;;  %983 = vperm.xlu1 %3572, %v978_v34   ;;  %v1013_v27 = vperm.slane %v826_v40, 2  ;;  %v800_v34 = vsel %vm799_vm8, %v787_v1, 4294967290  ;;  %v822_v9 = vsel %vm821_vm15, %v806_v10, 6 }
  0xf2   :  { %976 = vperm.xlu0 %3571, %v971_v35   ;;  %vm815_vm9 = vcmp.lt.s32.totalorder %v800_v34, 6  ;;  %v830_v62 = vadd.s32 19, %v822_v9 }
  0xf3   :  { %v3714_v47 = vpop.permute.xlu2 %454  ;;  %v3716_v48 = vpop.permute.xlu1 %384  ;;  %v816_v0 = vsel %vm815_vm9, %v800_v34, 6 }
  0xf4   :  { %5287 = vst [vmem:[#allocation33_spill] sm:$0xff] %v3716_v48  ;;  %v3718_v49 = vpop.permute.xlu0 %377  ;;  %v827_v43 = vadd.s32 19, %v816_v0  ;;  %v1258_v9 = vperm.slane %v830_v62, 5 }
  0xf5   :  { %5288 = vst [vmem:[#allocation34_spill] sm:$0xff] %v3718_v49  ;;  %v789_v49 = vld [vmem:[#allocation2 + $0x98] sm:$0xff] }
  0xf6   :  { %v1062_v53 = vperm.slane %v827_v43, 1  ;;  %v1055_v59 = vperm.slane %v827_v43, 0  ;;  %v1097_v51 = vperm.slane %v827_v43, 6  ;;  %vm803_vm12 = vcmp.gt.s32.totalorder %v789_v49, 4294967290 }
  0xf7   :  { %v804_v48 = vsel %vm803_vm12, %v789_v49, 4294967290 }
  0xf8   :  { %vm819_vm13 = vcmp.lt.s32.totalorder %v804_v48, 6 }
  0xf9   :  { %1011 = vperm.xlu2 %3573, %v1006_v50   ;;  %1004 = vperm.xlu1 %3572, %v999_v58   ;;  %v1048_v50 = vperm.slane %v826_v40, 7  ;;  %v1041_v58 = vperm.slane %v826_v40, 6  ;;  %v820_v41 = vsel %vm819_vm13, %v804_v48, 6 }
  0xfa   :  { %997 = vperm.xlu0 %3571, %v992_v63   ;;  %v1034_v63 = vperm.slane %v826_v40, 5  ;;  %v829_v44 = vadd.s32 19, %v820_v41 }
  0xfb   :  { %v3720_v2 = vpop.permute.xlu2 %475  ;;  %v3722_v11 = vpop.permute.xlu1 %405 }
  0xfc   :  { %v3724_v12 = vpop.permute.xlu0 %398  ;;  %v1195_v41 = vperm.slane %v829_v44, 4  ;;  %v1202_v61 = vperm.slane %v829_v44, 5 }
 0x101   :  { %1032 = vperm.xlu2 %3573, %v1027_v19   ;;  %1025 = vperm.xlu1 %3572, %v1020_v20  }
 0x102   :  { %1018 = vperm.xlu0 %3571, %v1013_v27   ;;  %v1069_v27 = vperm.slane %v827_v43, 2 }
 0x103   :  { %v3726_v35 = vpop.permute.xlu2 %496  ;;  %v3728_v54 = vpop.permute.xlu1 %426 }
 0x104   :  { %v3730_v36 = vpop.permute.xlu0 %419 }
 0x109   :  { %1053 = vperm.xlu2 %3573, %v1048_v50   ;;  %1046 = vperm.xlu1 %3572, %v1041_v58   ;;  %v1090_v50 = vperm.slane %v827_v43, 5  ;;  %v1083_v58 = vperm.slane %v827_v43, 4 }
 0x10a   :  { %1039 = vperm.xlu0 %3571, %v1034_v63   ;;  %v1076_v63 = vperm.slane %v827_v43, 3 }
 0x10b   :  { %v3732_v1 = vpop.permute.xlu2 %517  ;;  %v3734_v19 = vpop.permute.xlu1 %447 }
 0x10c   :  { %v3736_v20 = vpop.permute.xlu0 %440 }
 0x111   :  { %1074 = vperm.xlu2 %3573, %v1069_v27   ;;  %1067 = vperm.xlu1 %3572, %v1062_v53   ;;  %v1104_v27 = vperm.slane %v827_v43, 7 }
 0x112   :  { %1060 = vperm.xlu0 %3571, %v1055_v59   ;;  %v1111_v59 = vperm.slane %v828_v55, 0 }
 0x113   :  { %v3738_v40 = vpop.permute.xlu2 %843  ;;  %v3740_v34 = vpop.permute.xlu1 %468 }
 0x114   :  { %v3742_v0 = vpop.permute.xlu0 %461 }
 0x119   :  { %1095 = vperm.xlu2 %3573, %v1090_v50   ;;  %1088 = vperm.xlu1 %3572, %v1083_v58   ;;  %v1125_v58 = vperm.slane %v828_v55, 2 }
 0x11a   :  { %1081 = vperm.xlu0 %3571, %v1076_v63   ;;  %v1118_v63 = vperm.slane %v828_v55, 1 }
 0x11b   :  { %v3744_v33 = vpop.permute.xlu2 %864  ;;  %v3746_v42 = vpop.permute.xlu1 %489 }
 0x11c   :  { %v3748_v53 = vpop.permute.xlu0 %482 }
 0x121   :  { %1116 = vperm.xlu2 %3573, %v1111_v59   ;;  %1109 = vperm.xlu1 %3572, %v1104_v27   ;;  %v1153_v59 = vperm.slane %v828_v55, 6  ;;  %v1146_v27 = vperm.slane %v828_v55, 5 }
 0x122   :  { %1102 = vperm.xlu0 %3571, %v1097_v51  }
 0x123   :  { %v3750_v17 = vpop.permute.xlu2 %885  ;;  %v3752_v22 = vpop.permute.xlu1 %510 }
 0x124   :  { %v3754_v50 = vpop.permute.xlu0 %503 }
 0x129   :  { %1137 = vperm.xlu2 %3573, %v1132_v32   ;;  %1130 = vperm.xlu1 %3572, %v1125_v58   ;;  %v1174_v58 = vperm.slane %v829_v44, 1 }
 0x12a   :  { %1123 = vperm.xlu0 %3571, %v1118_v63   ;;  %v1167_v63 = vperm.slane %v829_v44, 0 }
 0x12b   :  { %v3756_v18 = vpop.permute.xlu2 %906  ;;  %v3758_v43 = vpop.permute.xlu1 %836 }
 0x12c   :  { %v3760_v51 = vpop.permute.xlu0 %524 }
 0x131   :  { %1158 = vperm.xlu2 %3573, %v1153_v59   ;;  %1151 = vperm.xlu1 %3572, %v1146_v27   ;;  %v1181_v27 = vperm.slane %v829_v44, 2 }
 0x132   :  { %1144 = vperm.xlu0 %3571, %v1139_v25   ;;  %v1188_v25 = vperm.slane %v829_v44, 3 }
 0x133   :  { %v3762_v6 = vpop.permute.xlu2 %927  ;;  %v3764_v49 = vpop.permute.xlu1 %857 }
 0x134   :  { %v3766_v32 = vpop.permute.xlu0 %850 }
 0x139   :  { %1179 = vperm.xlu2 %3573, %v1174_v58   ;;  %1172 = vperm.xlu1 %3572, %v1167_v63   ;;  %v1216_v58 = vperm.slane %v829_v44, 7  ;;  %v1209_v63 = vperm.slane %v829_v44, 6 }
 0x13a   :  { %1165 = vperm.xlu0 %3571, %v1160_v28  }
 0x13b   :  { %v3768_v7 = vpop.permute.xlu2 %948  ;;  %v3770_v48 = vpop.permute.xlu1 %878 }
 0x13c   :  { %5289 = vst [vmem:[#allocation35_spill] sm:$0xff] %v3768_v7  ;;  %v3772_v59 = vpop.permute.xlu0 %871  ;;  %v1223_v7 = vperm.slane %v830_v62, 0 }
 0x141   :  { %1200 = vperm.xlu2 %3573, %v1195_v41   ;;  %1193 = vperm.xlu1 %3572, %v1188_v25  }
 0x142   :  { %1186 = vperm.xlu0 %3571, %v1181_v27   ;;  %v1237_v27 = vperm.slane %v830_v62, 2 }
 0x143   :  { %v3774_v37 = vpop.permute.xlu2 %969  ;;  %v3776_v55 = vpop.permute.xlu1 %899 }
 0x144   :  { %5290 = vst [vmem:[#allocation36_spill] sm:$0xff] %v3774_v37  ;;  %v3778_v28 = vpop.permute.xlu0 %892  ;;  %v1230_v37 = vperm.slane %v830_v62, 1 }
 0x149   :  { %1221 = vperm.xlu2 %3573, %v1216_v58   ;;  %1214 = vperm.xlu1 %3572, %v1209_v63   ;;  %v1251_v58 = vperm.slane %v830_v62, 4  ;;  %v1244_v63 = vperm.slane %v830_v62, 3 }
 0x14a   :  { %1207 = vperm.xlu0 %3571, %v1202_v61  }
 0x14b   :  { %v3780_v26 = vpop.permute.xlu2 %990  ;;  %v3782_v41 = vpop.permute.xlu1 %920 }
 0x14c   :  { %5291 = vst [vmem:[#allocation37_spill] sm:$0xff] %v3780_v26  ;;  %v3784_v25 = vpop.permute.xlu0 %913  ;;  %v1817_v26 = vsel %vm1816_vm1, %v1801_v16, 6 }
 0x14d   :  { %v1832_v5 = vadd.s32 32, %v1817_v26 }
 0x14f   :  { %v1861_v26 = vperm.slane %v1832_v5, 3 }
 0x151   :  { %1242 = vperm.xlu2 %3573, %v1237_v27   ;;  %1235 = vperm.xlu1 %3572, %v1230_v37   ;;  %v1272_v27 = vperm.slane %v830_v62, 7 }
 0x152   :  { %1228 = vperm.xlu0 %3571, %v1223_v7   ;;  %v1840_v7 = vperm.slane %v1832_v5, 0 }
 0x153   :  { %v3786_v44 = vpop.permute.xlu2 %1011  ;;  %v3788_v10 = vpop.permute.xlu1 %941 }
 0x154   :  { %5292 = vst [vmem:[#allocation38_spill] sm:$0xff] %v3786_v44  ;;  %v3790_v61 = vpop.permute.xlu0 %934 }
 0x155   :  { %5293 = vst [vmem:[#allocation39_spill] sm:$0xff] %v3788_v10  ;;  %v1265_v10 = vperm.slane %v830_v62, 6 }
 0x156   :  { %5294 = vst [vmem:[#allocation40_spill] sm:$0xff] %v3790_v61  ;;  %v1793_v61 = vld [vmem:[#allocation2 + $0x28] sm:$0xff] }
 0x157   :  { %vm1802_vm2 = vcmp.gt.s32.totalorder %v1793_v61, 4294967290 }
 0x159   :  { %1263 = vperm.xlu2 %3573, %v1258_v9   ;;  %1256 = vperm.xlu1 %3572, %v1251_v58   ;;  %v1854_v58 = vperm.slane %v1832_v5, 2 }
 0x15a   :  { %1249 = vperm.xlu0 %3571, %v1244_v63   ;;  %v1847_v63 = vperm.slane %v1832_v5, 1 }
 0x15b   :  { %v3792_v52 = vpop.permute.xlu2 %1032  ;;  %v3794_v56 = vpop.permute.xlu1 %962 }
 0x15c   :  { %5295 = vst [vmem:[#allocation41_spill] sm:$0xff] %v3792_v52  ;;  %v3796_v37 = vpop.permute.xlu0 %955  ;;  %v1803_v52 = vsel %vm1802_vm2, %v1793_v61, 4294967290  ;;  %v1796_v61 = vld [vmem:[#allocation2 + $0x70] sm:$0xff] }
 0x15d   :  { %5296 = vst [vmem:[#allocation42_spill] sm:$0xff] %v3794_v56  ;;  %vm1818_vm3 = vcmp.lt.s32.totalorder %v1803_v52, 6  ;;  %vm1808_vm4 = vcmp.gt.s32.totalorder %v1796_v61, 4294967290 }
 0x15e   :  { %5297 = vst [vmem:[#allocation43_spill] sm:$0xff] %v3796_v37  ;;  %v1809_v37 = vsel %vm1808_vm4, %v1796_v61, 4294967290 }
 0x15f   :  { %vm1824_vm5 = vcmp.lt.s32.totalorder %v1809_v37, 6 }
 0x161   :  { %1845 = vperm.xlu2 %3573, %v1840_v7   ;;  %1277 = vperm.xlu1 %3572, %v1272_v27   ;;  %v1882_v7 = vperm.slane %v1832_v5, 6  ;;  %v1875_v27 = vperm.slane %v1832_v5, 5 }
 0x162   :  { %1270 = vperm.xlu0 %3571, %v1265_v10  }
 0x163   :  { %v3798_v44 = vpop.permute.xlu2 %1053  ;;  %v3800_v16 = vpop.permute.xlu1 %983 }
 0x164   :  { %5298 = vst [vmem:[#allocation44_spill] sm:$0xff] %v3798_v44  ;;  %v3802_v9 = vpop.permute.xlu0 %976  ;;  %v1868_v44 = vperm.slane %v1832_v5, 4 }
 0x165   :  { %5299 = vst [vmem:[#allocation45_spill] sm:$0xff] %v3800_v16  ;;  %v1819_v16 = vsel %vm1818_vm3, %v1803_v52, 6  ;;  %v1794_v52 = vld [vmem:[#allocation2 + $0x40] sm:$0xff] }
 0x166   :  { %5300 = vst [vmem:[#allocation46_spill] sm:$0xff] %v3802_v9  ;;  %v3810_v9 = vadd.s32 32, %v1819_v16  ;;  %v1798_v16 = vld [vmem:[#allocation2 + $0xa0] sm:$0xff]  ;;  %vm1804_vm6 = vcmp.gt.s32.totalorder %v1794_v52, 4294967290 }
 0x167   :  { %vm1812_vm7 = vcmp.gt.s32.totalorder %v1798_v16, 4294967290 }
 0x168   :  { %5304 = vst [vmem:[#allocation50_spill] sm:$0xff] %v3810_v9 }
 0x169   :  { %1866 = vperm.xlu2 %3573, %v1861_v26   ;;  %1859 = vperm.xlu1 %3572, %v1854_v58  }
 0x16a   :  { %1852 = vperm.xlu0 %3571, %v1847_v63  }
 0x16b   :  { %v3804_v56 = vpop.permute.xlu2 %1074  ;;  %v3806_v62 = vpop.permute.xlu1 %1004 }
 0x16c   :  { %5301 = vst [vmem:[#allocation47_spill] sm:$0xff] %v3804_v56  ;;  %v3808_v10 = vpop.permute.xlu0 %997  ;;  %v1889_v56 = vperm.slane %v1832_v5, 7  ;;  %v1910_v5 = vperm.slane %v3810_v9, 2 }
 0x16d   :  { %5302 = vst [vmem:[#allocation48_spill] sm:$0xff] %v3806_v62  ;;  %v1903_v62 = vperm.slane %v3810_v9, 1 }
 0x16e   :  { %5303 = vst [vmem:[#allocation49_spill] sm:$0xff] %v3808_v10  ;;  %v1896_v10 = vperm.slane %v3810_v9, 0 }
 0x171   :  { %1887 = vperm.xlu2 %3573, %v1882_v7   ;;  %1880 = vperm.xlu1 %3572, %v1875_v27  }
 0x172   :  { %1873 = vperm.xlu0 %3571, %v1868_v44  }
 0x173   :  { %v3812_v26 = vpop.permute.xlu2 %1095  ;;  %v3814_v58 = vpop.permute.xlu1 %1025 }
 0x174   :  { %5305 = vst [vmem:[#allocation51_spill] sm:$0xff] %v3812_v26  ;;  %v3816_v63 = vpop.permute.xlu0 %1018 }
 0x175   :  { %5306 = vst [vmem:[#allocation52_spill] sm:$0xff] %v3814_v58  ;;  %v1924_v58 = vperm.slane %v3810_v9, 4 }
 0x176   :  { %5307 = vst [vmem:[#allocation53_spill] sm:$0xff] %v3816_v63  ;;  %v1917_v63 = vperm.slane %v3810_v9, 3 }
 0x179   :  { %1908 = vperm.xlu2 %3573, %v1903_v62   ;;  %1901 = vperm.xlu1 %3572, %v1896_v10   ;;  %v1825_v62 = vsel %vm1824_vm5, %v1809_v37, 6  ;;  %v1805_v10 = vsel %vm1804_vm6, %v1794_v52, 4294967290  ;;  %v1931_v37 = vperm.slane %v3810_v9, 5 }
 0x17a   :  { %1894 = vperm.xlu0 %3571, %v1889_v56   ;;  %v1813_v56 = vsel %vm1812_vm7, %v1798_v16, 4294967290  ;;  %v3829_v61 = vadd.s32 32, %v1825_v62  ;;  %vm1820_vm8 = vcmp.lt.s32.totalorder %v1805_v10, 6 }
 0x17b   :  { %v3820_v44 = vpop.permute.xlu2 %1116  ;;  %v3822_v7 = vpop.permute.xlu1 %1046  ;;  %vm1828_vm9 = vcmp.lt.s32.totalorder %v1813_v56, 6  ;;  %v1821_v52 = vsel %vm1820_vm8, %v1805_v10, 6 }
 0x17c   :  { %5308 = vst [vmem:[#allocation54_spill] sm:$0xff] %v3820_v44  ;;  %v3824_v27 = vpop.permute.xlu0 %1039  ;;  %v2071_v26 = vperm.slane %v3829_v61, 1  ;;  %v2064_v29 = vperm.slane %v3829_v61, 0 }
 0x17d   :  { %5309 = vst [vmem:[#allocation55_spill] sm:$0xff] %v3822_v7 }
 0x17e   :  { %5310 = vst [vmem:[#allocation56_spill] sm:$0xff] %v3824_v27 }
 0x181   :  { %1929 = vperm.xlu2 %3573, %v1924_v58   ;;  %1922 = vperm.xlu1 %3572, %v1917_v63   ;;  %v1829_v58 = vsel %vm1828_vm9, %v1813_v56, 6  ;;  %v5313_v63 = vlaneseq  ;;  %v5255_v56 = vmov 0.0  }
 0x182   :  { %1915 = vperm.xlu0 %3571, %v1910_v5   ;;  %v3843_v5 = vadd.s32 32, %v1821_v52  ;;  %v3845_v62 = vadd.s32 32, %v1829_v58 }
 0x183   :  { %v3831_v7 = vpop.permute.xlu2 %1137  ;;  %v3833_v44 = vpop.permute.xlu1 %1067  ;;  %v3841_v16 = vand.u32 127, %v5313_v63 }
 0x184   :  { %5311 = vst [vmem:[#allocation57_spill] sm:$0xff] %v3831_v7  ;;  %v3835_v27 = vpop.permute.xlu0 %1060  ;;  %v2183_v52 = vperm.slane %v3845_v62, 1 }
 0x185   :  { %5312 = vst [vmem:[#allocation58_spill] sm:$0xff] %v3835_v27  ;;  %vm572_vm10 = vcmp.eq.s32.totalorder %v3722_v11, %v3841_v16  ;;  %v2176_v11 = vperm.slane %v3845_v62, 0  ;;  %vm575_vm12 = vcmp.eq.s32.totalorder %v3728_v54, %v3841_v16  ;;  %v1959_v54 = vperm.slane %v3843_v5, 1 }
 0x186   :  { %v3369_v63 = vsel %vm572_vm10, 1.0, %v5255_v56  ;;  %vm578_vm14 = vcmp.eq.s32.totalorder %v3734_v19, %v3841_v16  ;;  %v2190_v19 = vperm.slane %v3845_v62, 2  ;;  %vm571_vm0 = vcmp.eq.s32.totalorder %v3724_v12, %v3841_v16 }
 0x187   :  { %vm581_vm1 = vcmp.eq.s32.totalorder %v3740_v34, %v3841_v16  ;;  %v2099_v34 = vperm.slane %v3829_v61, 5  ;;  %vm573_vm4 = vcmp.eq.s32.totalorder %v3702_v4, %v3841_v16  ;;  %vm574_vm5 = vcmp.eq.s32.totalorder %v3730_v36, %v3841_v16 }
 0x188   :  { %vm584_vm6 = vcmp.eq.s32.totalorder %v3746_v42, %v3841_v16  ;;  %v1980_v36 = vperm.slane %v3843_v5, 4  ;;  %vm530_vm10 = vcmp.eq.s32.totalorder %v3624_v60, %v3841_v16 }
 0x189   :  { %2076 = vperm.xlu2 %3573, %v2071_v26   ;;  %2069 = vperm.xlu1 %3572, %v2064_v29   ;;  %v1952_v26 = vperm.slane %v3843_v5, 0 }
 0x18a   :  { %1936 = vperm.xlu0 %3571, %v1931_v37  }
 0x18b   :  { %v1159_v7 = vpop.permute.xlu2 %1158  ;;  %v3849_v27 = vpop.permute.xlu1 %1088 }
 0x18c   :  { %5314 = vst [vmem:[#allocation59_spill] sm:$0xff] %v3849_v27  ;;  %vm1325_vm11 = vcmp.eq.s32.totalorder %v1159_v7, %v3841_v16  ;;  %v3852_v10 = vpop.permute.xlu0 %1081  ;;  %v5317_v27 = vmov 0.0  }
 0x18d   :  { %v3433_v29 = vsel %vm1325_vm11, 1.0, %v5255_v56  ;;  %v3372_v9 = vsel %vm575_vm12, 1.0, %v5317_v27  ;;  %vm531_vm11 = vcmp.eq.s32.totalorder %v3626_v3, %v3841_v16  ;;  %vm576_vm12 = vcmp.eq.s32.totalorder %v3708_v21, %v3841_v16 }
 0x18e   :  { %v3858_v58 = vadd.f32 %v3433_v29, %v3369_v63  ;;  %v2085_v29 = vperm.slane %v3829_v61, 3  ;;  %v3946_v60 = vsel %vm531_vm11, 1.0, %v5317_v27  ;;  %v3373_v3 = vsel %vm576_vm12, 1.0, %v5317_v27 }
 0x18f   :  { %vm3078_vm11 = vcmask 1043456   ;;  %vm527_vm12 = vcmp.eq.s32.totalorder %v3640_v24, %v3841_v16  ;;  %v3555_v24 = vld [vmem:[%s5214_s1] sm:$0xff] }
 0x190   :  { %5315 = vst [vmem:[#allocation60_spill] sm:$0xff] %v3858_v58 }
 0x191   :  { %1957 = vperm.xlu2 %3573, %v1952_v26   ;;  %2188 = vperm.xlu1 %3572, %v2183_v52   ;;  %v2078_v26 = vperm.slane %v3829_v61, 2 }
 0x192   :  { %2181 = vperm.xlu0 %3571, %v2176_v11  }
 0x193   :  { %v1180_v7 = vpop.permute.xlu2 %1179  ;;  %v3863_v37 = vpop.permute.xlu1 %1109 }
 0x194   :  { %vm1328_vm13 = vcmp.eq.s32.totalorder %v1180_v7, %v3841_v16  ;;  %v3866_v56 = vpop.permute.xlu0 %1102 }
 0x195   :  { %5316 = vst [vmem:[#allocation61_spill] sm:$0xff] %v3866_v56  ;;  %v3436_v63 = vsel %vm1328_vm13, 1.0, %v5317_v27  ;;  %v3375_v56 = vsel %vm578_vm14, 1.0, %v5317_v27  ;;  %vm577_vm13 = vcmp.eq.s32.totalorder %v3736_v20, %v3841_v16  ;;  %vm587_vm14 = vcmp.eq.s32.totalorder %v3752_v22, %v3841_v16 }
 0x196   :  { %v3872_v52 = vadd.f32 %v3436_v63, %v3372_v9  ;;  %v1966_v63 = vperm.slane %v3843_v5, 2  ;;  %v3374_v21 = vsel %vm577_vm13, 1.0, %v5317_v27  ;;  %v3384_v20 = vsel %vm587_vm14, 1.0, %v5317_v27 }
 0x197   :  { %vm533_vm13 = vcmp.eq.s32.totalorder %v3644_v30, %v3841_v16  ;;  %vm579_vm14 = vcmp.eq.s32.totalorder %v3714_v47, %v3841_v16 }
 0x199   :  { %2090 = vperm.xlu2 %3573, %v2085_v29   ;;  %2083 = vperm.xlu1 %3572, %v2078_v26   ;;  %v2197_v29 = vperm.slane %v3845_v62, 3 }
 0x19a   :  { %1964 = vperm.xlu0 %3571, %v1959_v54  }
 0x19b   :  { %v1201_v11 = vpop.permute.xlu2 %1200  ;;  %v3877_v7 = vpop.permute.xlu1 %1130 }
 0x19c   :  { %5318 = vst [vmem:[#allocation62_spill] sm:$0xff] %v3877_v7  ;;  %vm1331_vm15 = vcmp.eq.s32.totalorder %v1201_v11, %v3841_v16  ;;  %v3880_v58 = vpop.permute.xlu0 %1123  ;;  %v3368_v7 = vsel %vm571_vm0, 1.0, %v5317_v27 }
 0x19d   :  { %5319 = vst [vmem:[#allocation63_spill] sm:$0xff] %v3880_v58  ;;  %v3439_v9 = vsel %vm1331_vm15, 1.0, %v5317_v27  ;;  %v3378_v58 = vsel %vm581_vm1, 1.0, %v5317_v27  ;;  %vm534_vm15 = vcmp.eq.s32.totalorder %v3628_v8, %v3841_v16 }
 0x19e   :  { %v3886_v26 = vadd.f32 %v3439_v9, %v3375_v56 }
 0x1a0   :  { %5320 = vst [vmem:[#allocation64_spill] sm:$0xff] %v3886_v26  ;;  %v1973_v26 = vperm.slane %v3843_v5, 3 }
 0x1a1   :  { %1971 = vperm.xlu2 %3573, %v1966_v63   ;;  %2202 = vperm.xlu1 %3572, %v2197_v29   ;;  %v2092_v63 = vperm.slane %v3829_v61, 4 }
 0x1a2   :  { %2195 = vperm.xlu0 %3571, %v2190_v19  }
 0x1a3   :  { %v1222_v54 = vpop.permute.xlu2 %1221  ;;  %v1152_v11 = vpop.permute.xlu1 %1151 }
 0x1a4   :  { %vm1334_vm2 = vcmp.eq.s32.totalorder %v1222_v54, %v3841_v16  ;;  %vm1324_vm3 = vcmp.eq.s32.totalorder %v1152_v11, %v3841_v16  ;;  %v3897_v56 = vpop.permute.xlu0 %1144  ;;  %v3370_v54 = vsel %vm573_vm4, 1.0, %v5317_v27  ;;  %vm3077_vm4 = vcmask 1042432  }
 0x1a5   :  { %5321 = vst [vmem:[#allocation65_spill] sm:$0xff] %v3897_v56  ;;  %v3442_v12 = vsel %vm1334_vm2, 1.0, %v5317_v27  ;;  %v3432_v9 = vsel %vm1324_vm3, 1.0, %v5317_v27  ;;  %v1797_v56 = vld [vmem:[#allocation2 + $0x88] sm:$0xff] }
 0x1a6   :  { %v3903_v29 = vadd.f32 %v3442_v12, %v3378_v58  ;;  %v3905_v19 = vadd.f32 %v3432_v9, %v3368_v7  ;;  %v3371_v58 = vsel %vm574_vm5, 1.0, %v5317_v27  ;;  %v3381_v12 = vsel %vm584_vm6, 1.0, %v5317_v27 }
 0x1a7   :  { %vm1810_vm0 = vcmp.gt.s32.totalorder %v1797_v56, 4294967290  ;;  %vm537_vm5 = vcmp.eq.s32.totalorder %v3630_v13, %v3841_v16  ;;  %vm528_vm6 = vcmp.eq.s32.totalorder %v3632_v14, %v3841_v16  ;;  %v3324_v14 = vsel %vm527_vm12, 1.0, %v5317_v27 }
 0x1a8   :  { %5322 = vst [vmem:[#allocation66_spill] sm:$0xff] %v3903_v29 }
 0x1a9   :  { %5323 = vst [vmem:[#allocation67_spill] sm:$0xff] %v3905_v19  ;;  %2104 = vperm.xlu2 %3573, %v2099_v34   ;;  %2097 = vperm.xlu1 %3572, %v2092_v63  }
 0x1aa   :  { %1978 = vperm.xlu0 %3571, %v1973_v26   ;;  %v2211_v26 = vperm.slane %v3845_v62, 5 }
 0x1ab   :  { %v1243_v7 = vpop.permute.xlu2 %1242  ;;  %v1173_v11 = vpop.permute.xlu1 %1172 }
 0x1ac   :  { %vm1337_vm7 = vcmp.eq.s32.totalorder %v1243_v7, %v3841_v16  ;;  %vm1327_vm8 = vcmp.eq.s32.totalorder %v1173_v11, %v3841_v16  ;;  %v1166_v4 = vpop.permute.xlu0 %1165  ;;  %v2204_v7 = vperm.slane %v3845_v62, 4 }
 0x1ad   :  { %v3445_v42 = vsel %vm1337_vm7, 1.0, %v5317_v27  ;;  %v3435_v9 = vsel %vm1327_vm8, 1.0, %v5317_v27  ;;  %vm1326_vm9 = vcmp.eq.s32.totalorder %v1166_v4, %v3841_v16  ;;  %v2106_v4 = vperm.slane %v3829_v61, 6 }
 0x1ae   :  { %v3924_v34 = vadd.f32 %v3445_v42, %v3381_v12  ;;  %v3926_v63 = vadd.f32 %v3435_v9, %v3371_v58  ;;  %v3434_v19 = vsel %vm1326_vm9, 1.0, %v5317_v27  ;;  %v3943_v58 = vsel %vm530_vm10, 1.0, %v5317_v27 }
 0x1af   :  { %v3934_v11 = vadd.f32 %v3434_v19, %v3370_v54  ;;  %v2113_v54 = vperm.slane %v3829_v61, 7  ;;  %vm526_vm7 = vcmp.eq.s32.totalorder %v3634_v15, %v3841_v16  ;;  %vm580_vm8 = vcmp.eq.s32.totalorder %v3742_v0, %v3841_v16 }
 0x1b0   :  { %5324 = vst [vmem:[#allocation68_spill] sm:$0xff] %v3924_v34  ;;  %v3973_v34 = vsel %vm534_vm15, 1.0, %v5317_v27  ;;  %vm529_vm9 = vcmp.eq.s32.totalorder %v3638_v23, %v3841_v16  ;;  %vm1280_vm15 = vcmp.eq.s32.totalorder %v3738_v40, %v3841_v16  ;;  %v3376_v0 = vsel %vm579_vm14, 1.0, %v5317_v27 }
 0x1b1   :  { %5325 = vst [vmem:[#allocation69_spill] sm:$0xff] %v3934_v11  ;;  %1985 = vperm.xlu2 %3573, %v1980_v36   ;;  %2216 = vperm.xlu1 %3572, %v2211_v26   ;;  %v1987_v36 = vperm.slane %v3843_v5, 5  ;;  %v1811_v26 = vsel %vm1810_vm0, %v1797_v56, 4294967290  ;;  %v1795_v56 = vld [vmem:[#allocation2 + $0x58] sm:$0xff]  ;;  %v4055_v40 = vsel %vm529_vm9, 1.0, %v5317_v27  ;;  %v4067_v15 = vsel %vm533_vm13, 1.0, %v5317_v27 }
 0x1b2   :  { %2209 = vperm.xlu0 %3571, %v2204_v7   ;;  %v2804_v7 = vld [vmem:[%s5214_s1 + $0x10] sm:$0xf]  ;;  %vm1826_vm10 = vcmp.lt.s32.totalorder %v1811_v26, 6  ;;  %vm535_vm13 = vcmp.eq.s32.totalorder %v3652_v39, %v3841_v16  ;;  %vm585_vm14 = vcmp.eq.s32.totalorder %v3726_v35, %v3841_v16 }
 0x1b3   :  { %v1264_v22 = vpop.permute.xlu2 %1263  ;;  %v1194_v19 = vpop.permute.xlu1 %1193  ;;  %v2974_v61 = vunpack.c.l.b16 %v2804_v7  ;;  %v2225_v7 = vperm.slane %v3845_v62, 7 }
 0x1b4   :  { %vm1340_vm1 = vcmp.eq.s32.totalorder %v1264_v22, %v3841_v16  ;;  %vm1330_vm2 = vcmp.eq.s32.totalorder %v1194_v19, %v3841_v16  ;;  %v1187_v12 = vpop.permute.xlu0 %1186 }
 0x1b5   :  { %v3448_v42 = vsel %vm1340_vm1, 1.0, %v5317_v27  ;;  %v3438_v9 = vsel %vm1330_vm2, 1.0, %v5317_v27  ;;  %vm1329_vm3 = vcmp.eq.s32.totalorder %v1187_v12, %v3841_v16  ;;  %v2977_v8 = vpack.c.b16 %v2974_v61, %v2974_v61 }
 0x1b6   :  { %v3964_v11 = vadd.f32 %v3448_v42, %v3384_v20  ;;  %v3966_v22 = vadd.f32 %v3438_v9, %v3374_v21  ;;  %v3437_v19 = vsel %vm1329_vm3, 1.0, %v5317_v27  ;;  %v3604_v21 = vmov 65535  }
 0x1b7   :  { %v3975_v29 = vadd.f32 %v3437_v19, %v3373_v3  ;;  %v1799_v3 = vld [vmem:[#allocation2 + $0xb8] sm:$0xff]  ;;  %v3079_v20 = vsel %vm3077_vm4, 4294967295, %v3604_v21  ;;  %v1994_v42 = vperm.slane %v3843_v5, 6  ;;  %v1827_v19 = vsel %vm1826_vm10, %v1811_v26, 6  ;;  %v3556_v26 = vld [vmem:[%s5214_s1 + $0x8] sm:$0xff] }
 0x1b8   :  { %5326 = vst [vmem:[#allocation70_spill] sm:$0xff] %v3964_v11  ;;  %v3080_v9 = vsel %vm3078_vm11, %v3079_v20, 0  ;;  %vm1806_vm2 = vcmp.gt.s32.totalorder %v1795_v56, 4294967290  ;;  %vm1814_vm3 = vcmp.gt.s32.totalorder %v1799_v3, 4294967290  ;;  %v2218_v11 = vperm.slane %v3845_v62, 6 }
 0x1b9   :  { %2118 = vperm.xlu2 %3573, %v2113_v54   ;;  %2111 = vperm.xlu1 %3572, %v2106_v4   ;;  %v3377_v54 = vsel %vm580_vm8, 1.0, %v5317_v27  ;;  %v3082_v61 = vand.u32 %v3080_v9, %v2977_v8  ;;  %v4023_v8 = vsel %vm537_vm5, 1.0, %v5317_v27  ;;  %vm532_vm4 = vcmp.eq.s32.totalorder %v3646_v31, %v3841_v16 }
 0x1ba   :  { %1992 = vperm.xlu0 %3571, %v1987_v36   ;;  %vm582_vm8 = vcmp.eq.s32.totalorder %v3720_v2, %v3841_v16  ;;  %v3388_v62 = vsel %vm1280_vm15, 1.0, %v5317_v27  ;;  %v1807_v13 = vsel %vm1806_vm2, %v1795_v56, 4294967290  ;;  %v1815_v9 = vsel %vm1814_vm3, %v1799_v3, 4294967290 }
 0x1bb   :  { %v4000_v12 = vpop.permute.xlu2 %1845  ;;  %v1215_v4 = vpop.permute.xlu1 %1214  ;;  %3089 = vmatpush.bf16.msra.mxu0 %v3082_v61  ;;  %3558 = vmatpush.bf16.msra.mxu2 %v3082_v61  ;;  %vm583_vm5 = vcmp.eq.s32.totalorder %v3748_v53, %v3841_v16  ;;  %v4073_v23 = vsel %vm532_vm4, 1.0, %v5317_v27  ;;  %v3379_v30 = vsel %vm582_vm8, 1.0, %v5317_v27  ;;  %v4084_v56 = vadd.f32 %v3388_v62, %v3324_v14 }
 0x1bc   :  { %vm1333_vm0 = vcmp.eq.s32.totalorder %v1215_v4, %v3841_v16  ;;  %v1208_v36 = vpop.permute.xlu0 %1207  ;;  %3559 = vmatpush.bf16.msra.mxu3 %v3082_v61  ;;  %3557 = vmatpush.bf16.msra.mxu1 %v3082_v61  ;;  %v4049_v61 = vsel %vm526_vm7, 1.0, %v5317_v27  ;;  %vm1822_vm7 = vcmp.lt.s32.totalorder %v1807_v13, 6  ;;  %vm1830_vm9 = vcmp.lt.s32.totalorder %v1815_v9, 6 }
 0x1bd   :  { %v3441_v21 = vsel %vm1333_vm0, 1.0, %v5317_v27  ;;  %vm1332_vm1 = vcmp.eq.s32.totalorder %v1208_v36, %v3841_v16  ;;  %v4043_v36 = vsel %vm528_vm6, 1.0, %v5317_v27  ;;  %vm536_vm6 = vcmp.eq.s32.totalorder %v3650_v38, %v3841_v16 }
 0x1be   :  { %v4012_v20 = vadd.f32 %v3441_v21, %v3377_v54  ;;  %v3440_v4 = vsel %vm1332_vm1, 1.0, %v5317_v27  ;;  %v4035_v54 = vadd.s32 32, %v1827_v19  ;;  %vm1279_vm10 = vcmp.eq.s32.totalorder %v3758_v43, %v3841_v16 }
 0x1bf   :  { %v4029_v47 = vadd.f32 %v3440_v4, %v3376_v0  ;;  %3090 = vmatpush.bf16.msra.mxu0 %v3556_v26  ;;  %3561 = vmatpush.bf16.msra.mxu2 %v3556_v26  ;;  %v2001_v21 = vperm.slane %v3843_v5, 7  ;;  %v1823_v4 = vsel %vm1822_vm7, %v1807_v13, 6  ;;  %v1831_v62 = vsel %vm1830_vm9, %v1815_v9, 6 }
 0x1c0   :  { %3562 = vmatpush.bf16.msra.mxu3 %v3556_v26  ;;  %3560 = vmatpush.bf16.msra.mxu1 %v3556_v26  ;;  %v2120_v19 = vperm.slane %v4035_v54, 0  ;;  %v4109_v26 = vsel %vm536_vm6, 1.0, %v5317_v27  ;;  %vm539_vm15 = vcmp.eq.s32.totalorder %v3656_v45, %v3841_v16  ;;  %vm1283_vm0 = vcmp.eq.s32.totalorder %v3744_v33, %v3841_v16 }
 0x1c1   :  { %1999 = vperm.xlu2 %3573, %v1994_v42   ;;  %2230 = vperm.xlu1 %3572, %v2225_v7   ;;  %v2127_v42 = vperm.slane %v4035_v54, 1  ;;  %vm586_vm1 = vcmp.eq.s32.totalorder %v3754_v50, %v3841_v16  ;;  %vm1282_vm2 = vcmp.eq.s32.totalorder %v3764_v49, %v3841_v16  ;;  %v3387_v38 = vsel %vm1279_vm10, 1.0, %v5317_v27 }
 0x1c2   :  { %2223 = vperm.xlu0 %3571, %v2218_v11   ;;  %v3380_v11 = vsel %vm583_vm5, 1.0, %v5317_v27  ;;  %vm1281_vm3 = vcmp.eq.s32.totalorder %v3766_v32, %v3841_v16  ;;  %v4131_v13 = vadd.s32 32, %v1823_v4  ;;  %v4133_v33 = vadd.s32 32, %v1831_v62 }
 0x1c3   :  { %v4086_v3 = vpop.permute.xlu2 %1866  ;;  %v1236_v31 = vpop.permute.xlu1 %1235  ;;  %3091 = vmatpush.bf16.msra.mxu0 %v3555_v24  ;;  %3564 = vmatpush.bf16.msra.mxu2 %v3555_v24  ;;  %vm538_vm4 = vcmp.eq.s32.totalorder %v3658_v46, %v3841_v16  ;;  %v3382_v9 = vsel %vm585_vm14, 1.0, %v5317_v27  ;;  %vm588_vm8 = vcmp.eq.s32.totalorder %v3732_v1, %v3841_v16  ;;  %v1728_v43 = vpack.c.bf16 %v4084_v56, %v4084_v56 }
 0x1c4   :  { %vm1336_vm11 = vcmp.eq.s32.totalorder %v1236_v31, %v3841_v16  ;;  %v1229_v2 = vpop.permute.xlu0 %1228  ;;  %3565 = vmatpush.bf16.msra.mxu3 %v3555_v24  ;;  %3563 = vmatpush.bf16.msra.mxu1 %v3555_v24  ;;  %v3391_v14 = vsel %vm1283_vm0, 1.0, %v5317_v27  ;;  %vm1286_vm5 = vcmp.eq.s32.totalorder %v3750_v17, %v3841_v16  ;;  %v3383_v24 = vsel %vm586_vm1, 1.0, %v5317_v27 }
 0x1c5   :  { %v3444_v7 = vsel %vm1336_vm11, 1.0, %v5317_v27  ;;  %vm1335_vm12 = vcmp.eq.s32.totalorder %v1229_v2, %v3841_v16  ;;  %v3390_v35 = vsel %vm1282_vm2, 1.0, %v5317_v27  ;;  %v1663_v56 = vadd.f32 %v3387_v38, %v4049_v61 }
 0x1c6   :  { %v4100_v0 = vadd.f32 %v3444_v7, %v3380_v11  ;;  %v3443_v53 = vsel %vm1335_vm12, 1.0, %v5317_v27  ;;  %v3389_v11 = vsel %vm1281_vm3, 1.0, %v5317_v27  ;;  %vm1291_vm6 = vcmp.eq.s32.totalorder %v3782_v41, %v3841_v16 }
 0x1c7   :  { %v4115_v5 = vadd.f32 %v3443_v53, %v3379_v30  ;;  %v2008_v49 = vperm.slane %v4131_v13, 0  ;;  %v1666_v61 = vadd.f32 %v3390_v35, %v4055_v40  ;;  %vm589_vm10 = vcmp.eq.s32.totalorder %v3760_v51, %v3841_v16 }
 0x1c8   :  { %v1665_v53 = vadd.f32 %v3389_v11, %v4043_v36  ;;  %v4188_v40 = vsel %vm539_vm15, 1.0, %v5317_v27  ;;  %v3335_v62 = vsel %vm538_vm4, 1.0, %v5317_v27  ;;  %vm1284_vm11 = vcmp.eq.s32.totalorder %v3772_v59, %v3841_v16 }
 0x1c9   :  { %2132 = vperm.xlu2 %3573, %v2127_v42   ;;  %2125 = vperm.xlu1 %3572, %v2120_v19   ;;  %v2239_v42 = vperm.slane %v4133_v33, 1  ;;  %v2232_v19 = vperm.slane %v4133_v33, 0  ;;  %v3399_v39 = vsel %vm1291_vm6, 1.0, %v5317_v27  ;;  %v3385_v45 = vsel %vm588_vm8, 1.0, %v5317_v27 }
 0x1ca   :  { %2006 = vperm.xlu0 %3571, %v2001_v21   ;;  %v3332_v21 = vsel %vm535_vm13, 1.0, %v5317_v27  ;;  %v4204_v51 = vunpack.c.l.bf16 %v1728_v43  ;;  %v4207_v36 = vadd.f32 %v3391_v14, %v3943_v58  ;;  %v3394_v46 = vsel %vm1286_vm5, 1.0, %v5317_v27 }
 0x1cb   :  { %v4156_v30 = vpop.permute.xlu2 %1887  ;;  %v1257_v31 = vpop.permute.xlu1 %1256  ;;  %vm1289_vm12 = vcmp.eq.s32.totalorder %v3756_v18, %v3841_v16  ;;  %v1727_v59 = vpack.c.bf16 %v1663_v56, %v1663_v56  ;;  %v3386_v41 = vsel %vm589_vm10, 1.0, %v5317_v27  ;;  %v1730_v1 = vpack.c.bf16 %v1666_v61, %v1666_v61 }
 0x1cc   :  { %vm1339_vm7 = vcmp.eq.s32.totalorder %v1257_v31, %v3841_v16  ;;  %v1250_v50 = vpop.permute.xlu0 %1249  ;;  %v1729_v38 = vpack.c.bf16 %v1665_v53, %v1665_v53  ;;  %vm1285_vm13 = vcmp.eq.s32.totalorder %v3770_v48, %v3841_v16  ;;  %v3392_v58 = vsel %vm1284_vm11, 1.0, %v5317_v27 }
 0x1cd   :  { %v3447_v2 = vsel %vm1339_vm7, 1.0, %v5317_v27  ;;  %vm1338_vm9 = vcmp.eq.s32.totalorder %v1250_v50, %v3841_v16  ;;  %vm1288_vm14 = vcmp.eq.s32.totalorder %v3776_v55, %v3841_v16  ;;  %vm2291_vm15 = vcmp.eq.s32.totalorder %v4086_v3, %v3841_v16 }
 0x1ce   :  { %v4171_v7 = vadd.f32 %v3447_v2, %v3383_v24  ;;  %v3446_v32 = vsel %vm1338_vm9, 1.0, %v5317_v27  ;;  %v2141_v24 = vperm.slane %v4035_v54, 3  ;;  %vm2288_vm1 = vcmp.eq.s32.totalorder %v4000_v12, %v3841_v16 }
 0x1cf   :  { %v4182_v4 = vadd.f32 %v3446_v32, %v3382_v9  ;;  %v1675_v9 = vadd.f32 %v3399_v39, %v3335_v62  ;;  %v2134_v31 = vperm.slane %v4035_v54, 2  ;;  %v1668_v56 = vadd.f32 %v3392_v58, %v3946_v60 }
 0x1d0   :  { %v2015_v50 = vperm.slane %v4131_v13, 1  ;;  %v3393_v2 = vsel %vm1285_vm13, 1.0, %v5317_v27  ;;  %v2547_v61 = vunpack.c.l.bf16 %v1730_v1  ;;  %v3396_v60 = vsel %vm1288_vm14, 1.0, %v5317_v27 }
 0x1d1   :  { %2013 = vperm.xlu2 %3573, %v2008_v49   ;;  %2244 = vperm.xlu1 %3572, %v2239_v42   ;;  %v1739_v12 = vpack.c.bf16 %v1675_v9, %v1675_v9  ;;  %v3454_v49 = vsel %vm2291_vm15, 1.0, %v5317_v27  ;;  %vm1287_vm3 = vcmp.eq.s32.totalorder %v3778_v28, %v3841_v16  ;;  %v3451_v32 = vsel %vm2288_vm1, 1.0, %v5317_v27 }
 0x1d2   :  { %2237 = vperm.xlu0 %3571, %v2232_v19   ;;  %v1731_v48 = vpack.c.bf16 %v4207_v36, %v4207_v36  ;;  %v4254_v19 = vadd.f32 %v3394_v46, %v4067_v15  ;;  %v3397_v53 = vsel %vm1289_vm12, 1.0, %v5317_v27  ;;  %v2544_v62 = vunpack.c.l.bf16 %v1727_v59 }
 0x1d3   :  { %v4219_v43 = vpop.permute.xlu2 %1908  ;;  %v1278_v17 = vpop.permute.xlu1 %1277  ;;  %v2546_v55 = vunpack.c.l.bf16 %v1729_v38  ;;  %v4261_v39 = vadd.f32 %v3393_v2, %v4073_v23  ;;  %v1732_v28 = vpack.c.bf16 %v1668_v56, %v1668_v56  ;;  %v3395_v15 = vsel %vm1287_vm3, 1.0, %v5317_v27 }
 0x1d4   :  { %vm1342_vm0 = vcmp.eq.s32.totalorder %v1278_v17, %v3841_v16  ;;  %v1271_v14 = vpop.permute.xlu0 %1270  ;;  %v2556_v36 = vunpack.c.l.bf16 %v1739_v12  ;;  %v2672_v46 = vadd.f32 %v3451_v32, %v2544_v62  ;;  %v2022_v59 = vperm.slane %v4131_v13, 2 }
 0x1d5   :  { %v3450_v35 = vsel %vm1342_vm0, 1.0, %v5317_v27  ;;  %vm1341_vm2 = vcmp.eq.s32.totalorder %v1271_v14, %v3841_v16  ;;  %v2253_v23 = vperm.slane %v4133_v33, 3  ;;  %vm559_vm5 = vcmp.eq.s32.totalorder %v3700_v57, %v3841_v16 }
 0x1d6   :  { %v4233_v11 = vadd.f32 %v3450_v35, %v3386_v41  ;;  %v3449_v3 = vsel %vm1341_vm2, 1.0, %v5317_v27  ;;  %v4263_v41 = vadd.f32 %v3396_v60, %v3332_v21  ;;  %v2246_v9 = vperm.slane %v4133_v33, 2 }
 0x1d7   :  { %v4242_v42 = vadd.f32 %v3449_v3, %v3385_v45  ;;  %v2675_v45 = vadd.f32 %v3454_v49, %v2547_v61  ;;  %vm1290_vm7 = vcmp.eq.s32.totalorder %v3784_v25, %v3841_v16  ;;  %v2736_v56 = vpack.c.bf16 %v2672_v46, %v2672_v46 }
 0x1d8   :  { %v4285_v2 = vadd.f32 %v3397_v53, %v4109_v26  ;;  %vm1292_vm9 = vcmp.eq.s32.totalorder %v3762_v6, %v3841_v16  ;;  %v1733_v49 = vpack.c.bf16 %v4261_v39, %v4261_v39  ;;  %v2549_v61 = vunpack.c.l.bf16 %v1732_v28  ;;  %v5327_v39 = vld [vmem:[#allocation6_spill] sm:$0xff] }
 0x1d9   :  { %2146 = vperm.xlu2 %3573, %v2141_v24   ;;  %2139 = vperm.xlu1 %3572, %v2134_v31   ;;  %v2739_v17 = vpack.c.bf16 %v2675_v45, %v2675_v45  ;;  %v2548_v31 = vunpack.c.l.bf16 %v1731_v48  ;;  %v1671_v60 = vadd.f32 %v3395_v15, %v3973_v34  ;;  %v3398_v32 = vsel %vm1290_vm7, 1.0, %v5317_v27  ;;  %v5328_v15 = vld [vmem:[#allocation10_spill] sm:$0xff] }
 0x1da   :  { %2020 = vperm.xlu0 %3571, %v2015_v50   ;;  %v1734_v50 = vpack.c.bf16 %v4254_v19, %v4254_v19  ;;  %v2869_v19 = vunpack.c.l.b16 %v2736_v56  ;;  %vm2980_vm10 = vcmask 318464   ;;  %v2155_v34 = vperm.slane %v4035_v54, 5 }
 0x1db   :  { %v1930_v1 = vpop.permute.xlu2 %1929  ;;  %v1860_v58 = vpop.permute.xlu1 %1859  ;;  %v4295_v26 = vunpack.c.l.b16 %v2739_v17  ;;  %vm543_vm11 = vcmp.eq.s32.totalorder %v5327_v39, %v3841_v16  ;;  %vm2297_vm12 = vcmp.eq.s32.totalorder %v4219_v43, %v3841_v16  ;;  %v2148_v45 = vperm.slane %v4035_v54, 4 }
 0x1dc   :  { %vm2300_vm4 = vcmp.eq.s32.totalorder %v1930_v1, %v3841_v16  ;;  %vm2290_vm8 = vcmp.eq.s32.totalorder %v1860_v58, %v3841_v16  ;;  %v1853_v18 = vpop.permute.xlu0 %1852  ;;  %vm542_vm14 = vcmp.eq.s32.totalorder %v5328_v15, %v3841_v16  ;;  %vm2294_vm0 = vcmp.eq.s32.totalorder %v4156_v30, %v3841_v16 }
 0x1dd   :  { %v3463_v21 = vsel %vm2300_vm4, 1.0, %v5317_v27  ;;  %v3453_v38 = vsel %vm2290_vm8, 1.0, %v5317_v27  ;;  %vm2289_vm6 = vcmp.eq.s32.totalorder %v1853_v18, %v3841_v16  ;;  %v3400_v58 = vsel %vm1292_vm9, 1.0, %v5317_v27 }
 0x1de   :  { %v4276_v14 = vadd.f32 %v3463_v21, %v2556_v36  ;;  %v2674_v24 = vadd.f32 %v3453_v38, %v2546_v55  ;;  %v3452_v35 = vsel %vm2289_vm6, 1.0, %v5317_v27  ;;  %v5329_v36 = vld [vmem:[#allocation15_spill] sm:$0xff]  ;;  %v1735_v21 = vpack.c.bf16 %v1671_v60, %v1671_v60 }
 0x1df   :  { %v2673_v3 = vadd.f32 %v3452_v35, %v4204_v51  ;;  %v1736_v51 = vpack.c.bf16 %v4263_v41, %v4263_v41  ;;  %vm558_vm15 = vcmp.eq.s32.totalorder %v5329_v36, %v3841_v16  ;;  %v1674_v38 = vadd.f32 %v3398_v32, %v4023_v8  ;;  %v5330_v32 = vld [vmem:[#allocation58_spill] sm:$0xff] }
 0x1e0   :  { %v2738_v12 = vpack.c.bf16 %v2674_v24, %v2674_v24  ;;  %v3460_v30 = vsel %vm2297_vm12, 1.0, %v5317_v27  ;;  %v3356_v6 = vsel %vm559_vm5, 1.0, %v5317_v27  ;;  %v3457_v24 = vsel %vm2294_vm0, 1.0, %v5317_v27 }
 0x1e1   :  { %v2737_v25 = vpack.c.bf16 %v2673_v3, %v2673_v3  ;;  %2027 = vperm.xlu2 %3573, %v2022_v59   ;;  %2258 = vperm.xlu1 %3572, %v2253_v23   ;;  %v2029_v23 = vperm.slane %v4131_v13, 3  ;;  %v2553_v17 = vunpack.c.l.bf16 %v1736_v51  ;;  %v2551_v56 = vunpack.c.l.bf16 %v1734_v50 }
 0x1e2   :  { %v4297_v48 = vunpack.c.l.b16 %v2738_v12  ;;  %2251 = vperm.xlu0 %3571, %v2246_v9   ;;  %v2550_v3 = vunpack.c.l.bf16 %v1733_v49  ;;  %vm1312_vm2 = vcmp.eq.s32.totalorder %v3833_v44, %v3841_v16  ;;  %v1737_v43 = vpack.c.bf16 %v4285_v2, %v4285_v2 }
 0x1e3   :  { %v2870_v53 = vunpack.c.l.b16 %v2737_v25  ;;  %v4299_v62 = vpop.permute.xlu2 %2076  ;;  %v1881_v55 = vpop.permute.xlu1 %1880  ;;  %v2681_v57 = vadd.f32 %v3460_v30, %v2553_v17  ;;  %v1738_v60 = vpack.c.bf16 %v1674_v38, %v1674_v38  ;;  %v3420_v51 = vsel %vm1312_vm2, 1.0, %v5317_v27  ;;  %v5331_v30 = vld [vmem:[#allocation18_spill] sm:$0xff]  ;;  %v5332_v17 = vld [vmem:[#allocation35_spill] sm:$0xff] }
 0x1e4   :  { %vm2293_vm13 = vcmp.eq.s32.totalorder %v1881_v55, %v3841_v16  ;;  %v1874_v28 = vpop.permute.xlu0 %1873  ;;  %v2934_v41 = vpack.c.b16 %v4295_v26, %v4297_v48  ;;  %v2678_v50 = vadd.f32 %v3457_v24, %v2550_v3  ;;  %vm1311_vm3 = vcmp.eq.s32.totalorder %v5330_v32, %v3841_v16 }
 0x1e5   :  { %v3456_v46 = vsel %vm2293_vm13, 1.0, %v5317_v27  ;;  %vm2292_vm1 = vcmp.eq.s32.totalorder %v1874_v28, %v3841_v16  ;;  %v2933_v1 = vpack.c.b16 %v2870_v53, %v2869_v19  ;;  %v2036_v2 = vperm.slane %v4131_v13, 4 }
 0x1e6   :  { %v2677_v18 = vadd.f32 %v3456_v46, %v2549_v61  ;;  %v3455_v59 = vsel %vm2292_vm1, 1.0, %v5317_v27  ;;  %v2552_v61 = vunpack.c.l.bf16 %v1735_v21  ;;  %v2267_v53 = vperm.slane %v4133_v33, 5 }
 0x1e7   :  { %v2676_v9 = vadd.f32 %v3455_v59, %v2548_v31  ;;  %3523 = vmatmul.msk.bf16.vlgmr.msra.gmra.mxu0 %vm2980_vm10, %v2933_v1  ;;  %v4340_v31 = vadd.f32 %v3400_v58, %v4188_v40  ;;  %v2260_v46 = vperm.slane %v4133_v33, 4  ;;  %v4364_v1 = vsel %vm543_vm11, 1.0, %v5317_v27 }
 0x1e8   :  { %v2741_v35 = vpack.c.bf16 %v2677_v18, %v2677_v18  ;;  %v1696_v58 = vadd.f32 %v3420_v51, %v3356_v6  ;;  %v2742_v18 = vpack.c.bf16 %v2678_v50, %v2678_v50  ;;  %v3355_v21 = vsel %vm558_vm15, 1.0, %v5317_v27 }
 0x1e9   :  { %v2740_v8 = vpack.c.bf16 %v2676_v9, %v2676_v9  ;;  %2160 = vperm.xlu2 %3573, %v2155_v34   ;;  %2153 = vperm.xlu1 %3572, %v2148_v45   ;;  %v2745_v34 = vpack.c.bf16 %v2681_v57, %v2681_v57  ;;  %v3419_v39 = vsel %vm1311_vm3, 1.0, %v5317_v27  ;;  %vm561_vm5 = vcmp.eq.s32.totalorder %v5331_v30, %v3841_v16 }
 0x1ea   :  { %v4342_v12 = vunpack.c.l.b16 %v2741_v35  ;;  %2034 = vperm.xlu0 %3571, %v2029_v23   ;;  %v3339_v23 = vsel %vm542_vm14, 1.0, %v5317_v27  ;;  %v2554_v9 = vunpack.c.l.bf16 %v1737_v43  ;;  %v1740_v6 = vpack.c.bf16 %v4340_v31, %v4340_v31 }
 0x1eb   :  { %v4344_v49 = vunpack.c.l.b16 %v2740_v8  ;;  %v4346_v25 = vpop.permute.xlu2 %1957  ;;  %v1902_v44 = vpop.permute.xlu1 %1901  ;;  %vm1295_vm6 = vcmp.eq.s32.totalorder %v5332_v17, %v3841_v16  ;;  %v2555_v36 = vunpack.c.l.bf16 %v1738_v60  ;;  %v4384_v24 = vunpack.c.l.b16 %v2745_v34 }
 0x1ec   :  { %vm2296_vm4 = vcmp.eq.s32.totalorder %v1902_v44, %v3841_v16  ;;  %v1895_v40 = vpop.permute.xlu0 %1894  ;;  %v1695_v3 = vadd.f32 %v3419_v39, %v3355_v21  ;;  %v4388_v8 = vunpack.c.l.b16 %v2742_v18  ;;  %vm2321_vm7 = vcmp.eq.s32.totalorder %v4299_v62, %v3841_v16  ;;  %v5335_v18 = vld [vmem:[#allocation28_spill] sm:$0xff] }
 0x1ed   :  { %v3459_v19 = vsel %vm2296_vm4, 1.0, %v5317_v27  ;;  %vm2295_vm8 = vcmp.eq.s32.totalorder %v1895_v40, %v3841_v16  ;;  %v2935_v55 = vpack.c.b16 %v4342_v12, %v4344_v49  ;;  %v2169_v60 = vperm.slane %v4035_v54, 7 }
 0x1ee   :  { %v2680_v28 = vadd.f32 %v3459_v19, %v2552_v61  ;;  %v3458_v45 = vsel %vm2295_vm8, 1.0, %v5317_v27  ;;  %v2162_v51 = vperm.slane %v4035_v54, 6  ;;  %vm1314_vm12 = vcmp.eq.s32.totalorder %v3852_v10, %v3841_v16  ;;  %v5333_v10 = vld [vmem:[#allocation43_spill] sm:$0xff] }
 0x1ef   :  { %v2679_v59 = vadd.f32 %v3458_v45, %v2551_v56  ;;  %v1760_v56 = vpack.c.bf16 %v1696_v58, %v1696_v58  ;;  %v3403_v19 = vsel %vm1295_vm6, 1.0, %v5317_v27  ;;  %v3484_v34 = vsel %vm2321_vm7, 1.0, %v5317_v27 }
 0x1f0   :  { %v2744_v38 = vpack.c.bf16 %v2680_v28, %v2680_v28  ;;  %vm1296_vm13 = vcmp.eq.s32.totalorder %v5333_v10, %v3841_v16  ;;  %v5334_v28 = vld [vmem:[#allocation47_spill] sm:$0xff]  ;;  %v3358_v58 = vsel %vm561_vm5, 1.0, %v5317_v27  ;;  %vm560_vm15 = vcmp.eq.s32.totalorder %v5335_v18, %v3841_v16  ;;  %v5338_v10 = vld [vmem:[#allocation29_spill] sm:$0xff] }
 0x1f1   :  { %v2743_v15 = vpack.c.bf16 %v2679_v59, %v2679_v59  ;;  %2041 = vperm.xlu2 %3573, %v2036_v2   ;;  %2272 = vperm.xlu1 %3572, %v2267_v53   ;;  %v2043_v2 = vperm.slane %v4131_v13, 5  ;;  %v1759_v53 = vpack.c.bf16 %v1695_v3, %v1695_v3  ;;  %vm1313_vm14 = vcmp.eq.s32.totalorder %v5334_v28, %v3841_v16  ;;  %v5336_v3 = vld [vmem:[#allocation50_spill] sm:$0xff] }
 0x1f2   :  { %v4386_v35 = vunpack.c.l.b16 %v2744_v38  ;;  %2265 = vperm.xlu0 %3571, %v2260_v46   ;;  %v2577_v45 = vunpack.c.l.bf16 %v1760_v56  ;;  %v3422_v26 = vsel %vm1314_vm12, 1.0, %v5317_v27  ;;  %v4429_v59 = vadd.f32 %v3403_v19, %v3339_v23 }
 0x1f3   :  { %v4390_v43 = vunpack.c.l.b16 %v2743_v15  ;;  %v4392_v57 = vpop.permute.xlu2 %2090  ;;  %v1923_v31 = vpop.permute.xlu1 %1922  ;;  %v3404_v38 = vsel %vm1296_vm13, 1.0, %v5317_v27  ;;  %v3421_v30 = vsel %vm1313_vm14, 1.0, %v5317_v27  ;;  %v1698_v56 = vadd.f32 %v3422_v26, %v3358_v58 }
 0x1f4   :  { %vm2299_vm9 = vcmp.eq.s32.totalorder %v1923_v31, %v3841_v16  ;;  %v1916_v61 = vpop.permute.xlu0 %1915  ;;  %v2937_v50 = vpack.c.b16 %v4384_v24, %v4386_v35  ;;  %v2705_v21 = vadd.f32 %v3484_v34, %v2577_v45  ;;  %v1938_v31 = vperm.slane %v5336_v3, 6  ;;  %v5358_v24 = vld [vmem:[#allocation31_spill] sm:$0xff]  ;;  %v5359_v35 = vld [vmem:[#allocation49_spill] sm:$0xff] }
 0x1f5   :  { %v3462_v44 = vsel %vm2299_vm9, 1.0, %v5317_v27  ;;  %vm2298_vm11 = vcmp.eq.s32.totalorder %v1916_v61, %v3841_v16  ;;  %v2936_v32 = vpack.c.b16 %v4390_v43, %v4388_v8  ;;  %v3357_v19 = vsel %vm560_vm15, 1.0, %v5317_v27  ;;  %v5350_v8 = vld [vmem:[#allocation45_spill] sm:$0xff] }
 0x1f6   :  { %v2683_v62 = vadd.f32 %v3462_v44, %v2555_v36  ;;  %v3461_v40 = vsel %vm2298_vm11, 1.0, %v5317_v27  ;;  %v2748_v34 = vpack.c.bf16 %v4276_v14, %v4276_v14  ;;  %vm563_vm3 = vcmp.eq.s32.totalorder %v5338_v10, %v3841_v16 }
 0x1f7   :  { %v2682_v54 = vadd.f32 %v3461_v40, %v2554_v9  ;;  %3524 = vmatmul.msk.bf16.gmra.mxu0 %vm2980_vm10, %v2934_v41  ;;  %v2557_v41 = vunpack.c.l.bf16 %v1740_v6  ;;  %v2576_v9 = vunpack.c.l.bf16 %v1759_v53  ;;  %v1776_v6 = vpack.c.bf16 %v3872_v52, %v3872_v52 }
 0x1f8   :  { %v2747_v46 = vpack.c.bf16 %v2683_v62, %v2683_v62  ;;  %v2769_v62 = vpack.c.bf16 %v2705_v21, %v2705_v21  ;;  %v1775_v53 = vpack.c.bf16 %v3926_v63, %v3926_v63  ;;  %v1743_v28 = vpack.c.bf16 %v4429_v59, %v4429_v59 }
 0x1f9   :  { %v2746_v48 = vpack.c.bf16 %v2682_v54, %v2682_v54  ;;  %2174 = vperm.xlu2 %3573, %v2169_v60   ;;  %2167 = vperm.xlu1 %3572, %v2162_v51   ;;  %v2281_v60 = vperm.slane %v4133_v33, 7  ;;  %v5337_v51 = vld [vmem:[#allocation14_spill] sm:$0xff]  ;;  %v1697_v58 = vadd.f32 %v3421_v30, %v3357_v19  ;;  %v1762_v63 = vpack.c.bf16 %v1698_v56, %v1698_v56  ;;  %v5340_v56 = vld [vmem:[#allocation13_spill] sm:$0xff] }
 0x1fa   :  { %v4431_v39 = vunpack.c.l.b16 %v2747_v46  ;;  %2048 = vperm.xlu0 %3571, %v2043_v2   ;;  %vm544_vm2 = vcmp.eq.s32.totalorder %v5337_v51, %v3841_v16  ;;  %v2274_v2 = vperm.slane %v4133_v33, 6  ;;  %v5339_v33 = vld [vmem:[#allocation36_spill] sm:$0xff]  ;;  %v1680_v46 = vadd.f32 %v3404_v38, %v4364_v1 }
 0x1fb   :  { %v4435_v15 = vunpack.c.l.b16 %v2746_v48  ;;  %v4437_v17 = vpop.permute.xlu2 %1971  ;;  %v2070_v36 = vpop.permute.xlu1 %2069  ;;  %vm1298_vm4 = vcmp.eq.s32.totalorder %v5339_v33, %v3841_v16  ;;  %v2593_v26 = vunpack.c.l.bf16 %v1776_v6  ;;  %v2902_v14 = vunpack.c.l.b16 %v2769_v62 }
 0x1fc   :  { %vm2320_vm0 = vcmp.eq.s32.totalorder %v2070_v36, %v3841_v16  ;;  %v1937_v23 = vpop.permute.xlu0 %1936  ;;  %v4467_v21 = vunpack.c.l.b16 %v2748_v34  ;;  %vm2323_vm8 = vcmp.eq.s32.totalorder %v4392_v57, %v3841_v16  ;;  %v2050_v30 = vperm.slane %v4131_v13, 6  ;;  %v5343_v34 = vld [vmem:[#allocation51_spill] sm:$0xff] }
 0x1fd   :  { %v3483_v61 = vsel %vm2320_vm0, 1.0, %v5317_v27  ;;  %vm2301_vm1 = vcmp.eq.s32.totalorder %v1937_v23, %v3841_v16  ;;  %v2938_v44 = vpack.c.b16 %v4431_v39, %v4435_v15  ;;  %v2057_v23 = vperm.slane %v4131_v13, 7 }
 0x1fe   :  { %v2704_v40 = vadd.f32 %v3483_v61, %v2576_v9  ;;  %v3464_v52 = vsel %vm2301_vm1, 1.0, %v5317_v27  ;;  %vm545_vm6 = vcmp.eq.s32.totalorder %v5340_v56, %v3841_v16  ;;  %vm2304_vm7 = vcmp.eq.s32.totalorder %v4346_v25, %v3841_v16  ;;  %v5341_v61 = vld [vmem:[#allocation7_spill] sm:$0xff] }
 0x1ff   :  { %v2685_v54 = vadd.f32 %v3464_v52, %v2557_v41  ;;  %v2592_v41 = vunpack.c.l.bf16 %v1775_v53  ;;  %vm546_vm11 = vcmp.eq.s32.totalorder %v5341_v61, %v3841_v16  ;;  %v1744_v52 = vpack.c.bf16 %v1680_v46, %v1680_v46 }
 0x200   :  { %v2768_v45 = vpack.c.bf16 %v2704_v40, %v2704_v40  ;;  %v1945_v40 = vperm.slane %v5336_v3, 7  ;;  %v3486_v19 = vsel %vm2323_vm8, 1.0, %v5317_v27  ;;  %vm1316_vm13 = vcmp.eq.s32.totalorder %v5343_v34, %v3841_v16 }
 0x201   :  { %v2749_v18 = vpack.c.bf16 %v2685_v54, %v2685_v54  ;;  %1943 = vperm.xlu2 %3573, %v1938_v31   ;;  %2286 = vperm.xlu1 %3572, %v2281_v60   ;;  %v5342_v60 = vld [vmem:[#allocation42_spill] sm:$0xff]  ;;  %v2579_v54 = vunpack.c.l.bf16 %v1762_v63  ;;  %v3467_v3 = vsel %vm2304_vm7, 1.0, %v5317_v27  ;;  %v3341_v57 = vsel %vm544_vm2, 1.0, %v5317_v27 }
 0x202   :  { %v2901_v48 = vunpack.c.l.b16 %v2768_v45  ;;  %2279 = vperm.xlu0 %3571, %v2274_v2   ;;  %vm1297_vm12 = vcmp.eq.s32.totalorder %v5342_v60, %v3841_v16  ;;  %v1761_v2 = vpack.c.bf16 %v1697_v58, %v1697_v58  ;;  %v2560_v46 = vunpack.c.l.bf16 %v1743_v28 }
 0x203   :  { %v4469_v9 = vunpack.c.l.b16 %v2749_v18  ;;  %v4471_v59 = vpop.permute.xlu2 %2104  ;;  %v2189_v36 = vpop.permute.xlu1 %2188  ;;  %v3405_v12 = vsel %vm1297_vm12, 1.0, %v5317_v27  ;;  %v3360_v25 = vsel %vm563_vm3, 1.0, %v5317_v27  ;;  %v2707_v58 = vadd.f32 %v3486_v19, %v2579_v54 }
 0x204   :  { %vm2337_vm5 = vcmp.eq.s32.totalorder %v2189_v36, %v3841_v16  ;;  %v2182_v1 = vpop.permute.xlu0 %2181  ;;  %v2949_v38 = vpack.c.b16 %v2902_v14, %v2901_v48  ;;  %v3406_v28 = vsel %vm1298_vm4, 1.0, %v5317_v27  ;;  %v3424_v18 = vsel %vm1316_vm13, 1.0, %v5317_v27 }
 0x205   :  { %v3500_v6 = vsel %vm2337_vm5, 1.0, %v5317_v27  ;;  %vm2336_vm9 = vcmp.eq.s32.totalorder %v2182_v1, %v3841_v16  ;;  %v2939_v31 = vpack.c.b16 %v4469_v9, %v4467_v21  ;;  %v2688_v63 = vadd.f32 %v3467_v3, %v2560_v46  ;;  %v5345_v1 = vld [vmem:[#allocation59_spill] sm:$0xff]  ;;  %v5373_v21 = vld [vmem:[#allocation52_spill] sm:$0xff] }
 0x206   :  { %v2721_v13 = vadd.f32 %v3500_v6, %v2593_v26  ;;  %v3499_v62 = vsel %vm2336_vm9, 1.0, %v5317_v27  ;;  %3539 = vmatmul.msk.bf16.vlgmr.msra.gmra.mxu2 %vm2980_vm10, %v2949_v38  ;;  %v1681_v48 = vadd.f32 %v3405_v12, %v3341_v57  ;;  %v2578_v36 = vunpack.c.l.bf16 %v1761_v2 }
 0x207   :  { %v2720_v53 = vadd.f32 %v3499_v62, %v2592_v41  ;;  %3525 = vmatmul.msk.bf16.gmra.mxu0 %vm2980_vm10, %v2935_v55  ;;  %v5344_v55 = vld [vmem:[#allocation30_spill] sm:$0xff]  ;;  %v2561_v41 = vunpack.c.l.bf16 %v1744_v52  ;;  %vm1315_vm0 = vcmp.eq.s32.totalorder %v5345_v1, %v3841_v16  ;;  %v2771_v6 = vpack.c.bf16 %v2707_v58, %v2707_v58 }
 0x208   :  { %v2785_v45 = vpack.c.bf16 %v2721_v13, %v2721_v13  ;;  %vm562_vm14 = vcmp.eq.s32.totalorder %v5344_v55, %v3841_v16  ;;  %v1778_v62 = vpack.c.bf16 %v3966_v22, %v3966_v22  ;;  %v3342_v2 = vsel %vm545_vm6, 1.0, %v5317_v27  ;;  %v5348_v1 = vld [vmem:[#allocation46_spill] sm:$0xff] }
 0x209   :  { %v2784_v49 = vpack.c.bf16 %v2720_v53, %v2720_v53  ;;  %2062 = vperm.xlu2 %3573, %v2057_v23   ;;  %2055 = vperm.xlu1 %3572, %v2050_v30   ;;  %v1700_v30 = vadd.f32 %v3424_v18, %v3360_v25  ;;  %v3423_v19 = vsel %vm1315_vm0, 1.0, %v5317_v27  ;;  %v1777_v53 = vpack.c.bf16 %v3975_v29, %v3975_v29 }
 0x20a   :  { %v2918_v51 = vunpack.c.l.b16 %v2785_v45  ;;  %1950 = vperm.xlu0 %3571, %v1945_v40   ;;  %v2752_v40 = vpack.c.bf16 %v2688_v63, %v2688_v63  ;;  %v3343_v22 = vsel %vm546_vm11, 1.0, %v5317_v27  ;;  %v3359_v54 = vsel %vm562_vm14, 1.0, %v5317_v27  ;;  %v5346_v63 = vld [vmem:[#allocation17_spill] sm:$0xff] }
 0x20b   :  { %v2917_v26 = vunpack.c.l.b16 %v2784_v49  ;;  %v4529_v10 = vpop.permute.xlu2 %1985  ;;  %v2084_v14 = vpop.permute.xlu1 %2083  ;;  %v1682_v3 = vadd.f32 %v3406_v28, %v3342_v2  ;;  %v1745_v56 = vpack.c.bf16 %v1681_v48, %v1681_v48  ;;  %v1764_v57 = vpack.c.bf16 %v1700_v30, %v1700_v30  ;;  %v5347_v48 = vld [vmem:[#allocation32_spill] sm:$0xff] }
 0x20c   :  { %vm2322_vm15 = vcmp.eq.s32.totalorder %v2084_v14, %v3841_v16  ;;  %v1965_v23 = vpop.permute.xlu0 %1964  ;;  %v2904_v46 = vunpack.c.l.b16 %v2771_v6  ;;  %v1699_v49 = vadd.f32 %v3423_v19, %v3359_v54  ;;  %v2595_v25 = vunpack.c.l.bf16 %v1778_v62 }
 0x20d   :  { %v3485_v33 = vsel %vm2322_vm15, 1.0, %v5317_v27  ;;  %vm2305_vm1 = vcmp.eq.s32.totalorder %v1965_v23, %v3841_v16  ;;  %v2957_v38 = vpack.c.b16 %v2918_v51, %v2917_v26  ;;  %v2885_v29 = vunpack.c.l.b16 %v2752_v40 }
 0x20e   :  { %v2706_v60 = vadd.f32 %v3485_v33, %v2578_v36  ;;  %v3468_v13 = vsel %vm2305_vm1, 1.0, %v5317_v27  ;;  %v2594_v61 = vunpack.c.l.bf16 %v1777_v53  ;;  %vm2325_vm2 = vcmp.eq.s32.totalorder %v4471_v59, %v3841_v16  ;;  %v5349_v59 = vld [vmem:[#allocation21_spill] sm:$0xff] }
 0x20f   :  { %v2689_v52 = vadd.f32 %v3468_v13, %v2561_v41  ;;  %3547 = vmatmul.msk.bf16.vlgmr.msra.gmra.mxu3 %vm2980_vm10, %v2957_v38  ;;  %vm547_vm4 = vcmp.eq.s32.totalorder %v5346_v63, %v3841_v16  ;;  %vm2306_vm8 = vcmp.eq.s32.totalorder %v4437_v17, %v3841_v16  ;;  %vm565_vm6 = vcmp.eq.s32.totalorder %v5347_v48, %v3841_v16 }
 0x210   :  { %v2770_v34 = vpack.c.bf16 %v2706_v60, %v2706_v60  ;;  %v1746_v41 = vpack.c.bf16 %v1682_v3, %v1682_v3  ;;  %vm1299_vm7 = vcmp.eq.s32.totalorder %v5348_v1, %v3841_v16  ;;  %v2581_v33 = vunpack.c.l.bf16 %v1764_v57  ;;  %v5354_v1 = vld [vmem:[#allocation37_spill] sm:$0xff] }
 0x211   :  { %v2753_v45 = vpack.c.bf16 %v2689_v52, %v2689_v52  ;;  %v3488_v38 = vsel %vm2325_vm2, 1.0, %v5317_v27  ;;  %v1763_v6 = vpack.c.bf16 %v1699_v49, %v1699_v49  ;;  %vm1318_vm9 = vcmp.eq.s32.totalorder %v3863_v37, %v3841_v16 }
 0x212   :  { %v2903_v12 = vunpack.c.l.b16 %v2770_v34  ;;  %v3469_v60 = vsel %vm2306_vm8, 1.0, %v5317_v27  ;;  %vm564_vm11 = vcmp.eq.s32.totalorder %v5349_v59, %v3841_v16  ;;  %v2562_v62 = vunpack.c.l.bf16 %v1745_v56  ;;  %v5351_v56 = vld [vmem:[#allocation61_spill] sm:$0xff] }
 0x213   :  { %v2886_v58 = vunpack.c.l.b16 %v2753_v45  ;;  %v4555_v51 = vpop.permute.xlu2 %2118  ;;  %v2203_v18 = vpop.permute.xlu1 %2202  ;;  %vm1300_vm12 = vcmp.eq.s32.totalorder %v5350_v8, %v3841_v16  ;;  %v3407_v37 = vsel %vm1299_vm7, 1.0, %v5317_v27  ;;  %v2709_v40 = vadd.f32 %v3488_v38, %v2581_v33 }
 0x214   :  { %vm2339_vm3 = vcmp.eq.s32.totalorder %v2203_v18, %v3841_v16  ;;  %v2196_v55 = vpop.permute.xlu0 %2195  ;;  %v2950_v28 = vpack.c.b16 %v2904_v46, %v2903_v12  ;;  %v2563_v17 = vunpack.c.l.bf16 %v1746_v41  ;;  %v3426_v2 = vsel %vm1318_vm9, 1.0, %v5317_v27 }
 0x215   :  { %v3502_v26 = vsel %vm2339_vm3, 1.0, %v5317_v27  ;;  %vm2338_vm5 = vcmp.eq.s32.totalorder %v2196_v55, %v3841_v16  ;;  %v2941_v14 = vpack.c.b16 %v2886_v58, %v2885_v29  ;;  %v2690_v19 = vadd.f32 %v3469_v60, %v2562_v62  ;;  %v5352_v55 = vld [vmem:[#allocation64_spill] sm:$0xff] }
 0x216   :  { %v2723_v36 = vadd.f32 %v3502_v26, %v2595_v25  ;;  %v3501_v23 = vsel %vm2338_vm5, 1.0, %v5317_v27  ;;  %3540 = vmatmul.msk.bf16.gmra.mxu2 %vm2980_vm10, %v2950_v28  ;;  %v3408_v3 = vsel %vm1300_vm12, 1.0, %v5317_v27  ;;  %v2580_v45 = vunpack.c.l.bf16 %v1763_v6 }
 0x217   :  { %v2722_v30 = vadd.f32 %v3501_v23, %v2594_v61  ;;  %3526 = vmatmul.msk.bf16.gmra.mxu0 %vm2980_vm10, %v2936_v32  ;;  %3531 = vmatmul.msk.bf16.vlgmr.msra.gmra.mxu1 %vm2980_vm10, %v2941_v14  ;;  %v3362_v32 = vsel %vm565_vm6, 1.0, %v5317_v27  ;;  %vm1317_vm13 = vcmp.eq.s32.totalorder %v5351_v56, %v3841_v16  ;;  %v1683_v46 = vadd.f32 %v3407_v37, %v3343_v22  ;;  %v5353_v22 = vld [vmem:[#allocation16_spill] sm:$0xff] }
 0x218   :  { %v2787_v13 = vpack.c.bf16 %v2723_v36, %v2723_v36  ;;  %v1702_v25 = vadd.f32 %v3426_v2, %v3362_v32  ;;  %v2773_v29 = vpack.c.bf16 %v2709_v40, %v2709_v40  ;;  %v3425_v61 = vsel %vm1317_vm13, 1.0, %v5317_v27 }
 0x219   :  { %v2786_v43 = vpack.c.bf16 %v2722_v30, %v2722_v30  ;;  %v1779_v28 = vpack.c.bf16 %v5352_v55, %v5352_v55  ;;  %v2754_v26 = vpack.c.bf16 %v2690_v19, %v2690_v19  ;;  %vm548_vm0 = vcmp.eq.s32.totalorder %v5353_v22, %v3841_v16 }
 0x21a   :  { %v2920_v52 = vunpack.c.l.b16 %v2787_v13  ;;  %v3344_v48 = vsel %vm547_vm4, 1.0, %v5317_v27  ;;  %v1780_v41 = vpack.c.bf16 %v4029_v47, %v4029_v47  ;;  %v3361_v23 = vsel %vm564_vm11, 1.0, %v5317_v27 }
 0x21b   :  { %v2919_v53 = vunpack.c.l.b16 %v2786_v43  ;;  %v4597_v34 = vpop.permute.xlu2 %1999  ;;  %v2098_v54 = vpop.permute.xlu1 %2097  ;;  %vm1301_vm1 = vcmp.eq.s32.totalorder %v5354_v1, %v3841_v16  ;;  %v1684_v33 = vadd.f32 %v3408_v3, %v3344_v48  ;;  %v1747_v30 = vpack.c.bf16 %v1683_v46, %v1683_v46 }
 0x21c   :  { %vm2324_vm14 = vcmp.eq.s32.totalorder %v2098_v54, %v3841_v16  ;;  %v1979_v57 = vpop.permute.xlu0 %1978  ;;  %v1701_v6 = vadd.f32 %v3425_v61, %v3361_v23  ;;  %v2906_v60 = vunpack.c.l.b16 %v2773_v29  ;;  %v1766_v63 = vpack.c.bf16 %v1702_v25, %v1702_v25 }
 0x21d   :  { %v3487_v12 = vsel %vm2324_vm14, 1.0, %v5317_v27  ;;  %vm2307_vm15 = vcmp.eq.s32.totalorder %v1979_v57, %v3841_v16  ;;  %v2958_v49 = vpack.c.b16 %v2920_v52, %v2919_v53  ;;  %v2596_v62 = vunpack.c.l.bf16 %v1779_v28  ;;  %v5355_v52 = vld [vmem:[#allocation8_spill] sm:$0xff] }
 0x21e   :  { %v2708_v58 = vadd.f32 %v3487_v12, %v2580_v45  ;;  %v3470_v18 = vsel %vm2307_vm15, 1.0, %v5317_v27  ;;  %v2887_v8 = vunpack.c.l.b16 %v2754_v26  ;;  %v2597_v37 = vunpack.c.l.bf16 %v1780_v41  ;;  %v5356_v53 = vld [vmem:[#allocation24_spill] sm:$0xff] }
 0x21f   :  { %v2691_v14 = vadd.f32 %v3470_v18, %v2563_v17  ;;  %3548 = vmatmul.msk.bf16.gmra.mxu3 %vm2980_vm10, %v2958_v49  ;;  %vm2327_vm2 = vcmp.eq.s32.totalorder %v4555_v51, %v3841_v16  ;;  %vm549_vm4 = vcmp.eq.s32.totalorder %v5355_v52, %v3841_v16  ;;  %vm2308_vm8 = vcmp.eq.s32.totalorder %v4529_v10, %v3841_v16  ;;  %v5357_v18 = vld [vmem:[#allocation63_spill] sm:$0xff]  ;;  %v5360_v10 = vld [vmem:[#allocation54_spill] sm:$0xff] }
 0x220   :  { %v2772_v36 = vpack.c.bf16 %v2708_v58, %v2708_v58  ;;  %v3345_v19 = vsel %vm548_vm0, 1.0, %v5317_v27  ;;  %vm567_vm6 = vcmp.eq.s32.totalorder %v5356_v53, %v3841_v16  ;;  %v3409_v45 = vsel %vm1301_vm1, 1.0, %v5317_v27  ;;  %v5363_v53 = vld [vmem:[#allocation33_spill] sm:$0xff] }
 0x221   :  { %v2755_v38 = vpack.c.bf16 %v2691_v14, %v2691_v14  ;;  %v1748_v56 = vpack.c.bf16 %v1684_v33, %v1684_v33  ;;  %v3490_v57 = vsel %vm2327_vm2, 1.0, %v5317_v27  ;;  %v2583_v12 = vunpack.c.l.bf16 %v1766_v63 }
 0x222   :  { %v2905_v13 = vunpack.c.l.b16 %v2772_v36  ;;  %v1765_v49 = vpack.c.bf16 %v1701_v6, %v1701_v6  ;;  %v3471_v25 = vsel %vm2308_vm8, 1.0, %v5317_v27  ;;  %v3364_v58 = vsel %vm567_vm6, 1.0, %v5317_v27 }
 0x223   :  { %v2888_v43 = vunpack.c.l.b16 %v2755_v38  ;;  %v4624_v47 = vpop.permute.xlu2 %2132  ;;  %v2217_v32 = vpop.permute.xlu1 %2216  ;;  %v2564_v51 = vunpack.c.l.bf16 %v1747_v30  ;;  %vm1320_vm7 = vcmp.eq.s32.totalorder %v5357_v18, %v3841_v16  ;;  %vm566_vm9 = vcmp.eq.s32.totalorder %v5358_v24, %v3841_v16  ;;  %v5364_v18 = vld [vmem:[#allocation19_spill] sm:$0xff] }
 0x224   :  { %vm2341_vm3 = vcmp.eq.s32.totalorder %v2217_v32, %v3841_v16  ;;  %v2210_v59 = vpop.permute.xlu0 %2209  ;;  %v2951_v40 = vpack.c.b16 %v2906_v60, %v2905_v13  ;;  %vm1302_vm11 = vcmp.eq.s32.totalorder %v5359_v35, %v3841_v16  ;;  %v4667_v28 = vadd.f32 %v3409_v45, %v3345_v19 }
 0x225   :  { %v3504_v17 = vsel %vm2341_vm3, 1.0, %v5317_v27  ;;  %vm2340_vm5 = vcmp.eq.s32.totalorder %v2210_v59, %v3841_v16  ;;  %v2942_v2 = vpack.c.b16 %v2888_v43, %v2887_v8  ;;  %vm1319_vm12 = vcmp.eq.s32.totalorder %v5360_v10, %v3841_v16  ;;  %v5361_v8 = vld [vmem:[#allocation66_spill] sm:$0xff] }
 0x226   :  { %v2725_v54 = vadd.f32 %v3504_v17, %v2597_v37  ;;  %v3503_v3 = vsel %vm2340_vm5, 1.0, %v5317_v27  ;;  %3541 = vmatmul.msk.bf16.gmra.mxu2 %vm2980_vm10, %v2951_v40  ;;  %v2692_v26 = vadd.f32 %v3471_v25, %v2564_v51  ;;  %v2565_v41 = vunpack.c.l.bf16 %v1748_v56  ;;  %v5362_v40 = vld [vmem:[#allocation20_spill] sm:$0xff] }
 0x227   :  { %v2724_v46 = vadd.f32 %v3503_v3, %v2596_v62  ;;  %3527 = vmatmul.msk.bf16.gmra.mxu0 %vm2980_vm10, %v2937_v50  ;;  %3532 = vmatmul.msk.bf16.gmra.mxu1 %vm2980_vm10, %v2942_v2  ;;  %v2711_v50 = vadd.f32 %v3490_v57, %v2583_v12  ;;  %v2582_v36 = vunpack.c.l.bf16 %v1765_v49  ;;  %v3428_v23 = vsel %vm1320_vm7, 1.0, %v5317_v27 }
 0x228   :  { %v2789_v29 = vpack.c.bf16 %v2725_v54, %v2725_v54  ;;  %v3410_v33 = vsel %vm1302_vm11, 1.0, %v5317_v27  ;;  %v3427_v6 = vsel %vm1319_vm12, 1.0, %v5317_v27  ;;  %v1704_v62 = vadd.f32 %v3428_v23, %v3364_v58 }
 0x229   :  { %v2788_v61 = vpack.c.bf16 %v2724_v46, %v2724_v46  ;;  %v2775_v60 = vpack.c.bf16 %v2711_v50, %v2711_v50  ;;  %v1782_v43 = vpack.c.bf16 %v5361_v8, %v5361_v8  ;;  %v2756_v32 = vpack.c.bf16 %v2692_v26, %v2692_v26  ;;  %v5365_v50 = vld [vmem:[#allocation38_spill] sm:$0xff] }
 0x22a   :  { %v2922_v55 = vunpack.c.l.b16 %v2789_v29  ;;  %v3346_v59 = vsel %vm549_vm4, 1.0, %v5317_v27  ;;  %vm550_vm15 = vcmp.eq.s32.totalorder %v5362_v40, %v3841_v16  ;;  %v1781_v17 = vpack.c.bf16 %v4012_v20, %v4012_v20  ;;  %v5369_v40 = vld [vmem:[#allocation62_spill] sm:$0xff] }
 0x22b   :  { %v2921_v14 = vunpack.c.l.b16 %v2788_v61  ;;  %v4671_v22 = vpop.permute.xlu2 %2013  ;;  %v2112_v48 = vpop.permute.xlu1 %2111  ;;  %v3363_v19 = vsel %vm566_vm9, 1.0, %v5317_v27  ;;  %vm569_vm0 = vcmp.eq.s32.totalorder %v5363_v53, %v3841_v16  ;;  %v1749_v54 = vpack.c.bf16 %v4667_v28, %v4667_v28 }
 0x22c   :  { %vm2326_vm13 = vcmp.eq.s32.totalorder %v2112_v48, %v3841_v16  ;;  %v1993_v1 = vpop.permute.xlu0 %1992  ;;  %v1686_v3 = vadd.f32 %v3410_v33, %v3346_v59  ;;  %v1703_v45 = vadd.f32 %v3427_v6, %v3363_v19  ;;  %v2908_v56 = vunpack.c.l.b16 %v2775_v60 }
 0x22d   :  { %v3489_v38 = vsel %vm2326_vm13, 1.0, %v5317_v27  ;;  %vm2309_vm14 = vcmp.eq.s32.totalorder %v1993_v1, %v3841_v16  ;;  %v2959_v30 = vpack.c.b16 %v2922_v55, %v2921_v14  ;;  %v1768_v46 = vpack.c.bf16 %v1704_v62, %v1704_v62  ;;  %v5366_v55 = vld [vmem:[#allocation48_spill] sm:$0xff] }
 0x22e   :  { %v2710_v13 = vadd.f32 %v3489_v38, %v2582_v36  ;;  %v3472_v63 = vsel %vm2309_vm14, 1.0, %v5317_v27  ;;  %v2599_v12 = vunpack.c.l.bf16 %v1782_v43  ;;  %v2889_v20 = vunpack.c.l.b16 %v2756_v32  ;;  %v5367_v36 = vld [vmem:[#allocation57_spill] sm:$0xff] }
 0x22f   :  { %v2693_v37 = vadd.f32 %v3472_v63, %v2565_v41  ;;  %3549 = vmatmul.msk.bf16.gmra.mxu3 %vm2980_vm10, %v2959_v30  ;;  %v2598_v29 = vunpack.c.l.bf16 %v1781_v17  ;;  %vm2329_vm1 = vcmp.eq.s32.totalorder %v4624_v47, %v3841_v16  ;;  %vm551_vm3 = vcmp.eq.s32.totalorder %v5364_v18, %v3841_v16 }
 0x230   :  { %v2774_v2 = vpack.c.bf16 %v2710_v13, %v2710_v13  ;;  %vm2310_vm4 = vcmp.eq.s32.totalorder %v4597_v34, %v3841_v16  ;;  %vm1304_vm5 = vcmp.eq.s32.totalorder %v5365_v50, %v3841_v16  ;;  %vm1303_vm6 = vcmp.eq.s32.totalorder %v5366_v55, %v3841_v16  ;;  %v5368_v34 = vld [vmem:[#allocation34_spill] sm:$0xff] }
 0x231   :  { %v2757_v52 = vpack.c.bf16 %v2693_v37, %v2693_v37  ;;  %v1750_v26 = vpack.c.bf16 %v1686_v3, %v1686_v3  ;;  %v1767_v14 = vpack.c.bf16 %v1703_v45, %v1703_v45  ;;  %v3492_v48 = vsel %vm2329_vm1, 1.0, %v5317_v27 }
 0x232   :  { %v2907_v57 = vunpack.c.l.b16 %v2774_v2  ;;  %vm1322_vm7 = vcmp.eq.s32.totalorder %v5367_v36, %v3841_v16  ;;  %v2585_v23 = vunpack.c.l.bf16 %v1768_v46  ;;  %v3473_v1 = vsel %vm2310_vm4, 1.0, %v5317_v27  ;;  %v5370_v36 = vld [vmem:[#allocation9_spill] sm:$0xff] }
 0x233   :  { %v2890_v49 = vunpack.c.l.b16 %v2757_v52  ;;  %v2231_v25 = vpop.permute.xlu1 %2230  ;;  %v4706_v61 = vpop.permute.xlu2 %2146  ;;  %v3347_v47 = vsel %vm550_vm15, 1.0, %v5317_v27  ;;  %v2566_v39 = vunpack.c.l.bf16 %v1749_v54  ;;  %v3411_v15 = vsel %vm1303_vm6, 1.0, %v5317_v27 }
 0x234   :  { %vm2343_vm2 = vcmp.eq.s32.totalorder %v2231_v25, %v3841_v16  ;;  %v2224_v58 = vpop.permute.xlu0 %2223  ;;  %v2952_v51 = vpack.c.b16 %v2908_v56, %v2907_v57  ;;  %v3366_v38 = vsel %vm569_vm0, 1.0, %v5317_v27  ;;  %vm568_vm9 = vcmp.eq.s32.totalorder %v5368_v34, %v3841_v16 }
 0x235   :  { %v3506_v24 = vsel %vm2343_vm2, 1.0, %v5317_v27  ;;  %vm2342_vm8 = vcmp.eq.s32.totalorder %v2224_v58, %v3841_v16  ;;  %v2943_v35 = vpack.c.b16 %v2890_v49, %v2889_v20  ;;  %v2713_v30 = vadd.f32 %v3492_v48, %v2585_v23 }
 0x236   :  { %v2727_v28 = vadd.f32 %v3506_v24, %v2599_v12  ;;  %v3505_v10 = vsel %vm2342_vm8, 1.0, %v5317_v27  ;;  %3542 = vmatmul.msk.bf16.gmra.mxu2 %vm2980_vm10, %v2952_v51  ;;  %v3412_v60 = vsel %vm1304_vm5, 1.0, %v5317_v27  ;;  %v3430_v13 = vsel %vm1322_vm7, 1.0, %v5317_v27 }
 0x237   :  { %v2726_v41 = vadd.f32 %v3505_v10, %v2598_v29  ;;  %3528 = vmatmul.msk.bf16.gmra.mxu0 %vm2980_vm10, %v2938_v44  ;;  %3533 = vmatmul.msk.bf16.gmra.mxu1 %vm2980_vm10, %v2943_v35  ;;  %v2694_v63 = vadd.f32 %v3473_v1, %v2566_v39  ;;  %v1687_v43 = vadd.f32 %v3411_v15, %v3347_v47  ;;  %v2567_v32 = vunpack.c.l.bf16 %v1750_v26 }
 0x238   :  { %v2791_v33 = vpack.c.bf16 %v2727_v28, %v2727_v28  ;;  %v2584_v37 = vunpack.c.l.bf16 %v1767_v14  ;;  %vm1321_vm12 = vcmp.eq.s32.totalorder %v5369_v40, %v3841_v16  ;;  %v1706_v19 = vadd.f32 %v3430_v13, %v3366_v38  ;;  %v5375_v40 = vld [vmem:[#allocation65_spill] sm:$0xff] }
 0x239   :  { %v2790_v44 = vpack.c.bf16 %v2726_v41, %v2726_v41  ;;  %v2777_v53 = vpack.c.bf16 %v2713_v30, %v2713_v30  ;;  %v1784_v3 = vpack.c.bf16 %v4100_v0, %v4100_v0  ;;  %v2758_v45 = vpack.c.bf16 %v2694_v63, %v2694_v63  ;;  %v5372_v63 = vld [vmem:[#allocation23_spill] sm:$0xff] }
 0x23a   :  { %v2924_v6 = vunpack.c.l.b16 %v2791_v33  ;;  %v3348_v46 = vsel %vm551_vm3, 1.0, %v5317_v27  ;;  %v3429_v12 = vsel %vm1321_vm12, 1.0, %v5317_v27  ;;  %v1783_v20 = vpack.c.bf16 %v4115_v5, %v4115_v5  ;;  %v5371_v33 = vld [vmem:[#allocation53_spill] sm:$0xff] }
 0x23b   :  { %v2923_v62 = vunpack.c.l.b16 %v2790_v44  ;;  %v2126_v8 = vpop.permute.xlu1 %2125  ;;  %v4758_v56 = vpop.permute.xlu2 %2027  ;;  %v3365_v0 = vsel %vm568_vm9, 1.0, %v5317_v27  ;;  %v1688_v25 = vadd.f32 %v3412_v60, %v3348_v46  ;;  %v1751_v58 = vpack.c.bf16 %v1687_v43, %v1687_v43  ;;  %v5376_v46 = vld [vmem:[#allocation68_spill] sm:$0xff] }
 0x23c   :  { %vm2328_vm11 = vcmp.eq.s32.totalorder %v2126_v8, %v3841_v16  ;;  %v2007_v59 = vpop.permute.xlu0 %2006  ;;  %v1770_v51 = vpack.c.bf16 %v1706_v19, %v1706_v19  ;;  %v2910_v24 = vunpack.c.l.b16 %v2777_v53  ;;  %v1705_v50 = vadd.f32 %v3429_v12, %v3365_v0 }
 0x23d   :  { %v3491_v17 = vsel %vm2328_vm11, 1.0, %v5317_v27  ;;  %vm2311_vm13 = vcmp.eq.s32.totalorder %v2007_v59, %v3841_v16  ;;  %v2960_v2 = vpack.c.b16 %v2924_v6, %v2923_v62  ;;  %v2601_v18 = vunpack.c.l.bf16 %v1784_v3  ;;  %v5374_v62 = vld [vmem:[#allocation27_spill] sm:$0xff] }
 0x23e   :  { %v2712_v54 = vadd.f32 %v3491_v17, %v2584_v37  ;;  %v3474_v52 = vsel %vm2311_vm13, 1.0, %v5317_v27  ;;  %v2891_v55 = vunpack.c.l.b16 %v2758_v45  ;;  %v2600_v26 = vunpack.c.l.bf16 %v1783_v20 }
 0x23f   :  { %v2695_v57 = vadd.f32 %v3474_v52, %v2567_v32  ;;  %3550 = vmatmul.msk.bf16.gmra.mxu3 %vm2980_vm10, %v2960_v2  ;;  %vm2331_vm14 = vcmp.eq.s32.totalorder %v4706_v61, %v3841_v16  ;;  %vm2312_vm0 = vcmp.eq.s32.totalorder %v4671_v22, %v3841_v16  ;;  %vm552_vm2 = vcmp.eq.s32.totalorder %v5370_v36, %v3841_v16 }
 0x240   :  { %v2776_v49 = vpack.c.bf16 %v2712_v54, %v2712_v54  ;;  %v1752_v61 = vpack.c.bf16 %v1688_v25, %v1688_v25  ;;  %vm1305_vm3 = vcmp.eq.s32.totalorder %v5371_v33, %v3841_v16  ;;  %v3494_v47 = vsel %vm2331_vm14, 1.0, %v5317_v27  ;;  %v5378_v33 = vld [vmem:[#allocation41_spill] sm:$0xff] }
 0x241   :  { %v2759_v29 = vpack.c.bf16 %v2695_v57, %v2695_v57  ;;  %v2587_v15 = vunpack.c.l.bf16 %v1770_v51  ;;  %v1769_v44 = vpack.c.bf16 %v1705_v50, %v1705_v50  ;;  %v3475_v38 = vsel %vm2312_vm0, 1.0, %v5317_v27 }
 0x242   :  { %v2909_v35 = vunpack.c.l.b16 %v2776_v49  ;;  %v3349_v30 = vsel %vm552_vm2, 1.0, %v5317_v27  ;;  %v2568_v6 = vunpack.c.l.bf16 %v1751_v58  ;;  %vm553_vm4 = vcmp.eq.s32.totalorder %v5372_v63, %v3841_v16 }
 0x243   :  { %v2892_v28 = vunpack.c.l.b16 %v2759_v29  ;;  %v2245_v10 = vpop.permute.xlu1 %2244  ;;  %v2161_v60 = vpop.permute.xlu2 %2160  ;;  %vm1306_vm8 = vcmp.eq.s32.totalorder %v5373_v21, %v3841_v16  ;;  %v2715_v9 = vadd.f32 %v3494_v47, %v2587_v15  ;;  %vm570_vm5 = vcmp.eq.s32.totalorder %v5374_v62, %v3841_v16  ;;  %v5379_v15 = vld [vmem:[#allocation22_spill] sm:$0xff]  ;;  %v5380_v62 = vld [vmem:[#allocation5_spill] sm:$0xff] }
 0x244   :  { %vm2345_vm15 = vcmp.eq.s32.totalorder %v2245_v10, %v3841_v16  ;;  %v2238_v5 = vpop.permute.xlu0 %2237  ;;  %v2953_v14 = vpack.c.b16 %v2910_v24, %v2909_v35  ;;  %v3413_v22 = vsel %vm1305_vm3, 1.0, %v5317_v27  ;;  %v2696_v8 = vadd.f32 %v3475_v38, %v2568_v6 }
 0x245   :  { %v3508_v48 = vsel %vm2345_vm15, 1.0, %v5317_v27  ;;  %vm2344_vm1 = vcmp.eq.s32.totalorder %v2238_v5, %v3841_v16  ;;  %v2944_v41 = vpack.c.b16 %v2892_v28, %v2891_v55  ;;  %v2569_v37 = vunpack.c.l.bf16 %v1752_v61  ;;  %v5377_v28 = vld [vmem:[#allocation67_spill] sm:$0xff] }
 0x246   :  { %v2729_v23 = vadd.f32 %v3508_v48, %v2601_v18  ;;  %v3507_v1 = vsel %vm2344_vm1, 1.0, %v5317_v27  ;;  %3543 = vmatmul.msk.bf16.gmra.mxu2 %vm2980_vm10, %v2953_v14  ;;  %v2586_v59 = vunpack.c.l.bf16 %v1769_v44  ;;  %vm1323_vm6 = vcmp.eq.s32.totalorder %v5375_v40, %v3841_v16 }
 0x247   :  { %v2728_v39 = vadd.f32 %v3507_v1, %v2600_v26  ;;  %3529 = vmatmul.msk.bf16.gmra.mxu0 %vm2980_vm10, %v2939_v31  ;;  %3534 = vmatmul.msk.bf16.gmra.mxu1 %vm2980_vm10, %v2944_v41  ;;  %v3414_v2 = vsel %vm1306_vm8, 1.0, %v5317_v27  ;;  %v1689_v54 = vadd.f32 %v3413_v22, %v3349_v30  ;;  %v2779_v52 = vpack.c.bf16 %v2715_v9, %v2715_v9 }
 0x248   :  { %v2793_v34 = vpack.c.bf16 %v2729_v23, %v2729_v23  ;;  %v3431_v57 = vsel %vm1323_vm6, 1.0, %v5317_v27  ;;  %v1785_v12 = vpack.c.bf16 %v5376_v46, %v5376_v46  ;;  %v2760_v20 = vpack.c.bf16 %v2696_v8, %v2696_v8 }
 0x249   :  { %v2792_v13 = vpack.c.bf16 %v2728_v39, %v2728_v39  ;;  %v3350_v0 = vsel %vm553_vm4, 1.0, %v5317_v27  ;;  %v1786_v25 = vpack.c.bf16 %v4182_v4, %v4182_v4  ;;  %v3367_v58 = vsel %vm570_vm5, 1.0, %v5317_v27 }
 0x24a   :  { %v2926_v31 = vunpack.c.l.b16 %v2793_v34  ;;  %v1690_v51 = vadd.f32 %v3414_v2, %v3350_v0  ;;  %v1753_v35 = vpack.c.bf16 %v1689_v54, %v1689_v54  ;;  %v1707_v50 = vadd.f32 %v3431_v57, %v3367_v58 }
 0x24b   :  { %v2925_v43 = vunpack.c.l.b16 %v2792_v13  ;;  %v2140_v32 = vpop.permute.xlu1 %2139  ;;  %v2912_v18 = vunpack.c.l.b16 %v2779_v52  ;;  %v1772_v10 = vpack.c.bf16 %v5377_v28, %v5377_v28  ;;  %v2602_v26 = vunpack.c.l.bf16 %v1785_v12  ;;  %v4829_v14 = vpop.permute.xlu2 %2041  ;;  %v5382_v52 = vld [vmem:[#allocation12_spill] sm:$0xff]  ;;  %v5383_v12 = vld [vmem:[#allocation70_spill] sm:$0xff]  ;;  %v5384_v28 = vld [vmem:[#allocation69_spill] sm:$0xff] }
 0x24c   :  { %vm2330_vm7 = vcmp.eq.s32.totalorder %v2140_v32, %v3841_v16  ;;  %v2021_v17 = vpop.permute.xlu0 %2020  ;;  %v2893_v5 = vunpack.c.l.b16 %v2760_v20  ;;  %v2603_v41 = vunpack.c.l.bf16 %v1786_v25  ;;  %vm2333_vm11 = vcmp.eq.s32.totalorder %v2161_v60, %v3841_v16 }
 0x24d   :  { %v3493_v19 = vsel %vm2330_vm7, 1.0, %v5317_v27  ;;  %vm2313_vm9 = vcmp.eq.s32.totalorder %v2021_v17, %v3841_v16  ;;  %v2961_v53 = vpack.c.b16 %v2926_v31, %v2925_v43  ;;  %vm2314_vm13 = vcmp.eq.s32.totalorder %v4758_v56, %v3841_v16 }
 0x24e   :  { %v2714_v3 = vadd.f32 %v3493_v19, %v2586_v59  ;;  %v3476_v45 = vsel %vm2313_vm9, 1.0, %v5317_v27  ;;  %vm1307_vm15 = vcmp.eq.s32.totalorder %v5378_v33, %v3841_v16  ;;  %vm554_vm0 = vcmp.eq.s32.totalorder %v5379_v15, %v3841_v16  ;;  %v5381_v59 = vld [vmem:[#allocation56_spill] sm:$0xff] }
 0x24f   :  { %v2697_v49 = vadd.f32 %v3476_v45, %v2569_v37  ;;  %3551 = vmatmul.msk.bf16.gmra.mxu3 %vm2980_vm10, %v2961_v53  ;;  %v3496_v44 = vsel %vm2333_vm11, 1.0, %v5317_v27  ;;  %v2589_v56 = vunpack.c.l.bf16 %v1772_v10  ;;  %v1771_v34 = vpack.c.bf16 %v1707_v50, %v1707_v50 }
 0x250   :  { %v2778_v29 = vpack.c.bf16 %v2714_v3, %v2714_v3  ;;  %v3477_v30 = vsel %vm2314_vm13, 1.0, %v5317_v27  ;;  %v3415_v60 = vsel %vm1307_vm15, 1.0, %v5317_v27  ;;  %v1754_v13 = vpack.c.bf16 %v1690_v51, %v1690_v51 }
 0x251   :  { %v2761_v24 = vpack.c.bf16 %v2697_v49, %v2697_v49  ;;  %v2570_v63 = vunpack.c.l.bf16 %v1753_v35  ;;  %v2717_v9 = vadd.f32 %v3496_v44, %v2589_v56  ;;  %vm540_vm1 = vcmp.eq.s32.totalorder %v5380_v62, %v3841_v16  ;;  %v5389_v56 = vld [vmem:[#allocation44_spill] sm:$0xff] }
 0x252   :  { %v2911_v55 = vunpack.c.l.b16 %v2778_v29  ;;  %v3351_v22 = vsel %vm554_vm0, 1.0, %v5317_v27  ;;  %vm1308_vm2 = vcmp.eq.s32.totalorder %v5381_v59, %v3841_v16  ;;  %v2588_v40 = vunpack.c.l.bf16 %v1771_v34 }
 0x253   :  { %v2894_v4 = vunpack.c.l.b16 %v2761_v24  ;;  %v2259_v48 = vpop.permute.xlu1 %2258  ;;  %v2698_v8 = vadd.f32 %v3477_v30, %v2570_v63  ;;  %v1691_v37 = vadd.f32 %v3415_v60, %v3351_v22  ;;  %v2571_v2 = vunpack.c.l.bf16 %v1754_v13  ;;  %v2175_v19 = vpop.permute.xlu2 %2174  ;;  %v5390_v60 = vld [vmem:[#allocation60_spill] sm:$0xff] }
 0x254   :  { %vm2347_vm12 = vcmp.eq.s32.totalorder %v2259_v48, %v3841_v16  ;;  %v2252_v36 = vpop.permute.xlu0 %2251  ;;  %v2954_v23 = vpack.c.b16 %v2912_v18, %v2911_v55  ;;  %vm555_vm8 = vcmp.eq.s32.totalorder %v5382_v52, %v3841_v16  ;;  %v2781_v3 = vpack.c.bf16 %v2717_v9, %v2717_v9 }
 0x255   :  { %v3510_v1 = vsel %vm2347_vm12, 1.0, %v5317_v27  ;;  %vm2346_vm14 = vcmp.eq.s32.totalorder %v2252_v36, %v3841_v16  ;;  %v2945_v61 = vpack.c.b16 %v2894_v4, %v2893_v5  ;;  %v3416_v46 = vsel %vm1308_vm2, 1.0, %v5317_v27 }
 0x256   :  { %v2731_v47 = vadd.f32 %v3510_v1, %v2603_v41  ;;  %v3509_v39 = vsel %vm2346_vm14, 1.0, %v5317_v27  ;;  %3544 = vmatmul.msk.bf16.gmra.mxu2 %vm2980_vm10, %v2954_v23  ;;  %v1788_v20 = vpack.c.bf16 %v5383_v12, %v5383_v12  ;;  %v2762_v49 = vpack.c.bf16 %v2698_v8, %v2698_v8  ;;  %v5385_v1 = vld [vmem:[#allocation11_spill] sm:$0xff] }
 0x257   :  { %v2730_v38 = vadd.f32 %v3509_v39, %v2602_v26  ;;  %3535 = vmatmul.msk.bf16.gmra.mxu1 %vm2980_vm10, %v2945_v61  ;;  %v1787_v25 = vpack.c.bf16 %v4171_v7, %v4171_v7  ;;  %v3337_v58 = vsel %vm540_vm1, 1.0, %v5317_v27  ;;  %v3352_v51 = vsel %vm555_vm8, 1.0, %v5317_v27  ;;  %v5387_v39 = vld [vmem:[#allocation40_spill] sm:$0xff] }
 0x258   :  { %v2795_v6 = vpack.c.bf16 %v2731_v47, %v2731_v47  ;;  %v1755_v24 = vpack.c.bf16 %v1691_v37, %v1691_v37  ;;  %v1692_v50 = vadd.f32 %v3416_v46, %v3352_v51  ;;  %v2914_v18 = vunpack.c.l.b16 %v2781_v3  ;;  %v5386_v47 = vld [vmem:[#allocation25_spill] sm:$0xff] }
 0x259   :  { %v2794_v21 = vpack.c.bf16 %v2730_v38, %v2730_v38  ;;  %vm3253_vm5 = vcmask 31744   ;;  %v1774_v10 = vpack.c.bf16 %v5384_v28, %v5384_v28  ;;  %v2605_v26 = vunpack.c.l.bf16 %v1788_v20  ;;  %v5388_v38 = vld [vmem:[#allocation39_spill] sm:$0xff] }
 0x25a   :  { %v2928_v31 = vunpack.c.l.b16 %v2795_v6  ;;  %v2895_v5 = vunpack.c.l.b16 %v2762_v49  ;;  %v2604_v48 = vunpack.c.l.bf16 %v1787_v25  ;;  %vm2335_vm6 = vcmp.eq.s32.totalorder %v2175_v19, %v3841_v16 }
 0x25b   :  { %v2927_v43 = vunpack.c.l.b16 %v2794_v21  ;;  %v2154_v32 = vpop.permute.xlu1 %2153  ;;  %vm541_vm9 = vcmp.eq.s32.totalorder %v5385_v1, %v3841_v16  ;;  %vm2316_vm11 = vcmp.eq.s32.totalorder %v4829_v14, %v3841_v16  ;;  %vm557_vm13 = vcmp.eq.s32.totalorder %v5386_v47, %v3841_v16  ;;  %v4896_v30 = vpop.permute.xlu2 %1943 }
 0x25c   :  { %vm2332_vm3 = vcmp.eq.s32.totalorder %v2154_v32, %v3841_v16  ;;  %v2035_v17 = vpop.permute.xlu0 %2034  ;;  %vm1293_vm14 = vcmp.eq.s32.totalorder %v5387_v39, %v3841_v16  ;;  %vm1294_vm15 = vcmp.eq.s32.totalorder %v5388_v38, %v3841_v16  ;;  %vm1310_vm0 = vcmp.eq.s32.totalorder %v5389_v56, %v3841_v16  ;;  %v5391_v32 = vld [vmem:[#allocation26_spill] sm:$0xff] }
 0x25d   :  { %v3495_v53 = vsel %vm2332_vm3, 1.0, %v5317_v27  ;;  %vm2315_vm4 = vcmp.eq.s32.totalorder %v2035_v17, %v3841_v16  ;;  %v2962_v54 = vpack.c.b16 %v2928_v31, %v2927_v43  ;;  %v3498_v34 = vsel %vm2335_vm6, 1.0, %v5317_v27 }
 0x25e   :  { %v2716_v45 = vadd.f32 %v3495_v53, %v2588_v40  ;;  %v3478_v57 = vsel %vm2315_vm4, 1.0, %v5317_v27  ;;  %v1773_v13 = vpack.c.bf16 %v5390_v60, %v5390_v60  ;;  %v2591_v63 = vunpack.c.l.bf16 %v1774_v10 }
 0x25f   :  { %v2699_v0 = vadd.f32 %v3478_v57, %v2571_v2  ;;  %3552 = vmatmul.msk.bf16.gmra.mxu3 %vm2980_vm10, %v2962_v54  ;;  %v3479_v21 = vsel %vm2316_vm11, 1.0, %v5317_v27  ;;  %v3401_v31 = vsel %vm1293_vm14, 1.0, %v5317_v27  ;;  %v2572_v62 = vunpack.c.l.bf16 %v1755_v24  ;;  %v5392_v54 = vld [vmem:[#allocation55_spill] sm:$0xff] }
 0x260   :  { %v2780_v29 = vpack.c.bf16 %v2716_v45, %v2716_v45  ;;  %v1756_v22 = vpack.c.bf16 %v1692_v50, %v1692_v50  ;;  %v3354_v43 = vsel %vm557_vm13, 1.0, %v5317_v27  ;;  %vm556_vm1 = vcmp.eq.s32.totalorder %v5391_v32, %v3841_v16 }
 0x261   :  { %v2763_v35 = vpack.c.bf16 %v2699_v0, %v2699_v0  ;;  %v2719_v37 = vadd.f32 %v3498_v34, %v2591_v63  ;;  %v3402_v14 = vsel %vm1294_vm15, 1.0, %v5317_v27  ;;  %v3418_v40 = vsel %vm1310_vm0, 1.0, %v5317_v27 }
 0x262   :  { %v2913_v55 = vunpack.c.l.b16 %v2780_v29  ;;  %v2700_v17 = vadd.f32 %v3479_v21, %v2572_v62  ;;  %v1677_v53 = vadd.f32 %v3401_v31, %v3337_v58  ;;  %vm1309_vm2 = vcmp.eq.s32.totalorder %v5392_v54, %v3841_v16 }
 0x263   :  { %v2896_v7 = vunpack.c.l.b16 %v2763_v35  ;;  %v2273_v4 = vpop.permute.xlu1 %2272  ;;  %v2590_v52 = vunpack.c.l.bf16 %v1773_v13  ;;  %v2573_v57 = vunpack.c.l.bf16 %v1756_v22  ;;  %v1694_v20 = vadd.f32 %v3418_v40, %v3354_v43  ;;  %v2063_v28 = vpop.permute.xlu2 %2062 }
 0x264   :  { %vm2349_vm7 = vcmp.eq.s32.totalorder %v2273_v4, %v3841_v16  ;;  %v3093_v41 = vpop.f32.mrf.mxu0  ;;  %v2266_v36 = vpop.permute.xlu0 %2265  ;;  %v2955_v23 = vpack.c.b16 %v2914_v18, %v2913_v55  ;;  %v2783_v49 = vpack.c.bf16 %v2719_v37, %v2719_v37  ;;  %v1790_v29 = vpack.c.bf16 %v4233_v11, %v4233_v11 }
 0x265   :  { %v3512_v61 = vsel %vm2349_vm7, 1.0, %v5317_v27  ;;  %3254 = vst.msk [vmem:[%s5215_s2] sm:$0xff] %vm3253_vm5, %v3093_v41  ;;  %vm2348_vm12 = vcmp.eq.s32.totalorder %v2266_v36, %v3841_v16  ;;  %v2946_v33 = vpack.c.b16 %v2896_v7, %v2895_v5  ;;  %v2764_v58 = vpack.c.bf16 %v2700_v17, %v2700_v17 }
 0x266   :  { %v2733_v15 = vadd.f32 %v3512_v61, %v2605_v26  ;;  %v3511_v44 = vsel %vm2348_vm12, 1.0, %v5317_v27  ;;  %3545 = vmatmul.msk.bf16.gmra.mxu2 %vm2980_vm10, %v2955_v23  ;;  %v3338_v24 = vsel %vm541_vm9, 1.0, %v5317_v27  ;;  %v3417_v35 = vsel %vm1309_vm2, 1.0, %v5317_v27 }
 0x267   :  { %v2732_v6 = vadd.f32 %v3511_v44, %v2604_v48  ;;  %3536 = vmatmul.msk.bf16.gmra.mxu1 %vm2980_vm10, %v2946_v33  ;;  %v1789_v50 = vpack.c.bf16 %v4242_v42, %v4242_v42  ;;  %v3353_v11 = vsel %vm556_vm1, 1.0, %v5317_v27  ;;  %v1678_v55 = vadd.f32 %v3402_v14, %v3338_v24 }
 0x268   :  { %v2797_v9 = vpack.c.bf16 %v2733_v15, %v2733_v15  ;;  %v1741_v26 = vpack.c.bf16 %v1677_v53, %v1677_v53  ;;  %v1758_v5 = vpack.c.bf16 %v1694_v20, %v1694_v20  ;;  %v2916_v7 = vunpack.c.l.b16 %v2783_v49 }
 0x269   :  { %v2796_v8 = vpack.c.bf16 %v2732_v6, %v2732_v6  ;;  %v1693_v48 = vadd.f32 %v3417_v35, %v3353_v11  ;;  %v2607_v41 = vunpack.c.l.bf16 %v1790_v29  ;;  %v2897_v36 = vunpack.c.l.b16 %v2764_v58 }
 0x26a   :  { %v2930_v59 = vunpack.c.l.b16 %v2797_v9  ;;  %v2606_v61 = vunpack.c.l.bf16 %v1789_v50  ;;  %vm2319_vm8 = vcmp.eq.s32.totalorder %v2063_v28, %v3841_v16  ;;  %vm2302_vm7 = vcmp.eq.s32.totalorder %v4896_v30, %v3841_v16 }
 0x26b   :  { %v2929_v2 = vunpack.c.l.b16 %v2796_v8  ;;  %v2168_v19 = vpop.permute.xlu1 %2167  ;;  %v3482_v56 = vsel %vm2319_vm8, 1.0, %v5317_v27  ;;  %v2575_v30 = vunpack.c.l.bf16 %v1758_v5  ;;  %v1757_v6 = vpack.c.bf16 %v1693_v48, %v1693_v48 }
 0x26c   :  { %vm2334_vm3 = vcmp.eq.s32.totalorder %v2168_v19, %v3841_v16  ;;  %v3095_v3 = vpop.f32.mrf.mxu0  ;;  %v2049_v45 = vpop.permute.xlu0 %2048  ;;  %v3465_v60 = vsel %vm2302_vm7, 1.0, %v5317_v27  ;;  %v1742_v63 = vpack.c.bf16 %v1678_v55, %v1678_v55  ;;  %v2558_v21 = vunpack.c.l.bf16 %v1741_v26 }
 0x26d   :  { %v3497_v46 = vsel %vm2334_vm3, 1.0, %v5317_v27  ;;  %3255 = vst.msk [vmem:[%s5215_s2 + $0x8] sm:$0xff] %vm3253_vm5, %v3095_v3  ;;  %vm2317_vm4 = vcmp.eq.s32.totalorder %v2049_v45, %v3841_v16  ;;  %v2963_v12 = vpack.c.b16 %v2930_v59, %v2929_v2  ;;  %v2703_v31 = vadd.f32 %v3482_v56, %v2575_v30 }
 0x26e   :  { %v2718_v0 = vadd.f32 %v3497_v46, %v2590_v52  ;;  %v3480_v25 = vsel %vm2317_vm4, 1.0, %v5317_v27  ;;  %v2686_v22 = vadd.f32 %v3465_v60, %v2558_v21  ;;  %v2574_v32 = vunpack.c.l.bf16 %v1757_v6 }
 0x26f   :  { %v2701_v51 = vadd.f32 %v3480_v25, %v2573_v57  ;;  %3553 = vmatmul.msk.bf16.gmra.mxu3 %vm2980_vm10, %v2963_v12  ;;  %v2559_v14 = vunpack.c.l.bf16 %v1742_v63  ;;  %v2767_v2 = vpack.c.bf16 %v2703_v31, %v2703_v31 }
 0x270   :  { %v2782_v18 = vpack.c.bf16 %v2718_v0, %v2718_v0  ;;  %v2750_v54 = vpack.c.bf16 %v2686_v22, %v2686_v22 }
 0x271   :  { %v2765_v10 = vpack.c.bf16 %v2701_v51, %v2701_v51  ;;  %v2900_v57 = vunpack.c.l.b16 %v2767_v2 }
 0x272   :  { %v2915_v4 = vunpack.c.l.b16 %v2782_v18  ;;  %v2883_v12 = vunpack.c.l.b16 %v2750_v54 }
 0x273   :  { %v2898_v23 = vunpack.c.l.b16 %v2765_v10  ;;  %v2287_v1 = vpop.permute.xlu1 %2286 }
 0x274   :  { %vm2351_vm6 = vcmp.eq.s32.totalorder %v2287_v1, %v3841_v16  ;;  %v3098_v42 = vpop.f32.mrf.mxu0  ;;  %v2280_v33 = vpop.permute.xlu0 %2279  ;;  %v2956_v47 = vpack.c.b16 %v2916_v7, %v2915_v4 }
 0x275   :  { %v3514_v39 = vsel %vm2351_vm6, 1.0, %v5317_v27  ;;  %3256 = vst.msk [vmem:[%s5215_s2 + $0x10] sm:$0xff] %vm3253_vm5, %v3098_v42  ;;  %vm2350_vm9 = vcmp.eq.s32.totalorder %v2280_v33, %v3841_v16  ;;  %v2947_v15 = vpack.c.b16 %v2898_v23, %v2897_v36 }
 0x276   :  { %v2735_v44 = vadd.f32 %v3514_v39, %v2607_v41  ;;  %v3513_v38 = vsel %vm2350_vm9, 1.0, %v5317_v27  ;;  %3546 = vmatmul.msk.bf16.gmra.mxu2 %vm2980_vm10, %v2956_v47 }
 0x277   :  { %v2734_v34 = vadd.f32 %v3513_v38, %v2606_v61  ;;  %3537 = vmatmul.msk.bf16.gmra.mxu1 %vm2980_vm10, %v2947_v15 }
 0x278   :  { %v2799_v13 = vpack.c.bf16 %v2735_v44, %v2735_v44 }
 0x279   :  { %v2798_v9 = vpack.c.bf16 %v2734_v34, %v2734_v34 }
 0x27a   :  { %v2932_v62 = vunpack.c.l.b16 %v2799_v13 }
 0x27b   :  { %v2931_v8 = vunpack.c.l.b16 %v2798_v9  ;;  %v2056_v43 = vpop.permute.xlu1 %2055 }
 0x27c   :  { %vm2318_vm11 = vcmp.eq.s32.totalorder %v2056_v43, %v3841_v16  ;;  %v3100_v37 = vpop.f32.mrf.mxu0  ;;  %v1951_v59 = vpop.permute.xlu0 %1950 }
 0x27d   :  { %v3481_v40 = vsel %vm2318_vm11, 1.0, %v5317_v27  ;;  %3257 = vst.msk [vmem:[%s5215_s2 + $0x18] sm:$0xff] %vm3253_vm5, %v3100_v37  ;;  %vm2303_vm12 = vcmp.eq.s32.totalorder %v1951_v59, %v3841_v16  ;;  %v2964_v17 = vpack.c.b16 %v2932_v62, %v2931_v8 }
 0x27e   :  { %v2702_v19 = vadd.f32 %v3481_v40, %v2574_v32  ;;  %v3466_v53 = vsel %vm2303_vm12, 1.0, %v5317_v27 }
 0x27f   :  { %v2687_v52 = vadd.f32 %v3466_v53, %v2559_v14  ;;  %3554 = vmatmul.msk.bf16.gmra.mxu3 %vm2980_vm10, %v2964_v17 }
 0x280   :  { %v2766_v3 = vpack.c.bf16 %v2702_v19, %v2702_v19 }
 0x281   :  { %v2751_v45 = vpack.c.bf16 %v2687_v52, %v2687_v52 }
 0x282   :  { %v2899_v46 = vunpack.c.l.b16 %v2766_v3 }
 0x283   :  { %v2884_v20 = vunpack.c.l.b16 %v2751_v45 }
 0x284   :  { %v3103_v49 = vpop.f32.mrf.mxu0  ;;  %v2948_v0 = vpack.c.b16 %v2900_v57, %v2899_v46 }
 0x285   :  { %3258 = vst.msk [vmem:[%s5215_s2 + $0x20] sm:$0xff] %vm3253_vm5, %v3103_v49  ;;  %v2940_v16 = vpack.c.b16 %v2884_v20, %v2883_v12 }
 0x287   :  { %3530 = vmatmul.msk.bf16.gmra.mxu0 %vm2980_vm10, %v2940_v16  ;;  %3538 = vmatmul.msk.bf16.gmra.mxu1 %vm2980_vm10, %v2948_v0 }
 0x289   :  { %v3173_v27 = vpop.f32.mrf.mxu2 }
 0x28a   :  { %3286 = vst.msk [vmem:[%s5215_s2 + $0x100] sm:$0xff] %vm3253_vm5, %v3173_v27 }
 0x28c   :  { %v3105_v25 = vpop.f32.mrf.mxu0 }
 0x28d   :  { %3259 = vst.msk [vmem:[%s5215_s2 + $0x28] sm:$0xff] %vm3253_vm5, %v3105_v25 }
 0x291   :  { %v3175_v29 = vpop.f32.mrf.mxu2 }
 0x292   :  { %3287 = vst.msk [vmem:[%s5215_s2 + $0x108] sm:$0xff] %vm3253_vm5, %v3175_v29  ;;  %v3213_v58 = vpop.f32.mrf.mxu3 }
 0x293   :  { %3302 = vst.msk [vmem:[%s5215_s2 + $0x180] sm:$0xff] %vm3253_vm5, %v3213_v58 }
 0x294   :  { %v3108_v51 = vpop.f32.mrf.mxu0  ;;  %v3133_v24 = vpop.f32.mrf.mxu1 }
 0x295   :  { %3260 = vst.msk [vmem:[%s5215_s2 + $0x30] sm:$0xff] %vm3253_vm5, %v3108_v51 }
 0x296   :  { %3270 = vst.msk [vmem:[%s5215_s2 + $0x80] sm:$0xff] %vm3253_vm5, %v3133_v24 }
 0x299   :  { %v3178_v35 = vpop.f32.mrf.mxu2 }
 0x29a   :  { %3288 = vst.msk [vmem:[%s5215_s2 + $0x110] sm:$0xff] %vm3253_vm5, %v3178_v35  ;;  %v3215_v50 = vpop.f32.mrf.mxu3 }
 0x29b   :  { %3303 = vst.msk [vmem:[%s5215_s2 + $0x188] sm:$0xff] %vm3253_vm5, %v3215_v50 }
 0x29c   :  { %v3110_v18 = vpop.f32.mrf.mxu0  ;;  %v3135_v11 = vpop.f32.mrf.mxu1 }
 0x29d   :  { %3261 = vst.msk [vmem:[%s5215_s2 + $0x38] sm:$0xff] %vm3253_vm5, %v3110_v18 }
 0x29e   :  { %3271 = vst.msk [vmem:[%s5215_s2 + $0x88] sm:$0xff] %vm3253_vm5, %v3135_v11 }
 0x2a1   :  { %v3180_v55 = vpop.f32.mrf.mxu2 }
 0x2a2   :  { %3289 = vst.msk [vmem:[%s5215_s2 + $0x118] sm:$0xff] %vm3253_vm5, %v3180_v55  ;;  %v3218_v28 = vpop.f32.mrf.mxu3 }
 0x2a3   :  { %3304 = vst.msk [vmem:[%s5215_s2 + $0x190] sm:$0xff] %vm3253_vm5, %v3218_v28 }
 0x2a4   :  { %v3113_v10 = vpop.f32.mrf.mxu0  ;;  %v3138_v26 = vpop.f32.mrf.mxu1 }
 0x2a5   :  { %3262 = vst.msk [vmem:[%s5215_s2 + $0x40] sm:$0xff] %vm3253_vm5, %v3113_v10 }
 0x2a6   :  { %3272 = vst.msk [vmem:[%s5215_s2 + $0x90] sm:$0xff] %vm3253_vm5, %v3138_v26 }
 0x2a9   :  { %v3183_v5 = vpop.f32.mrf.mxu2 }
 0x2aa   :  { %3290 = vst.msk [vmem:[%s5215_s2 + $0x120] sm:$0xff] %vm3253_vm5, %v3183_v5  ;;  %v3220_v7 = vpop.f32.mrf.mxu3 }
 0x2ab   :  { %3305 = vst.msk [vmem:[%s5215_s2 + $0x198] sm:$0xff] %vm3253_vm5, %v3220_v7 }
 0x2ac   :  { %v3115_v4 = vpop.f32.mrf.mxu0  ;;  %v3140_v48 = vpop.f32.mrf.mxu1 }
 0x2ad   :  { %3263 = vst.msk [vmem:[%s5215_s2 + $0x48] sm:$0xff] %vm3253_vm5, %v3115_v4 }
 0x2ae   :  { %3273 = vst.msk [vmem:[%s5215_s2 + $0x98] sm:$0xff] %vm3253_vm5, %v3140_v48 }
 0x2b1   :  { %v3185_v41 = vpop.f32.mrf.mxu2 }
 0x2b2   :  { %3291 = vst.msk [vmem:[%s5215_s2 + $0x128] sm:$0xff] %vm3253_vm5, %v3185_v41  ;;  %v3223_v36 = vpop.f32.mrf.mxu3 }
 0x2b3   :  { %3306 = vst.msk [vmem:[%s5215_s2 + $0x1a0] sm:$0xff] %vm3253_vm5, %v3223_v36 }
 0x2b4   :  { %v3118_v23 = vpop.f32.mrf.mxu0  ;;  %v3143_v1 = vpop.f32.mrf.mxu1 }
 0x2b5   :  { %3264 = vst.msk [vmem:[%s5215_s2 + $0x50] sm:$0xff] %vm3253_vm5, %v3118_v23 }
 0x2b6   :  { %3274 = vst.msk [vmem:[%s5215_s2 + $0xa0] sm:$0xff] %vm3253_vm5, %v3143_v1 }
 0x2b9   :  { %v3188_v61 = vpop.f32.mrf.mxu2 }
 0x2ba   :  { %3292 = vst.msk [vmem:[%s5215_s2 + $0x130] sm:$0xff] %vm3253_vm5, %v3188_v61  ;;  %v3225_v42 = vpop.f32.mrf.mxu3 }
 0x2bb   :  { %3307 = vst.msk [vmem:[%s5215_s2 + $0x1a8] sm:$0xff] %vm3253_vm5, %v3225_v42 }
 0x2bc   :  { %v3120_v33 = vpop.f32.mrf.mxu0  ;;  %v3145_v47 = vpop.f32.mrf.mxu1 }
 0x2bd   :  { %3265 = vst.msk [vmem:[%s5215_s2 + $0x58] sm:$0xff] %vm3253_vm5, %v3120_v33 }
 0x2be   :  { %3275 = vst.msk [vmem:[%s5215_s2 + $0xa8] sm:$0xff] %vm3253_vm5, %v3145_v47 }
 0x2c1   :  { %v3190_v39 = vpop.f32.mrf.mxu2 }
 0x2c2   :  { %3293 = vst.msk [vmem:[%s5215_s2 + $0x138] sm:$0xff] %vm3253_vm5, %v3190_v39  ;;  %v3228_v15 = vpop.f32.mrf.mxu3 }
 0x2c3   :  { %3308 = vst.msk [vmem:[%s5215_s2 + $0x1b0] sm:$0xff] %vm3253_vm5, %v3228_v15 }
 0x2c4   :  { %v3123_v44 = vpop.f32.mrf.mxu0  ;;  %v3148_v38 = vpop.f32.mrf.mxu1 }
 0x2c5   :  { %3266 = vst.msk [vmem:[%s5215_s2 + $0x60] sm:$0xff] %vm3253_vm5, %v3123_v44 }
 0x2c6   :  { %3276 = vst.msk [vmem:[%s5215_s2 + $0xb0] sm:$0xff] %vm3253_vm5, %v3148_v38 }
 0x2c9   :  { %v3193_v56 = vpop.f32.mrf.mxu2 }
 0x2ca   :  { %3294 = vst.msk [vmem:[%s5215_s2 + $0x140] sm:$0xff] %vm3253_vm5, %v3193_v56  ;;  %v3230_v34 = vpop.f32.mrf.mxu3 }
 0x2cb   :  { %3309 = vst.msk [vmem:[%s5215_s2 + $0x1b8] sm:$0xff] %vm3253_vm5, %v3230_v34 }
 0x2cc   :  { %v3125_v30 = vpop.f32.mrf.mxu0  ;;  %v3150_v6 = vpop.f32.mrf.mxu1 }
 0x2cd   :  { %3267 = vst.msk [vmem:[%s5215_s2 + $0x68] sm:$0xff] %vm3253_vm5, %v3125_v30 }
 0x2ce   :  { %3277 = vst.msk [vmem:[%s5215_s2 + $0xb8] sm:$0xff] %vm3253_vm5, %v3150_v6 }
 0x2d1   :  { %v3195_v60 = vpop.f32.mrf.mxu2 }
 0x2d2   :  { %3295 = vst.msk [vmem:[%s5215_s2 + $0x148] sm:$0xff] %vm3253_vm5, %v3195_v60  ;;  %v3233_v13 = vpop.f32.mrf.mxu3 }
 0x2d3   :  { %3310 = vst.msk [vmem:[%s5215_s2 + $0x1c0] sm:$0xff] %vm3253_vm5, %v3233_v13 }
 0x2d4   :  { %v3153_v63 = vpop.f32.mrf.mxu1 }
 0x2d5   :  { %3278 = vst.msk [vmem:[%s5215_s2 + $0xc0] sm:$0xff] %vm3253_vm5, %v3153_v63 }
 0x2d9   :  { %v3198_v21 = vpop.f32.mrf.mxu2 }
 0x2da   :  { %3296 = vst.msk [vmem:[%s5215_s2 + $0x150] sm:$0xff] %vm3253_vm5, %v3198_v21  ;;  %v3235_v9 = vpop.f32.mrf.mxu3 }
 0x2db   :  { %3311 = vst.msk [vmem:[%s5215_s2 + $0x1c8] sm:$0xff] %vm3253_vm5, %v3235_v9 }
 0x2dc   :  { %v3155_v31 = vpop.f32.mrf.mxu1 }
 0x2dd   :  { %3279 = vst.msk [vmem:[%s5215_s2 + $0xc8] sm:$0xff] %vm3253_vm5, %v3155_v31 }
 0x2e1   :  { %v3200_v62 = vpop.f32.mrf.mxu2 }
 0x2e2   :  { %3297 = vst.msk [vmem:[%s5215_s2 + $0x158] sm:$0xff] %vm3253_vm5, %v3200_v62  ;;  %v3238_v22 = vpop.f32.mrf.mxu3 }
 0x2e3   :  { %3312 = vst.msk [vmem:[%s5215_s2 + $0x1d0] sm:$0xff] %vm3253_vm5, %v3238_v22 }
 0x2e4   :  { %v3158_v8 = vpop.f32.mrf.mxu1 }
 0x2e5   :  { %3280 = vst.msk [vmem:[%s5215_s2 + $0xd0] sm:$0xff] %vm3253_vm5, %v3158_v8 }
 0x2e9   :  { %v3203_v43 = vpop.f32.mrf.mxu2 }
 0x2ea   :  { %3298 = vst.msk [vmem:[%s5215_s2 + $0x160] sm:$0xff] %vm3253_vm5, %v3203_v43  ;;  %v3240_v32 = vpop.f32.mrf.mxu3 }
 0x2eb   :  { %3313 = vst.msk [vmem:[%s5215_s2 + $0x1d8] sm:$0xff] %vm3253_vm5, %v3240_v32 }
 0x2ec   :  { %v3160_v37 = vpop.f32.mrf.mxu1 }
 0x2ed   :  { %3281 = vst.msk [vmem:[%s5215_s2 + $0xd8] sm:$0xff] %vm3253_vm5, %v3160_v37 }
 0x2f1   :  { %v3205_v59 = vpop.f32.mrf.mxu2 }
 0x2f2   :  { %3299 = vst.msk [vmem:[%s5215_s2 + $0x168] sm:$0xff] %vm3253_vm5, %v3205_v59  ;;  %v3243_v14 = vpop.f32.mrf.mxu3 }
 0x2f3   :  { %3314 = vst.msk [vmem:[%s5215_s2 + $0x1e0] sm:$0xff] %vm3253_vm5, %v3243_v14 }
 0x2f4   :  { %v3163_v40 = vpop.f32.mrf.mxu1 }
 0x2f5   :  { %3282 = vst.msk [vmem:[%s5215_s2 + $0xe0] sm:$0xff] %vm3253_vm5, %v3163_v40 }
 0x2f9   :  { %v3208_v17 = vpop.f32.mrf.mxu2 }
 0x2fa   :  { %3300 = vst.msk [vmem:[%s5215_s2 + $0x170] sm:$0xff] %vm3253_vm5, %v3208_v17  ;;  %v3245_v2 = vpop.f32.mrf.mxu3 }
 0x2fb   :  { %3315 = vst.msk [vmem:[%s5215_s2 + $0x1e8] sm:$0xff] %vm3253_vm5, %v3245_v2 }
 0x2fc   :  { %v3165_v19 = vpop.f32.mrf.mxu1 }
 0x2fd   :  { %3283 = vst.msk [vmem:[%s5215_s2 + $0xe8] sm:$0xff] %vm3253_vm5, %v3165_v19 }
 0x301   :  { %v3210_v53 = vpop.f32.mrf.mxu2 }
 0x302   :  { %3301 = vst.msk [vmem:[%s5215_s2 + $0x178] sm:$0xff] %vm3253_vm5, %v3210_v53  ;;  %v3248_v54 = vpop.f32.mrf.mxu3 }
 0x303   :  { %3316 = vst.msk [vmem:[%s5215_s2 + $0x1f0] sm:$0xff] %vm3253_vm5, %v3248_v54 }
 0x304   :  { %v3128_v52 = vpop.f32.mrf.mxu0  ;;  %v3168_v3 = vpop.f32.mrf.mxu1 }
 0x305   :  { %3268 = vst.msk [vmem:[%s5215_s2 + $0x70] sm:$0xff] %vm3253_vm5, %v3128_v52 }
 0x306   :  { %3284 = vst.msk [vmem:[%s5215_s2 + $0xf0] sm:$0xff] %vm3253_vm5, %v3168_v3 }
 0x30a   :  { %v3250_v45 = vpop.f32.mrf.mxu3 }
 0x30b   :  { %3317 = vst.msk [vmem:[%s5215_s2 + $0x1f8] sm:$0xff] %vm3253_vm5, %v3250_v45 }
 0x30c   :  { %v3130_v57 = vpop.f32.mrf.mxu0  ;;  %v3170_v46 = vpop.f32.mrf.mxu1 }
 0x30d   :  { %3269 = vst.msk [vmem:[%s5215_s2 + $0x78] sm:$0xff] %vm3253_vm5, %v3130_v57 }
 0x30e   :  { %3285 = vst.msk [vmem:[%s5215_s2 + $0xf8] sm:$0xff] %vm3253_vm5, %v3170_v46 }
 0x30f   :  { %3322 = vsyncpa [#allocation3], 1 }

</bundles_post_ra>
